<compile_context>
chip_gen: v6e
topology: v6e:2x2x1
jax: 0.10.0
libtpu: 0.0.40
codegen_flags: <defaults>
</compile_context>

<pallas_src>
import functools

import jax
import jax.numpy as jnp
from jax import lax
from jax.experimental import pallas as pl
from jax.experimental.pallas import tpu as pltpu

_TN = (((0,), (0,)), ((), ()))        # lhs-transposed matmul dimension numbers
_NEG_INF = -1e30


def _round_up(x, m):
    return ((x + m - 1) // m) * m


def _act(x, name):
    if name == "relu":
        return jnp.maximum(x, 0.0)
    if name == "sigmoid":
        return jax.nn.sigmoid(x)
    if name == "leaky_relu":          # F.leaky_relu default slope = 0.01
        return jnp.where(x > 0, x, 0.01 * x)
    return x


# --------------------------- row-tiled linear kernel -------------------------

def linear_kernel(x_ref, w_ref, b_ref, o_ref, *, pre_act, post_act):
    x = _act(x_ref[...], pre_act)
    y = jnp.dot(x, w_ref[...], preferred_element_type=jnp.float32) + b_ref[...]
    o_ref[...] = _act(y, post_act)


def pallas_linear(x, w, b, pre_act=None, post_act=None, row_tile=256):
    rows, in_dim = x.shape
    out_dim = w.shape[1]
    rt = min(row_tile, _round_up(rows, 8))
    rows_p = _round_up(rows, rt)
    if rows_p != rows:
        x = jnp.pad(x, ((0, rows_p - rows), (0, 0)))
    out = pl.pallas_call(
        functools.partial(linear_kernel, pre_act=pre_act, post_act=post_act),
        out_shape=jax.ShapeDtypeStruct((rows_p, out_dim), jnp.float32),
        grid=(rows_p // rt,),
        in_specs=[pl.BlockSpec((rt, in_dim), lambda i: (i, 0)),
                  pl.BlockSpec((in_dim, out_dim), lambda i: (0, 0)),
                  pl.BlockSpec((1, out_dim), lambda i: (0, 0))],
        out_specs=pl.BlockSpec((rt, out_dim), lambda i: (i, 0)),
        compiler_params=pltpu.CompilerParams(
            dimension_semantics=("parallel",)),
    )(x, w, b.reshape(1, -1))
    return out if rows_p == rows else out[:rows]


# --------------------- fused per-edge GATv2 logit kernel ---------------------

def edge_logits_kernel(xi_ref, xj_ref, ea_ref, we_ref, att_ref, o_ref, *,
                       heads, out_ch):
    """logits = sum_c( leaky_relu(x_i + x_j + lin_edge(e), 0.2) * att ) per head.

    xi/xj: [et, H*C] gathered target/source projections, heads lane-concat
    ea:    [et, edge_dim];  we: [edge_dim, H*C];  att: [1, H*C] flattened
    o:     [et, H] per-head logits
    """
    msg = (xi_ref[...] + xj_ref[...] +
           jnp.dot(ea_ref[...], we_ref[...], preferred_element_type=jnp.float32))
    z = jnp.where(msg > 0, msg, 0.2 * msg)                 # GATv2 leaky_relu(0.2)
    zw = z * att_ref[...]                                  # VPU multiply
    logs = [jnp.sum(zw[:, h * out_ch:(h + 1) * out_ch], axis=1, keepdims=True)
            for h in range(heads)]                         # lane reduces (XLU)
    o_ref[...] = jnp.concatenate(logs, axis=1)


def pallas_edge_logits(xi, xj, eattr, w_e, att_flat, *, heads, out_ch, edge_tile):
    e_pad, hc = xi.shape
    ed = eattr.shape[1]
    return pl.pallas_call(
        functools.partial(edge_logits_kernel, heads=heads, out_ch=out_ch),
        out_shape=jax.ShapeDtypeStruct((e_pad, heads), jnp.float32),
        grid=(e_pad // edge_tile,),
        in_specs=[pl.BlockSpec((edge_tile, hc), lambda i: (i, 0)),
                  pl.BlockSpec((edge_tile, hc), lambda i: (i, 0)),
                  pl.BlockSpec((edge_tile, ed), lambda i: (i, 0)),
                  pl.BlockSpec((ed, hc), lambda i: (0, 0)),
                  pl.BlockSpec((1, hc), lambda i: (0, 0))],
        out_specs=pl.BlockSpec((edge_tile, heads), lambda i: (i, 0)),
        compiler_params=pltpu.CompilerParams(
            dimension_semantics=("parallel",)),
    )(xi, xj, eattr, w_e, att_flat)


# --------------------- GATv2 softmax + aggregation kernel --------------------

def gat_agg_kernel(dst_ref, logit_ref, xj_ref, bias_ref, o_ref, *,
                   heads, out_ch, concat, node_tile):
    """Per-target-node softmax over incoming edges + weighted sum of x_j.

    dst:   [E, 1] int32 edge targets (pad edges carry an out-of-range id)
    logit: [E, H] per-head attention logits
    xj:    [E, H*C] projected source features
    o:     [node_tile, H*C] (concat) or [node_tile, C] (head mean), + bias
    """
    e = dst_ref.shape[0]
    base = pl.program_id(0) * node_tile
    node_ids = base + lax.broadcasted_iota(jnp.int32, (e, node_tile), 1)
    mask = dst_ref[...] == node_ids                      # [E, tile] incidence
    mask_f = mask.astype(jnp.float32)

    outs = []
    for h in range(heads):
        lo, hi = h * out_ch, (h + 1) * out_ch
        logit = logit_ref[:, h:h + 1]                    # [E, 1]
        scores = jnp.where(mask, logit, _NEG_INF)        # [E, tile]
        mx = jnp.max(scores, axis=0, keepdims=True)      # [1, tile]
        p = jnp.exp(scores - mx) * mask_f
        denom = jnp.sum(p, axis=0, keepdims=True)
        alpha = p * pl.reciprocal(jnp.where(denom > 0, denom, 1.0), approx=True)
        outs.append(lax.dot_general(alpha, xj_ref[:, lo:hi], _TN,
                                    preferred_element_type=jnp.float32))

    out = jnp.concatenate(outs, axis=1) if concat else sum(outs) * (1.0 / heads)
    o_ref[...] = out + bias_ref[...]


def pallas_gat_aggregate(logits, xj, dst, bias, n_pad, node_tile, *,
                         heads, out_ch, concat):
    # TODO(synk): for very large graphs, tile the edge axis too (online softmax
    # over sorted-by-target edge blocks with scalar-prefetched offsets).
    e, hc = xj.shape
    out_w = hc if concat else out_ch
    kern = functools.partial(gat_agg_kernel, heads=heads, out_ch=out_ch,
                             concat=concat, node_tile=node_tile)
    return pl.pallas_call(
        kern,
        out_shape=jax.ShapeDtypeStruct((n_pad, out_w), jnp.float32),
        grid=(n_pad // node_tile,),
        in_specs=[pl.BlockSpec((e, 1), lambda i: (0, 0)),
                  pl.BlockSpec((e, heads), lambda i: (0, 0)),
                  pl.BlockSpec((e, hc), lambda i: (0, 0)),
                  pl.BlockSpec((1, out_w), lambda i: (0, 0))],
        out_specs=pl.BlockSpec((node_tile, out_w), lambda i: (i, 0)),
        compiler_params=pltpu.CompilerParams(
            dimension_semantics=("parallel",)),
    )(dst.reshape(-1, 1).astype(jnp.int32), logits, xj, bias.reshape(1, -1))


# -------------- fused GlobalAttention pooling + fc head kernel ---------------

def global_attn_fc_kernel(h_ref, batch_ref, w1_ref, b1_ref, gw2_ref, gb2_ref,
                          nw2_ref, nb2_ref, fw1_ref, fb1_ref, fw2_ref, fb2_ref,
                          o_ref, m_ref, l_ref, acc_ref, *, hidden_dim):
    """gate_nn + nn MLPs, per-graph online softmax pooling, then fc head.

    h: [tile, 64]; batch: [tile, 1] int32 (pad rows hold an out-of-range id)
    w1: [64, 2*hidden] = [gate_w1 | nn_w1]; gw2: [1, hidden] (row vector)
    fc weights fw1 [256, 1024], fw2 [1024, 7] applied on the last grid step.
    o:  [G_pad, 7]
    """
    i = pl.program_id(0)

    @pl.when(i == 0)
    def _():
        m_ref[...] = jnp.full_like(m_ref, _NEG_INF)
        l_ref[...] = jnp.zeros_like(l_ref)
        acc_ref[...] = jnp.zeros_like(acc_ref)

    hid = jnp.dot(h_ref[...], w1_ref[...],
                  preferred_element_type=jnp.float32) + b1_ref[...]
    hid = jnp.maximum(hid, 0.0)                               # ReLU (dropout=id)
    gate = jnp.sum(hid[:, :hidden_dim] * gw2_ref[...], axis=1,
                   keepdims=True) + gb2_ref[...]              # [tile, 1]
    feat = jnp.dot(hid[:, hidden_dim:], nw2_ref[...],
                   preferred_element_type=jnp.float32) + nb2_ref[...]

    tile = h_ref.shape[0]
    g_pad = m_ref.shape[1]
    graph_ids = lax.broadcasted_iota(jnp.int32, (tile, g_pad), 1)
    mask = batch_ref[...] == graph_ids                        # [tile, G_pad]
    mask_f = mask.astype(jnp.float32)
    scores = jnp.where(mask, gate, _NEG_INF)

    m_prev = m_ref[...]
    m_new = jnp.maximum(m_prev, jnp.max(scores, axis=0, keepdims=True))
    corr = jnp.exp(m_prev - m_new)                            # [1, G_pad]
    p = jnp.exp(scores - m_new) * mask_f                      # [tile, G_pad]
    l_ref[...] = corr * l_ref[...] + jnp.sum(p, axis=0, keepdims=True)
    acc_ref[...] = corr * acc_ref[...] + lax.dot_general(
        feat, p, _TN, preferred_element_type=jnp.float32)     # [out, G_pad]
    m_ref[...] = m_new

    @pl.when(i == pl.num_programs(0) - 1)
    def _():
        l = l_ref[...]
        pooled_t = acc_ref[...] * pl.reciprocal(
            jnp.where(l > 0, l, 1.0), approx=True)            # [256, G_pad]
        # fc: ReLU -> Dropout(id) -> Linear(256,1024) -> Sigmoid -> Linear(1024,7)
        x = jnp.maximum(pooled_t, 0.0)
        fh = lax.dot_general(x, fw1_ref[...], _TN,
                             preferred_element_type=jnp.float32) + fb1_ref[...]
        fh = jax.nn.sigmoid(fh)                               # [G_pad, 1024]
        o_ref[...] = jnp.dot(fh, fw2_ref[...],
                             preferred_element_type=jnp.float32) + fb2_ref[...]


def pallas_global_attention_fc(h, batch_col, w1, b1, gw2, gb2, nw2, nb2,
                               fw1, fb1, fw2, fb2, *, g_pad, node_tile):
    n_pad, d = h.shape
    hidden, out_dim = nw2.shape
    n_out = fw2.shape[1]
    kern = functools.partial(global_attn_fc_kernel, hidden_dim=hidden)
    return pl.pallas_call(
        kern,
        out_shape=jax.ShapeDtypeStruct((g_pad, n_out), jnp.float32),
        grid=(n_pad // node_tile,),
        in_specs=[pl.BlockSpec((node_tile, d), lambda i: (i, 0)),
                  pl.BlockSpec((node_tile, 1), lambda i: (i, 0)),
                  pl.BlockSpec((d, 2 * hidden), lambda i: (0, 0)),
                  pl.BlockSpec((1, 2 * hidden), lambda i: (0, 0)),
                  pl.BlockSpec((1, hidden), lambda i: (0, 0)),
                  pl.BlockSpec((1, 1), lambda i: (0, 0)),
                  pl.BlockSpec((hidden, out_dim), lambda i: (0, 0)),
                  pl.BlockSpec((1, out_dim), lambda i: (0, 0)),
                  pl.BlockSpec((out_dim, fw1.shape[1]), lambda i: (0, 0)),
                  pl.BlockSpec((1, fw1.shape[1]), lambda i: (0, 0)),
                  pl.BlockSpec((fw2.shape[0], n_out), lambda i: (0, 0)),
                  pl.BlockSpec((1, n_out), lambda i: (0, 0))],
        out_specs=pl.BlockSpec((g_pad, n_out), lambda i: (0, 0)),
        scratch_shapes=[pltpu.VMEM((1, g_pad), jnp.float32),
                        pltpu.VMEM((1, g_pad), jnp.float32),
                        pltpu.VMEM((out_dim, g_pad), jnp.float32)],
        compiler_params=pltpu.CompilerParams(
            dimension_semantics=("arbitrary",)),
    )(h, batch_col, w1, b1.reshape(1, -1), gw2, gb2.reshape(1, 1),
      nw2, nb2.reshape(1, -1), fw1, fb1.reshape(1, -1), fw2, fb2.reshape(1, -1))


# --------------------------- GATv2Conv (one layer) ---------------------------

def gatv2_conv(x_pad, edge_index, edge_attr, p, *, heads, out_ch, concat,
               num_nodes, node_tile, pre_act=None):
    hc = heads * out_ch
    n_pad = x_pad.shape[0]

    # Fused source|target projection -> one lane-dense matmul.
    proj = pallas_linear(x_pad, p["w_lr"], p["b_lr"], pre_act=pre_act,
                         row_tile=node_tile)
    x_l, x_r = proj[:, :hc], proj[:, hc:]

    src, dst = edge_index[0], edge_index[1]
    ne = src.shape[0]
    # add_self_loops(fill_value='mean'): self-loop attr = mean of incoming attrs.
    deg = jax.ops.segment_sum(jnp.ones((ne,), jnp.float32), dst,
                              num_segments=num_nodes)
    loop_attr = (jax.ops.segment_sum(edge_attr, dst, num_segments=num_nodes)
                 / jnp.maximum(deg, 1.0)[:, None])
    loop = jnp.arange(num_nodes, dtype=src.dtype)
    src_f = jnp.concatenate([src, loop])
    dst_f = jnp.concatenate([dst, loop])
    eattr_f = jnp.concatenate([edge_attr, loop_attr], axis=0)

    # Pad the edge axis once; pad edges carry dst = n_pad (matches no node).
    e_total = src_f.shape[0]
    edge_tile = min(256, _round_up(e_total, 8))
    e_pad = _round_up(e_total, edge_tile)
    if e_pad != e_total:
        pad = e_pad - e_total
        src_f = jnp.pad(src_f, (0, pad))
        dst_f = jnp.pad(dst_f, (0, pad), constant_values=n_pad)
        eattr_f = jnp.pad(eattr_f, ((0, pad), (0, 0)))

    # TODO(synk): data-dependent node gathers stay in JAX glue (no static BlockSpec).
    xj = jnp.take(x_l, src_f, axis=0)                        # x_j = lin_l(x)[src]
    xi = jnp.take(x_r, jnp.minimum(dst_f, n_pad - 1), axis=0)  # x_i = lin_r(x)[dst]

    logits = pallas_edge_logits(xi, xj, eattr_f, p["w_e"],
                                p["att"].reshape(1, -1),
                                heads=heads, out_ch=out_ch, edge_tile=edge_tile)

    return pallas_gat_aggregate(logits, xj, dst_f, p["bias"], n_pad, node_tile,
                                heads=heads, out_ch=out_ch, concat=concat)


# ------------------------------- GATF forward --------------------------------

def gatf_forward(params, x, edge_index, edge_attr, batch, *, num_graphs):
    n = x.shape[0]
    node_tile = min(256, _round_up(n, 8))
    n_pad = _round_up(n, node_tile)
    g_pad = _round_up(num_graphs, 8)

    x_pad = jnp.pad(x, ((0, n_pad - n), (0, 0)))
    batch_pad = jnp.pad(batch.astype(jnp.int32), (0, n_pad - n),
                        constant_values=g_pad)     # pad nodes match no graph

    # GATmannEncoder
    h = gatv2_conv(x_pad, edge_index, edge_attr, params["gat_init"],
                   heads=2, out_ch=32, concat=True, num_nodes=n,
                   node_tile=node_tile)
    for lp in params["gat_layers"]:
        h = gatv2_conv(h, edge_index, edge_attr, lp, heads=2, out_ch=64,
                       concat=False, num_nodes=n, node_tile=node_tile,
                       pre_act="leaky_relu")

    # GlobalAttention pooling + fc head, fused (online per-graph softmax).
    out = pallas_global_attention_fc(
        h, batch_pad.reshape(-1, 1), params["attn_w1"], params["attn_b1"],
        params["gate_w2"], params["gate_b2"], params["nn_w2"], params["nn_b2"],
        params["fc_w1"], params["fc_b1"], params["fc_w2"], params["fc_b2"],
        g_pad=g_pad, node_tile=node_tile)                      # [G_pad, 7]
    return out[:num_graphs]


# ------------------------------ parameter init -------------------------------

def init_params(key):
    keys = iter(jax.random.split(key, 16))

    def glorot(shape):
        fan_in, fan_out = shape[-2], shape[-1]
        return jax.random.normal(next(keys), shape, jnp.float32) * jnp.sqrt(
            2.0 / (fan_in + fan_out))

    def gat_layer(in_dim, heads, out_ch, concat):
        hc = heads * out_ch
        return dict(
            w_lr=glorot((in_dim, 2 * hc)),       # [w_l | w_r] fused on lanes
            b_lr=jnp.zeros((2 * hc,), jnp.float32),
            w_e=glorot((10, hc)),
            att=glorot((heads, out_ch)),
            bias=jnp.zeros((hc if concat else out_ch,), jnp.float32))

    return dict(
        # gat_init: GATv2Conv(79 -> 32, heads=2, edge_dim=10, concat=True)
        gat_init=gat_layer(79, 2, 32, True),
        # 2 x GATv2Conv(64 -> 64, heads=2, edge_dim=10, concat=False)
        gat_layers=[gat_layer(64, 2, 64, False) for _ in range(2)],
        # GlobalAttention: gate_nn(64->512->1), nn(64->512->256), fused layer 1
        attn_w1=glorot((64, 1024)),
        attn_b1=jnp.full((1024,), 0.01, jnp.float32),
        gate_w2=glorot((1, 512)),                # stored transposed (VPU reduce)
        gate_b2=jnp.full((1,), 0.01, jnp.float32),
        nn_w2=glorot((512, 256)),
        nn_b2=jnp.full((256,), 0.01, jnp.float32),
        # fc head: 256 -> 1024 -> 7
        fc_w1=glorot((256, 1024)),
        fc_b1=jnp.full((1024,), 0.01, jnp.float32),
        fc_w2=glorot((1024, 7)),
        fc_b2=jnp.full((7,), 0.01, jnp.float32))


# ----------------------------------- main ------------------------------------

if __name__ == "__main__":
    key = jax.random.PRNGKey(0)
    k_param, k_x, k_e = jax.random.split(key, 3)
    params = init_params(k_param)

    nodes_per_graph, num_graphs = 6, 2
    n = nodes_per_graph * num_graphs
    x = jax.random.normal(k_x, (n, 79), jnp.float32)

    src_list, dst_list = [], []
    for g in range(num_graphs):
        o = g * nodes_per_graph
        for i in range(nodes_per_graph - 1):
            src_list += [o + i, o + i + 1]
            dst_list += [o + i + 1, o + i]
    edge_index = jnp.array([src_list, dst_list], dtype=jnp.int32)   # [2, 20]
    edge_attr = jax.random.normal(k_e, (edge_index.shape[1], 10), jnp.float32)
    batch = jnp.repeat(jnp.arange(num_graphs, dtype=jnp.int32), nodes_per_graph)

    fwd = jax.jit(functools.partial(gatf_forward, num_graphs=num_graphs))
    out = fwd(params, x, edge_index, edge_attr, batch)
    jax.block_until_ready(out)
    assert out.shape == (num_graphs, 7) and out.dtype == jnp.float32
    print("KERNEL_OK")
</pallas_src>

<mosaic_0001>
module attributes {stable_mosaic.version = 11 : i64} {
  func.func @linear_kernel(%arg0: i32, %arg1: memref<16x79xf32, #tpu.memory_space<vmem>>, %arg2: memref<79x128xf32, #tpu.memory_space<vmem>>, %arg3: memref<1x128xf32, #tpu.memory_space<vmem>>, %arg4: memref<16x128xf32, #tpu.memory_space<vmem>>) attributes {dimension_semantics = [#tpu.dimension_semantics<parallel>], iteration_bounds = array<i64: 1>, scalar_prefetch = 0 : i64, scratch_operands = 0 : i64, tpu.core_type = #tpu.core_type<tc>, window_params = [{transform_indices = @transform_0, window_bounds = array<i64: 16, 79>}, {pipeline_mode = #tpu.pipeline_mode<synchronous>, transform_indices = @transform_1, window_bounds = array<i64: 79, 128>}, {pipeline_mode = #tpu.pipeline_mode<synchronous>, transform_indices = @transform_2, window_bounds = array<i64: 1, 128>}, {transform_indices = @transform_3, window_bounds = array<i64: 16, 128>}]} {
    %c0 = arith.constant 0 : index
    %c0_0 = arith.constant 0 : index
    %0 = vector.load %arg1[%c0, %c0_0] : memref<16x79xf32, #tpu.memory_space<vmem>>, vector<16x79xf32>
    %c0_1 = arith.constant 0 : index
    %c0_2 = arith.constant 0 : index
    %1 = vector.load %arg2[%c0_1, %c0_2] : memref<79x128xf32, #tpu.memory_space<vmem>>, vector<79x128xf32>
    %cst = arith.constant dense<0.000000e+00> : vector<16x128xf32>
    %2 = tpu.matmul %0, %1, %cst {dimension_numbers = #tpu.dot_dimension_numbers<[1], [0], [0], [1], [0, 0, 1, 1], [], []>} : vector<16x79xf32>, vector<79x128xf32>, vector<16x128xf32> -> vector<16x128xf32>
    %c0_3 = arith.constant 0 : index
    %c0_4 = arith.constant 0 : index
    %3 = vector.load %arg3[%c0_3, %c0_4] : memref<1x128xf32, #tpu.memory_space<vmem>>, vector<1x128xf32>
    %4 = vector.broadcast %3 : vector<1x128xf32> to vector<16x128xf32>
    %5 = arith.addf %2, %4 : vector<16x128xf32>
    %c0_5 = arith.constant 0 : index
    %c0_6 = arith.constant 0 : index
    %6 = vector.load %arg4[%c0_5, %c0_6] : memref<16x128xf32, #tpu.memory_space<vmem>>, vector<16x128xf32>
    tpu.vector_store %arg4[%c0_5, %c0_6], %5 {strides = array<i32>} : memref<16x128xf32, #tpu.memory_space<vmem>>, vector<16x128xf32>,
    return
  }
  func.func @transform_0(%arg0: i32) -> (i32, i32) {
    %c0_i32 = arith.constant 0 : i32
    %c0_i32_0 = arith.constant 0 : i32
    return %arg0, %c0_i32 : i32, i32
  }
  func.func @transform_1(%arg0: i32) -> (i32, i32) {
    %c0_i32 = arith.constant 0 : i32
    %c0_i32_0 = arith.constant 0 : i32
    %c0_i32_1 = arith.constant 0 : i32
    return %c0_i32, %c0_i32_0 : i32, i32
  }
  func.func @transform_2(%arg0: i32) -> (i32, i32) {
    %c0_i32 = arith.constant 0 : i32
    %c0_i32_0 = arith.constant 0 : i32
    %c0_i32_1 = arith.constant 0 : i32
    return %c0_i32, %c0_i32_0 : i32, i32
  }
  func.func @transform_3(%arg0: i32) -> (i32, i32) {
    %c0_i32 = arith.constant 0 : i32
    %c0_i32_0 = arith.constant 0 : i32
    return %arg0, %c0_i32 : i32, i32
  }
}

module attributes {stable_mosaic.version = 11 : i64} {
  func.func @linear_kernel(%arg0: i32, %arg1: memref<16x64xf32, #tpu.memory_space<vmem>>, %arg2: memref<64x256xf32, #tpu.memory_space<vmem>>, %arg3: memref<1x256xf32, #tpu.memory_space<vmem>>, %arg4: memref<16x256xf32, #tpu.memory_space<vmem>>) attributes {dimension_semantics = [#tpu.dimension_semantics<parallel>], iteration_bounds = array<i64: 1>, scalar_prefetch = 0 : i64, scratch_operands = 0 : i64, tpu.core_type = #tpu.core_type<tc>, window_params = [{transform_indices = @transform_0, window_bounds = array<i64: 16, 64>}, {pipeline_mode = #tpu.pipeline_mode<synchronous>, transform_indices = @transform_1, window_bounds = array<i64: 64, 256>}, {pipeline_mode = #tpu.pipeline_mode<synchronous>, transform_indices = @transform_2, window_bounds = array<i64: 1, 256>}, {transform_indices = @transform_3, window_bounds = array<i64: 16, 256>}]} {
    %c0 = arith.constant 0 : index
    %c0_0 = arith.constant 0 : index
    %0 = vector.load %arg1[%c0, %c0_0] : memref<16x64xf32, #tpu.memory_space<vmem>>, vector<16x64xf32>
    %cst = arith.constant 0.000000e+00 : f32
    %1 = vector.broadcast %cst : f32 to vector<16x64xf32>
    %2 = arith.cmpf ogt, %0, %1 : vector<16x64xf32>
    %cst_1 = arith.constant 0.00999999977 : f32
    %3 = vector.broadcast %cst_1 : f32 to vector<16x64xf32>
    %4 = arith.mulf %3, %0 : vector<16x64xf32>
    %5 = arith.select %2, %0, %4 : vector<16x64xi1>, vector<16x64xf32>
    %c0_2 = arith.constant 0 : index
    %c0_3 = arith.constant 0 : index
    %6 = vector.load %arg2[%c0_2, %c0_3] : memref<64x256xf32, #tpu.memory_space<vmem>>, vector<64x256xf32>
    %cst_4 = arith.constant dense<0.000000e+00> : vector<16x256xf32>
    %7 = tpu.matmul %5, %6, %cst_4 {dimension_numbers = #tpu.dot_dimension_numbers<[1], [0], [0], [1], [0, 0, 1, 1], [], []>} : vector<16x64xf32>, vector<64x256xf32>, vector<16x256xf32> -> vector<16x256xf32>
    %c0_5 = arith.constant 0 : index
    %c0_6 = arith.constant 0 : index
    %8 = vector.load %arg3[%c0_5, %c0_6] : memref<1x256xf32, #tpu.memory_space<vmem>>, vector<1x256xf32>
    %9 = vector.broadcast %8 : vector<1x256xf32> to vector<16x256xf32>
    %10 = arith.addf %7, %9 : vector<16x256xf32>
    %c0_7 = arith.constant 0 : index
    %c0_8 = arith.constant 0 : index
    %11 = vector.load %arg4[%c0_7, %c0_8] : memref<16x256xf32, #tpu.memory_space<vmem>>, vector<16x256xf32>
    tpu.vector_store %arg4[%c0_7, %c0_8], %10 {strides = array<i32>} : memref<16x256xf32, #tpu.memory_space<vmem>>, vector<16x256xf32>,
    return
  }
  func.func @transform_0(%arg0: i32) -> (i32, i32) {
    %c0_i32 = arith.constant 0 : i32
    %c0_i32_0 = arith.constant 0 : i32
    return %arg0, %c0_i32 : i32, i32
  }
  func.func @transform_1(%arg0: i32) -> (i32, i32) {
    %c0_i32 = arith.constant 0 : i32
    %c0_i32_0 = arith.constant 0 : i32
    %c0_i32_1 = arith.constant 0 : i32
    return %c0_i32, %c0_i32_0 : i32, i32
  }
  func.func @transform_2(%arg0: i32) -> (i32, i32) {
    %c0_i32 = arith.constant 0 : i32
    %c0_i32_0 = arith.constant 0 : i32
    %c0_i32_1 = arith.constant 0 : i32
    return %c0_i32, %c0_i32_0 : i32, i32
  }
  func.func @transform_3(%arg0: i32) -> (i32, i32) {
    %c0_i32 = arith.constant 0 : i32
    %c0_i32_0 = arith.constant 0 : i32
    return %arg0, %c0_i32 : i32, i32
  }
}

module attributes {stable_mosaic.version = 11 : i64} {
  func.func @gat_agg_kernel(%arg0: i32, %arg1: memref<32x1xi32, #tpu.memory_space<vmem>>, %arg2: memref<32x2xf32, #tpu.memory_space<vmem>>, %arg3: memref<32x64xf32, #tpu.memory_space<vmem>>, %arg4: memref<1x64xf32, #tpu.memory_space<vmem>>, %arg5: memref<16x64xf32, #tpu.memory_space<vmem>>) attributes {dimension_semantics = [#tpu.dimension_semantics<parallel>], iteration_bounds = array<i64: 1>, scalar_prefetch = 0 : i64, scratch_operands = 0 : i64, tpu.core_type = #tpu.core_type<tc>, window_params = [{pipeline_mode = #tpu.pipeline_mode<synchronous>, transform_indices = @transform_0, window_bounds = array<i64: 32, 1>}, {pipeline_mode = #tpu.pipeline_mode<synchronous>, transform_indices = @transform_1, window_bounds = array<i64: 32, 2>}, {pipeline_mode = #tpu.pipeline_mode<synchronous>, transform_indices = @transform_2, window_bounds = array<i64: 32, 64>}, {pipeline_mode = #tpu.pipeline_mode<synchronous>, transform_indices = @transform_3, window_bounds = array<i64: 1, 64>}, {transform_indices = @transform_4, window_bounds = array<i64: 16, 64>}]} {
    %c16_i32 = arith.constant 16 : i32
    %0 = arith.muli %arg0, %c16_i32 : i32
    %1 = tpu.iota {dimensions = array<i32: 1>} : vector<32x16xi32>
    %2 = vector.broadcast %0 : i32 to vector<32x16xi32>
    %3 = arith.addi %2, %1 : vector<32x16xi32>
    %c0 = arith.constant 0 : index
    %c0_0 = arith.constant 0 : index
    %4 = vector.load %arg1[%c0, %c0_0] : memref<32x1xi32, #tpu.memory_space<vmem>>, vector<32x1xi32>
    %5 = vector.broadcast %4 : vector<32x1xi32> to vector<32x16xi32>
    %6 = arith.cmpi eq, %5, %3 : vector<32x16xi32>
    %7 = arith.extui %6 : vector<32x16xi1> to vector<32x16xi32>
    %8 = arith.sitofp %7 : vector<32x16xi32> to vector<32x16xf32>
    %c0_1 = arith.constant 0 : index
    %c0_2 = arith.constant 0 : index
    %9 = vector.load %arg2[%c0_1, %c0_2] : memref<32x2xf32, #tpu.memory_space<vmem>>, vector<32x1xf32>
    %cst = arith.constant -1.000000e+30 : f32
    %10 = vector.shape_cast %9 : vector<32x1xf32> to vector<32x1xf32>
    %11 = vector.broadcast %10 : vector<32x1xf32> to vector<32x16xf32>
    %12 = vector.broadcast %cst : f32 to vector<32x16xf32>
    %13 = arith.select %6, %11, %12 : vector<32x16xi1>, vector<32x16xf32>
    %cst_3 = arith.constant dense<0xFF800000> : vector<16xf32>
    %14 = vector.multi_reduction <maximumf>, %13, %cst_3 [0] : vector<32x16xf32> to vector<16xf32>
    %15 = vector.shape_cast %14 : vector<16xf32> to vector<1x16xf32>
    %16 = vector.broadcast %15 : vector<1x16xf32> to vector<32x16xf32>
    %17 = arith.subf %13, %16 : vector<32x16xf32>
    %18 = math.exp %17 : vector<32x16xf32>
    %19 = arith.mulf %18, %8 : vector<32x16xf32>
    %cst_4 = arith.constant dense<0.000000e+00> : vector<16xf32>
    %20 = vector.multi_reduction <add>, %19, %cst_4 [0] : vector<32x16xf32> to vector<16xf32>
    %21 = vector.shape_cast %20 : vector<16xf32> to vector<1x16xf32>
    %cst_5 = arith.constant 0.000000e+00 : f32
    %22 = vector.broadcast %cst_5 : f32 to vector<1x16xf32>
    %23 = arith.cmpf ogt, %21, %22 : vector<1x16xf32>
    %cst_6 = arith.constant 1.000000e+00 : f32
    %24 = vector.broadcast %cst_6 : f32 to vector<1x16xf32>
    %25 = arith.select %23, %21, %24 : vector<1x16xi1>, vector<1x16xf32>
    %26 = tpu.reciprocal %25 {approx = true} : vector<1x16xf32> -> vector<1x16xf32>
    %27 = vector.broadcast %26 : vector<1x16xf32> to vector<32x16xf32>
    %28 = arith.mulf %19, %27 : vector<32x16xf32>
    %c0_7 = arith.constant 0 : index
    %c0_8 = arith.constant 0 : index
    %29 = vector.load %arg3[%c0_7, %c0_8] : memref<32x64xf32, #tpu.memory_space<vmem>>, vector<32x32xf32>
    %cst_9 = arith.constant dense<0.000000e+00> : vector<16x32xf32>
    %30 = tpu.matmul %28, %29, %cst_9 {dimension_numbers = #tpu.dot_dimension_numbers<[0], [0], [1], [1], [0, 1, 1, 1], [], []>} : vector<32x16xf32>, vector<32x32xf32>, vector<16x32xf32> -> vector<16x32xf32>
    %c0_10 = arith.constant 0 : index
    %c1 = arith.constant 1 : index
    %31 = vector.load %arg2[%c0_10, %c1] : memref<32x2xf32, #tpu.memory_space<vmem>>, vector<32x1xf32>
    %cst_11 = arith.constant -1.000000e+30 : f32
    %32 = vector.shape_cast %31 : vector<32x1xf32> to vector<32x1xf32>
    %33 = vector.broadcast %32 : vector<32x1xf32> to vector<32x16xf32>
    %34 = vector.broadcast %cst_11 : f32 to vector<32x16xf32>
    %35 = arith.select %6, %33, %34 : vector<32x16xi1>, vector<32x16xf32>
    %cst_12 = arith.constant dense<0xFF800000> : vector<16xf32>
    %36 = vector.multi_reduction <maximumf>, %35, %cst_12 [0] : vector<32x16xf32> to vector<16xf32>
    %37 = vector.shape_cast %36 : vector<16xf32> to vector<1x16xf32>
    %38 = vector.broadcast %37 : vector<1x16xf32> to vector<32x16xf32>
    %39 = arith.subf %35, %38 : vector<32x16xf32>
    %40 = math.exp %39 : vector<32x16xf32>
    %41 = arith.mulf %40, %8 : vector<32x16xf32>
    %cst_13 = arith.constant dense<0.000000e+00> : vector<16xf32>
    %42 = vector.multi_reduction <add>, %41, %cst_13 [0] : vector<32x16xf32> to vector<16xf32>
    %43 = vector.shape_cast %42 : vector<16xf32> to vector<1x16xf32>
    %cst_14 = arith.constant 0.000000e+00 : f32
    %44 = vector.broadcast %cst_14 : f32 to vector<1x16xf32>
    %45 = arith.cmpf ogt, %43, %44 : vector<1x16xf32>
    %cst_15 = arith.constant 1.000000e+00 : f32
    %46 = vector.broadcast %cst_15 : f32 to vector<1x16xf32>
    %47 = arith.select %45, %43, %46 : vector<1x16xi1>, vector<1x16xf32>
    %48 = tpu.reciprocal %47 {approx = true} : vector<1x16xf32> -> vector<1x16xf32>
    %49 = vector.broadcast %48 : vector<1x16xf32> to vector<32x16xf32>
    %50 = arith.mulf %41, %49 : vector<32x16xf32>
    %c0_16 = arith.constant 0 : index
    %c32 = arith.constant 32 : index
    %51 = vector.load %arg3[%c0_16, %c32] : memref<32x64xf32, #tpu.memory_space<vmem>>, vector<32x32xf32>
    %cst_17 = arith.constant dense<0.000000e+00> : vector<16x32xf32>
    %52 = tpu.matmul %50, %51, %cst_17 {dimension_numbers = #tpu.dot_dimension_numbers<[0], [0], [1], [1], [0, 1, 1, 1], [], []>} : vector<32x16xf32>, vector<32x32xf32>, vector<16x32xf32> -> vector<16x32xf32>
    %53 = tpu.concatenate %30, %52 in 1 : vector<16x32xf32>, vector<16x32xf32> -> vector<16x64xf32>
    %c0_18 = arith.constant 0 : index
    %c0_19 = arith.constant 0 : index
    %54 = vector.load %arg4[%c0_18, %c0_19] : memref<1x64xf32, #tpu.memory_space<vmem>>, vector<1x64xf32>
    %55 = vector.broadcast %54 : vector<1x64xf32> to vector<16x64xf32>
    %56 = arith.addf %53, %55 : vector<16x64xf32>
    %c0_20 = arith.constant 0 : index
    %c0_21 = arith.constant 0 : index
    %57 = vector.load %arg5[%c0_20, %c0_21] : memref<16x64xf32, #tpu.memory_space<vmem>>, vector<16x64xf32>
    tpu.vector_store %arg5[%c0_20, %c0_21], %56 {strides = array<i32>} : memref<16x64xf32, #tpu.memory_space<vmem>>, vector<16x64xf32>,
    return
  }
  func.func @transform_0(%arg0: i32) -> (i32, i32) {
    %c0_i32 = arith.constant 0 : i32
    %c0_i32_0 = arith.constant 0 : i32
    %c0_i32_1 = arith.constant 0 : i32
    return %c0_i32, %c0_i32_0 : i32, i32
  }
  func.func @transform_1(%arg0: i32) -> (i32, i32) {
    %c0_i32 = arith.constant 0 : i32
    %c0_i32_0 = arith.constant 0 : i32
    %c0_i32_1 = arith.constant 0 : i32
    return %c0_i32, %c0_i32_0 : i32, i32
  }
  func.func @transform_2(%arg0: i32) -> (i32, i32) {
    %c0_i32 = arith.constant 0 : i32
    %c0_i32_0 = arith.constant 0 : i32
    %c0_i32_1 = arith.constant 0 : i32
    return %c0_i32, %c0_i32_0 : i32, i32
  }
  func.func @transform_3(%arg0: i32) -> (i32, i32) {
    %c0_i32 = arith.constant 0 : i32
    %c0_i32_0 = arith.constant 0 : i32
    %c0_i32_1 = arith.constant 0 : i32
    return %c0_i32, %c0_i32_0 : i32, i32
  }
  func.func @transform_4(%arg0: i32) -> (i32, i32) {
    %c0_i32 = arith.constant 0 : i32
    %c0_i32_0 = arith.constant 0 : i32
    return %arg0, %c0_i32 : i32, i32
  }
}

module attributes {stable_mosaic.version = 11 : i64} {
  func.func @edge_logits_kernel(%arg0: i32, %arg1: memref<32x64xf32, #tpu.memory_space<vmem>>, %arg2: memref<32x64xf32, #tpu.memory_space<vmem>>, %arg3: memref<32x10xf32, #tpu.memory_space<vmem>>, %arg4: memref<10x64xf32, #tpu.memory_space<vmem>>, %arg5: memref<1x64xf32, #tpu.memory_space<vmem>>, %arg6: memref<32x2xf32, #tpu.memory_space<vmem>>) attributes {dimension_semantics = [#tpu.dimension_semantics<parallel>], iteration_bounds = array<i64: 1>, scalar_prefetch = 0 : i64, scratch_operands = 0 : i64, tpu.core_type = #tpu.core_type<tc>, window_params = [{transform_indices = @transform_0, window_bounds = array<i64: 32, 64>}, {transform_indices = @transform_1, window_bounds = array<i64: 32, 64>}, {transform_indices = @transform_2, window_bounds = array<i64: 32, 10>}, {pipeline_mode = #tpu.pipeline_mode<synchronous>, transform_indices = @transform_3, window_bounds = array<i64: 10, 64>}, {pipeline_mode = #tpu.pipeline_mode<synchronous>, transform_indices = @transform_4, window_bounds = array<i64: 1, 64>}, {transform_indices = @transform_5, window_bounds = array<i64: 32, 2>}]} {
    %c0 = arith.constant 0 : index
    %c0_0 = arith.constant 0 : index
    %0 = vector.load %arg1[%c0, %c0_0] : memref<32x64xf32, #tpu.memory_space<vmem>>, vector<32x64xf32>
    %c0_1 = arith.constant 0 : index
    %c0_2 = arith.constant 0 : index
    %1 = vector.load %arg2[%c0_1, %c0_2] : memref<32x64xf32, #tpu.memory_space<vmem>>, vector<32x64xf32>
    %2 = arith.addf %0, %1 : vector<32x64xf32>
    %c0_3 = arith.constant 0 : index
    %c0_4 = arith.constant 0 : index
    %3 = vector.load %arg3[%c0_3, %c0_4] : memref<32x10xf32, #tpu.memory_space<vmem>>, vector<32x10xf32>
    %c0_5 = arith.constant 0 : index
    %c0_6 = arith.constant 0 : index
    %4 = vector.load %arg4[%c0_5, %c0_6] : memref<10x64xf32, #tpu.memory_space<vmem>>, vector<10x64xf32>
    %cst = arith.constant dense<0.000000e+00> : vector<32x64xf32>
    %5 = tpu.matmul %3, %4, %cst {dimension_numbers = #tpu.dot_dimension_numbers<[1], [0], [0], [1], [0, 0, 1, 1], [], []>} : vector<32x10xf32>, vector<10x64xf32>, vector<32x64xf32> -> vector<32x64xf32>
    %6 = arith.addf %2, %5 : vector<32x64xf32>
    %cst_7 = arith.constant 0.000000e+00 : f32
    %7 = vector.broadcast %cst_7 : f32 to vector<32x64xf32>
    %8 = arith.cmpf ogt, %6, %7 : vector<32x64xf32>
    %cst_8 = arith.constant 2.000000e-01 : f32
    %9 = vector.broadcast %cst_8 : f32 to vector<32x64xf32>
    %10 = arith.mulf %9, %6 : vector<32x64xf32>
    %11 = arith.select %8, %6, %10 : vector<32x64xi1>, vector<32x64xf32>
    %c0_9 = arith.constant 0 : index
    %c0_10 = arith.constant 0 : index
    %12 = vector.load %arg5[%c0_9, %c0_10] : memref<1x64xf32, #tpu.memory_space<vmem>>, vector<1x64xf32>
    %13 = vector.broadcast %12 : vector<1x64xf32> to vector<32x64xf32>
    %14 = arith.mulf %11, %13 : vector<32x64xf32>
    %15 = vector.extract_strided_slice %14 {offsets = [0, 0], sizes = [32, 32], strides = [1, 1]} : vector<32x64xf32> to vector<32x32xf32>
    %cst_11 = arith.constant dense<0.000000e+00> : vector<32xf32>
    %16 = vector.multi_reduction <add>, %15, %cst_11 [1] : vector<32x32xf32> to vector<32xf32>
    %17 = vector.shape_cast %16 : vector<32xf32> to vector<32x1xf32>
    %18 = vector.extract_strided_slice %14 {offsets = [0, 32], sizes = [32, 32], strides = [1, 1]} : vector<32x64xf32> to vector<32x32xf32>
    %cst_12 = arith.constant dense<0.000000e+00> : vector<32xf32>
    %19 = vector.multi_reduction <add>, %18, %cst_12 [1] : vector<32x32xf32> to vector<32xf32>
    %20 = vector.shape_cast %19 : vector<32xf32> to vector<32x1xf32>
    %21 = tpu.concatenate %17, %20 in 1 : vector<32x1xf32>, vector<32x1xf32> -> vector<32x2xf32>
    %c0_13 = arith.constant 0 : index
    %c0_14 = arith.constant 0 : index
    %22 = vector.load %arg6[%c0_13, %c0_14] : memref<32x2xf32, #tpu.memory_space<vmem>>, vector<32x2xf32>
    tpu.vector_store %arg6[%c0_13, %c0_14], %21 {strides = array<i32>} : memref<32x2xf32, #tpu.memory_space<vmem>>, vector<32x2xf32>,
    return
  }
  func.func @transform_0(%arg0: i32) -> (i32, i32) {
    %c0_i32 = arith.constant 0 : i32
    %c0_i32_0 = arith.constant 0 : i32
    return %arg0, %c0_i32 : i32, i32
  }
  func.func @transform_1(%arg0: i32) -> (i32, i32) {
    %c0_i32 = arith.constant 0 : i32
    %c0_i32_0 = arith.constant 0 : i32
    return %arg0, %c0_i32 : i32, i32
  }
  func.func @transform_2(%arg0: i32) -> (i32, i32) {
    %c0_i32 = arith.constant 0 : i32
    %c0_i32_0 = arith.constant 0 : i32
    return %arg0, %c0_i32 : i32, i32
  }
  func.func @transform_3(%arg0: i32) -> (i32, i32) {
    %c0_i32 = arith.constant 0 : i32
    %c0_i32_0 = arith.constant 0 : i32
    %c0_i32_1 = arith.constant 0 : i32
    return %c0_i32, %c0_i32_0 : i32, i32
  }
  func.func @transform_4(%arg0: i32) -> (i32, i32) {
    %c0_i32 = arith.constant 0 : i32
    %c0_i32_0 = arith.constant 0 : i32
    %c0_i32_1 = arith.constant 0 : i32
    return %c0_i32, %c0_i32_0 : i32, i32
  }
  func.func @transform_5(%arg0: i32) -> (i32, i32) {
    %c0_i32 = arith.constant 0 : i32
    %c0_i32_0 = arith.constant 0 : i32
    return %arg0, %c0_i32 : i32, i32
  }
}

module attributes {stable_mosaic.version = 11 : i64} {
  func.func @gat_agg_kernel(%arg0: i32, %arg1: memref<32x1xi32, #tpu.memory_space<vmem>>, %arg2: memref<32x2xf32, #tpu.memory_space<vmem>>, %arg3: memref<32x128xf32, #tpu.memory_space<vmem>>, %arg4: memref<1x64xf32, #tpu.memory_space<vmem>>, %arg5: memref<16x64xf32, #tpu.memory_space<vmem>>) attributes {dimension_semantics = [#tpu.dimension_semantics<parallel>], iteration_bounds = array<i64: 1>, scalar_prefetch = 0 : i64, scratch_operands = 0 : i64, tpu.core_type = #tpu.core_type<tc>, window_params = [{pipeline_mode = #tpu.pipeline_mode<synchronous>, transform_indices = @transform_0, window_bounds = array<i64: 32, 1>}, {pipeline_mode = #tpu.pipeline_mode<synchronous>, transform_indices = @transform_1, window_bounds = array<i64: 32, 2>}, {pipeline_mode = #tpu.pipeline_mode<synchronous>, transform_indices = @transform_2, window_bounds = array<i64: 32, 128>}, {pipeline_mode = #tpu.pipeline_mode<synchronous>, transform_indices = @transform_3, window_bounds = array<i64: 1, 64>}, {transform_indices = @transform_4, window_bounds = array<i64: 16, 64>}]} {
    %c16_i32 = arith.constant 16 : i32
    %0 = arith.muli %arg0, %c16_i32 : i32
    %1 = tpu.iota {dimensions = array<i32: 1>} : vector<32x16xi32>
    %2 = vector.broadcast %0 : i32 to vector<32x16xi32>
    %3 = arith.addi %2, %1 : vector<32x16xi32>
    %c0 = arith.constant 0 : index
    %c0_0 = arith.constant 0 : index
    %4 = vector.load %arg1[%c0, %c0_0] : memref<32x1xi32, #tpu.memory_space<vmem>>, vector<32x1xi32>
    %5 = vector.broadcast %4 : vector<32x1xi32> to vector<32x16xi32>
    %6 = arith.cmpi eq, %5, %3 : vector<32x16xi32>
    %7 = arith.extui %6 : vector<32x16xi1> to vector<32x16xi32>
    %8 = arith.sitofp %7 : vector<32x16xi32> to vector<32x16xf32>
    %c0_1 = arith.constant 0 : index
    %c0_2 = arith.constant 0 : index
    %9 = vector.load %arg2[%c0_1, %c0_2] : memref<32x2xf32, #tpu.memory_space<vmem>>, vector<32x1xf32>
    %cst = arith.constant -1.000000e+30 : f32
    %10 = vector.shape_cast %9 : vector<32x1xf32> to vector<32x1xf32>
    %11 = vector.broadcast %10 : vector<32x1xf32> to vector<32x16xf32>
    %12 = vector.broadcast %cst : f32 to vector<32x16xf32>
    %13 = arith.select %6, %11, %12 : vector<32x16xi1>, vector<32x16xf32>
    %cst_3 = arith.constant dense<0xFF800000> : vector<16xf32>
    %14 = vector.multi_reduction <maximumf>, %13, %cst_3 [0] : vector<32x16xf32> to vector<16xf32>
    %15 = vector.shape_cast %14 : vector<16xf32> to vector<1x16xf32>
    %16 = vector.broadcast %15 : vector<1x16xf32> to vector<32x16xf32>
    %17 = arith.subf %13, %16 : vector<32x16xf32>
    %18 = math.exp %17 : vector<32x16xf32>
    %19 = arith.mulf %18, %8 : vector<32x16xf32>
    %cst_4 = arith.constant dense<0.000000e+00> : vector<16xf32>
    %20 = vector.multi_reduction <add>, %19, %cst_4 [0] : vector<32x16xf32> to vector<16xf32>
    %21 = vector.shape_cast %20 : vector<16xf32> to vector<1x16xf32>
    %cst_5 = arith.constant 0.000000e+00 : f32
    %22 = vector.broadcast %cst_5 : f32 to vector<1x16xf32>
    %23 = arith.cmpf ogt, %21, %22 : vector<1x16xf32>
    %cst_6 = arith.constant 1.000000e+00 : f32
    %24 = vector.broadcast %cst_6 : f32 to vector<1x16xf32>
    %25 = arith.select %23, %21, %24 : vector<1x16xi1>, vector<1x16xf32>
    %26 = tpu.reciprocal %25 {approx = true} : vector<1x16xf32> -> vector<1x16xf32>
    %27 = vector.broadcast %26 : vector<1x16xf32> to vector<32x16xf32>
    %28 = arith.mulf %19, %27 : vector<32x16xf32>
    %c0_7 = arith.constant 0 : index
    %c0_8 = arith.constant 0 : index
    %29 = vector.load %arg3[%c0_7, %c0_8] : memref<32x128xf32, #tpu.memory_space<vmem>>, vector<32x64xf32>
    %cst_9 = arith.constant dense<0.000000e+00> : vector<16x64xf32>
    %30 = tpu.matmul %28, %29, %cst_9 {dimension_numbers = #tpu.dot_dimension_numbers<[0], [0], [1], [1], [0, 1, 1, 1], [], []>} : vector<32x16xf32>, vector<32x64xf32>, vector<16x64xf32> -> vector<16x64xf32>
    %c0_10 = arith.constant 0 : index
    %c1 = arith.constant 1 : index
    %31 = vector.load %arg2[%c0_10, %c1] : memref<32x2xf32, #tpu.memory_space<vmem>>, vector<32x1xf32>
    %cst_11 = arith.constant -1.000000e+30 : f32
    %32 = vector.shape_cast %31 : vector<32x1xf32> to vector<32x1xf32>
    %33 = vector.broadcast %32 : vector<32x1xf32> to vector<32x16xf32>
    %34 = vector.broadcast %cst_11 : f32 to vector<32x16xf32>
    %35 = arith.select %6, %33, %34 : vector<32x16xi1>, vector<32x16xf32>
    %cst_12 = arith.constant dense<0xFF800000> : vector<16xf32>
    %36 = vector.multi_reduction <maximumf>, %35, %cst_12 [0] : vector<32x16xf32> to vector<16xf32>
    %37 = vector.shape_cast %36 : vector<16xf32> to vector<1x16xf32>
    %38 = vector.broadcast %37 : vector<1x16xf32> to vector<32x16xf32>
    %39 = arith.subf %35, %38 : vector<32x16xf32>
    %40 = math.exp %39 : vector<32x16xf32>
    %41 = arith.mulf %40, %8 : vector<32x16xf32>
    %cst_13 = arith.constant dense<0.000000e+00> : vector<16xf32>
    %42 = vector.multi_reduction <add>, %41, %cst_13 [0] : vector<32x16xf32> to vector<16xf32>
    %43 = vector.shape_cast %42 : vector<16xf32> to vector<1x16xf32>
    %cst_14 = arith.constant 0.000000e+00 : f32
    %44 = vector.broadcast %cst_14 : f32 to vector<1x16xf32>
    %45 = arith.cmpf ogt, %43, %44 : vector<1x16xf32>
    %cst_15 = arith.constant 1.000000e+00 : f32
    %46 = vector.broadcast %cst_15 : f32 to vector<1x16xf32>
    %47 = arith.select %45, %43, %46 : vector<1x16xi1>, vector<1x16xf32>
    %48 = tpu.reciprocal %47 {approx = true} : vector<1x16xf32> -> vector<1x16xf32>
    %49 = vector.broadcast %48 : vector<1x16xf32> to vector<32x16xf32>
    %50 = arith.mulf %41, %49 : vector<32x16xf32>
    %c0_16 = arith.constant 0 : index
    %c64 = arith.constant 64 : index
    %51 = vector.load %arg3[%c0_16, %c64] : memref<32x128xf32, #tpu.memory_space<vmem>>, vector<32x64xf32>
    %cst_17 = arith.constant dense<0.000000e+00> : vector<16x64xf32>
    %52 = tpu.matmul %50, %51, %cst_17 {dimension_numbers = #tpu.dot_dimension_numbers<[0], [0], [1], [1], [0, 1, 1, 1], [], []>} : vector<32x16xf32>, vector<32x64xf32>, vector<16x64xf32> -> vector<16x64xf32>
    %cst_18 = arith.constant 0.000000e+00 : f32
    %53 = vector.broadcast %cst_18 : f32 to vector<16x64xf32>
    %54 = arith.addf %53, %30 : vector<16x64xf32>
    %55 = arith.addf %54, %52 : vector<16x64xf32>
    %cst_19 = arith.constant 5.000000e-01 : f32
    %56 = vector.broadcast %cst_19 : f32 to vector<16x64xf32>
    %57 = arith.mulf %55, %56 : vector<16x64xf32>
    %c0_20 = arith.constant 0 : index
    %c0_21 = arith.constant 0 : index
    %58 = vector.load %arg4[%c0_20, %c0_21] : memref<1x64xf32, #tpu.memory_space<vmem>>, vector<1x64xf32>
    %59 = vector.broadcast %58 : vector<1x64xf32> to vector<16x64xf32>
    %60 = arith.addf %57, %59 : vector<16x64xf32>
    %c0_22 = arith.constant 0 : index
    %c0_23 = arith.constant 0 : index
    %61 = vector.load %arg5[%c0_22, %c0_23] : memref<16x64xf32, #tpu.memory_space<vmem>>, vector<16x64xf32>
    tpu.vector_store %arg5[%c0_22, %c0_23], %60 {strides = array<i32>} : memref<16x64xf32, #tpu.memory_space<vmem>>, vector<16x64xf32>,
    return
  }
  func.func @transform_0(%arg0: i32) -> (i32, i32) {
    %c0_i32 = arith.constant 0 : i32
    %c0_i32_0 = arith.constant 0 : i32
    %c0_i32_1 = arith.constant 0 : i32
    return %c0_i32, %c0_i32_0 : i32, i32
  }
  func.func @transform_1(%arg0: i32) -> (i32, i32) {
    %c0_i32 = arith.constant 0 : i32
    %c0_i32_0 = arith.constant 0 : i32
    %c0_i32_1 = arith.constant 0 : i32
    return %c0_i32, %c0_i32_0 : i32, i32
  }
  func.func @transform_2(%arg0: i32) -> (i32, i32) {
    %c0_i32 = arith.constant 0 : i32
    %c0_i32_0 = arith.constant 0 : i32
    %c0_i32_1 = arith.constant 0 : i32
    return %c0_i32, %c0_i32_0 : i32, i32
  }
  func.func @transform_3(%arg0: i32) -> (i32, i32) {
    %c0_i32 = arith.constant 0 : i32
    %c0_i32_0 = arith.constant 0 : i32
    %c0_i32_1 = arith.constant 0 : i32
    return %c0_i32, %c0_i32_0 : i32, i32
  }
  func.func @transform_4(%arg0: i32) -> (i32, i32) {
    %c0_i32 = arith.constant 0 : i32
    %c0_i32_0 = arith.constant 0 : i32
    return %arg0, %c0_i32 : i32, i32
  }
}

module attributes {stable_mosaic.version = 11 : i64} {
  func.func @edge_logits_kernel(%arg0: i32, %arg1: memref<32x128xf32, #tpu.memory_space<vmem>>, %arg2: memref<32x128xf32, #tpu.memory_space<vmem>>, %arg3: memref<32x10xf32, #tpu.memory_space<vmem>>, %arg4: memref<10x128xf32, #tpu.memory_space<vmem>>, %arg5: memref<1x128xf32, #tpu.memory_space<vmem>>, %arg6: memref<32x2xf32, #tpu.memory_space<vmem>>) attributes {dimension_semantics = [#tpu.dimension_semantics<parallel>], iteration_bounds = array<i64: 1>, scalar_prefetch = 0 : i64, scratch_operands = 0 : i64, tpu.core_type = #tpu.core_type<tc>, window_params = [{transform_indices = @transform_0, window_bounds = array<i64: 32, 128>}, {transform_indices = @transform_1, window_bounds = array<i64: 32, 128>}, {transform_indices = @transform_2, window_bounds = array<i64: 32, 10>}, {pipeline_mode = #tpu.pipeline_mode<synchronous>, transform_indices = @transform_3, window_bounds = array<i64: 10, 128>}, {pipeline_mode = #tpu.pipeline_mode<synchronous>, transform_indices = @transform_4, window_bounds = array<i64: 1, 128>}, {transform_indices = @transform_5, window_bounds = array<i64: 32, 2>}]} {
    %c0 = arith.constant 0 : index
    %c0_0 = arith.constant 0 : index
    %0 = vector.load %arg1[%c0, %c0_0] : memref<32x128xf32, #tpu.memory_space<vmem>>, vector<32x128xf32>
    %c0_1 = arith.constant 0 : index
    %c0_2 = arith.constant 0 : index
    %1 = vector.load %arg2[%c0_1, %c0_2] : memref<32x128xf32, #tpu.memory_space<vmem>>, vector<32x128xf32>
    %2 = arith.addf %0, %1 : vector<32x128xf32>
    %c0_3 = arith.constant 0 : index
    %c0_4 = arith.constant 0 : index
    %3 = vector.load %arg3[%c0_3, %c0_4] : memref<32x10xf32, #tpu.memory_space<vmem>>, vector<32x10xf32>
    %c0_5 = arith.constant 0 : index
    %c0_6 = arith.constant 0 : index
    %4 = vector.load %arg4[%c0_5, %c0_6] : memref<10x128xf32, #tpu.memory_space<vmem>>, vector<10x128xf32>
    %cst = arith.constant dense<0.000000e+00> : vector<32x128xf32>
    %5 = tpu.matmul %3, %4, %cst {dimension_numbers = #tpu.dot_dimension_numbers<[1], [0], [0], [1], [0, 0, 1, 1], [], []>} : vector<32x10xf32>, vector<10x128xf32>, vector<32x128xf32> -> vector<32x128xf32>
    %6 = arith.addf %2, %5 : vector<32x128xf32>
    %cst_7 = arith.constant 0.000000e+00 : f32
    %7 = vector.broadcast %cst_7 : f32 to vector<32x128xf32>
    %8 = arith.cmpf ogt, %6, %7 : vector<32x128xf32>
    %cst_8 = arith.constant 2.000000e-01 : f32
    %9 = vector.broadcast %cst_8 : f32 to vector<32x128xf32>
    %10 = arith.mulf %9, %6 : vector<32x128xf32>
    %11 = arith.select %8, %6, %10 : vector<32x128xi1>, vector<32x128xf32>
    %c0_9 = arith.constant 0 : index
    %c0_10 = arith.constant 0 : index
    %12 = vector.load %arg5[%c0_9, %c0_10] : memref<1x128xf32, #tpu.memory_space<vmem>>, vector<1x128xf32>
    %13 = vector.broadcast %12 : vector<1x128xf32> to vector<32x128xf32>
    %14 = arith.mulf %11, %13 : vector<32x128xf32>
    %15 = vector.extract_strided_slice %14 {offsets = [0, 0], sizes = [32, 64], strides = [1, 1]} : vector<32x128xf32> to vector<32x64xf32>
    %cst_11 = arith.constant dense<0.000000e+00> : vector<32xf32>
    %16 = vector.multi_reduction <add>, %15, %cst_11 [1] : vector<32x64xf32> to vector<32xf32>
    %17 = vector.shape_cast %16 : vector<32xf32> to vector<32x1xf32>
    %18 = vector.extract_strided_slice %14 {offsets = [0, 64], sizes = [32, 64], strides = [1, 1]} : vector<32x128xf32> to vector<32x64xf32>
    %cst_12 = arith.constant dense<0.000000e+00> : vector<32xf32>
    %19 = vector.multi_reduction <add>, %18, %cst_12 [1] : vector<32x64xf32> to vector<32xf32>
    %20 = vector.shape_cast %19 : vector<32xf32> to vector<32x1xf32>
    %21 = tpu.concatenate %17, %20 in 1 : vector<32x1xf32>, vector<32x1xf32> -> vector<32x2xf32>
    %c0_13 = arith.constant 0 : index
    %c0_14 = arith.constant 0 : index
    %22 = vector.load %arg6[%c0_13, %c0_14] : memref<32x2xf32, #tpu.memory_space<vmem>>, vector<32x2xf32>
    tpu.vector_store %arg6[%c0_13, %c0_14], %21 {strides = array<i32>} : memref<32x2xf32, #tpu.memory_space<vmem>>, vector<32x2xf32>,
    return
  }
  func.func @transform_0(%arg0: i32) -> (i32, i32) {
    %c0_i32 = arith.constant 0 : i32
    %c0_i32_0 = arith.constant 0 : i32
    return %arg0, %c0_i32 : i32, i32
  }
  func.func @transform_1(%arg0: i32) -> (i32, i32) {
    %c0_i32 = arith.constant 0 : i32
    %c0_i32_0 = arith.constant 0 : i32
    return %arg0, %c0_i32 : i32, i32
  }
  func.func @transform_2(%arg0: i32) -> (i32, i32) {
    %c0_i32 = arith.constant 0 : i32
    %c0_i32_0 = arith.constant 0 : i32
    return %arg0, %c0_i32 : i32, i32
  }
  func.func @transform_3(%arg0: i32) -> (i32, i32) {
    %c0_i32 = arith.constant 0 : i32
    %c0_i32_0 = arith.constant 0 : i32
    %c0_i32_1 = arith.constant 0 : i32
    return %c0_i32, %c0_i32_0 : i32, i32
  }
  func.func @transform_4(%arg0: i32) -> (i32, i32) {
    %c0_i32 = arith.constant 0 : i32
    %c0_i32_0 = arith.constant 0 : i32
    %c0_i32_1 = arith.constant 0 : i32
    return %c0_i32, %c0_i32_0 : i32, i32
  }
  func.func @transform_5(%arg0: i32) -> (i32, i32) {
    %c0_i32 = arith.constant 0 : i32
    %c0_i32_0 = arith.constant 0 : i32
    return %arg0, %c0_i32 : i32, i32
  }
}

module attributes {stable_mosaic.version = 11 : i64} {
  func.func @global_attn_fc_kernel(%arg0: i32, %arg1: memref<16x64xf32, #tpu.memory_space<vmem>>, %arg2: memref<16x1xi32, #tpu.memory_space<vmem>>, %arg3: memref<64x1024xf32, #tpu.memory_space<vmem>>, %arg4: memref<1x1024xf32, #tpu.memory_space<vmem>>, %arg5: memref<1x512xf32, #tpu.memory_space<vmem>>, %arg6: memref<1x1xf32, #tpu.memory_space<vmem>>, %arg7: memref<512x256xf32, #tpu.memory_space<vmem>>, %arg8: memref<1x256xf32, #tpu.memory_space<vmem>>, %arg9: memref<256x1024xf32, #tpu.memory_space<vmem>>, %arg10: memref<1x1024xf32, #tpu.memory_space<vmem>>, %arg11: memref<1024x7xf32, #tpu.memory_space<vmem>>, %arg12: memref<1x7xf32, #tpu.memory_space<vmem>>, %arg13: memref<8x7xf32, #tpu.memory_space<vmem>>, %arg14: memref<1x8xf32, #tpu.memory_space<vmem>>, %arg15: memref<1x8xf32, #tpu.memory_space<vmem>>, %arg16: memref<256x8xf32, #tpu.memory_space<vmem>>) attributes {dimension_semantics = [#tpu.dimension_semantics<arbitrary>], iteration_bounds = array<i64: 1>, scalar_prefetch = 0 : i64, scratch_operands = 3 : i64, tpu.core_type = #tpu.core_type<tc>, window_params = [{transform_indices = @transform_0, window_bounds = array<i64: 16, 64>}, {transform_indices = @transform_1, window_bounds = array<i64: 16, 1>}, {pipeline_mode = #tpu.pipeline_mode<synchronous>, transform_indices = @transform_2, window_bounds = array<i64: 64, 1024>}, {pipeline_mode = #tpu.pipeline_mode<synchronous>, transform_indices = @transform_3, window_bounds = array<i64: 1, 1024>}, {pipeline_mode = #tpu.pipeline_mode<synchronous>, transform_indices = @transform_4, window_bounds = array<i64: 1, 512>}, {pipeline_mode = #tpu.pipeline_mode<synchronous>, transform_indices = @transform_5, window_bounds = array<i64: 1, 1>}, {pipeline_mode = #tpu.pipeline_mode<synchronous>, transform_indices = @transform_6, window_bounds = array<i64: 512, 256>}, {pipeline_mode = #tpu.pipeline_mode<synchronous>, transform_indices = @transform_7, window_bounds = array<i64: 1, 256>}, {pipeline_mode = #tpu.pipeline_mode<synchronous>, transform_indices = @transform_8, window_bounds = array<i64: 256, 1024>}, {pipeline_mode = #tpu.pipeline_mode<synchronous>, transform_indices = @transform_9, window_bounds = array<i64: 1, 1024>}, {pipeline_mode = #tpu.pipeline_mode<synchronous>, transform_indices = @transform_10, window_bounds = array<i64: 1024, 7>}, {pipeline_mode = #tpu.pipeline_mode<synchronous>, transform_indices = @transform_11, window_bounds = array<i64: 1, 7>}, {pipeline_mode = #tpu.pipeline_mode<synchronous>, transform_indices = @transform_12, window_bounds = array<i64: 8, 7>}]} {
    %c0_i32 = arith.constant 0 : i32
    %0 = arith.cmpi eq, %arg0, %c0_i32 : i32
    %1 = arith.extui %0 : i1 to i32
    %c0_i32_0 = arith.constant 0 : i32
    %2 = arith.cmpi ne, %1, %c0_i32_0 : i32
    scf.if %2 {
      %cst_37 = arith.constant -1.000000e+30 : f32
      %62 = vector.broadcast %cst_37 : f32 to vector<1x8xf32>
      %c0_38 = arith.constant 0 : index
      %c0_39 = arith.constant 0 : index
      %63 = vector.load %arg14[%c0_38, %c0_39] : memref<1x8xf32, #tpu.memory_space<vmem>>, vector<1x8xf32>
      tpu.vector_store %arg14[%c0_38, %c0_39], %62 {strides = array<i32>} : memref<1x8xf32, #tpu.memory_space<vmem>>, vector<1x8xf32>,
      %cst_40 = arith.constant 0.000000e+00 : f32
      %64 = vector.broadcast %cst_40 : f32 to vector<1x8xf32>
      %c0_41 = arith.constant 0 : index
      %c0_42 = arith.constant 0 : index
      %65 = vector.load %arg15[%c0_41, %c0_42] : memref<1x8xf32, #tpu.memory_space<vmem>>, vector<1x8xf32>
      tpu.vector_store %arg15[%c0_41, %c0_42], %64 {strides = array<i32>} : memref<1x8xf32, #tpu.memory_space<vmem>>, vector<1x8xf32>,
      %cst_43 = arith.constant 0.000000e+00 : f32
      %66 = vector.broadcast %cst_43 : f32 to vector<256x8xf32>
      %c0_44 = arith.constant 0 : index
      %c0_45 = arith.constant 0 : index
      %67 = vector.load %arg16[%c0_44, %c0_45] : memref<256x8xf32, #tpu.memory_space<vmem>>, vector<256x8xf32>
      tpu.vector_store %arg16[%c0_44, %c0_45], %66 {strides = array<i32>} : memref<256x8xf32, #tpu.memory_space<vmem>>, vector<256x8xf32>,
    } else {
    }
    %c0 = arith.constant 0 : index
    %c0_1 = arith.constant 0 : index
    %3 = vector.load %arg1[%c0, %c0_1] : memref<16x64xf32, #tpu.memory_space<vmem>>, vector<16x64xf32>
    %c0_2 = arith.constant 0 : index
    %c0_3 = arith.constant 0 : index
    %4 = vector.load %arg3[%c0_2, %c0_3] : memref<64x1024xf32, #tpu.memory_space<vmem>>, vector<64x1024xf32>
    %cst = arith.constant dense<0.000000e+00> : vector<16x1024xf32>
    %5 = tpu.matmul %3, %4, %cst {dimension_numbers = #tpu.dot_dimension_numbers<[1], [0], [0], [1], [0, 0, 1, 1], [], []>} : vector<16x64xf32>, vector<64x1024xf32>, vector<16x1024xf32> -> vector<16x1024xf32>
    %c0_4 = arith.constant 0 : index
    %c0_5 = arith.constant 0 : index
    %6 = vector.load %arg4[%c0_4, %c0_5] : memref<1x1024xf32, #tpu.memory_space<vmem>>, vector<1x1024xf32>
    %7 = vector.broadcast %6 : vector<1x1024xf32> to vector<16x1024xf32>
    %8 = arith.addf %5, %7 : vector<16x1024xf32>
    %cst_6 = arith.constant 0.000000e+00 : f32
    %9 = vector.broadcast %cst_6 : f32 to vector<16x1024xf32>
    %10 = arith.maximumf %8, %9 : vector<16x1024xf32>
    %11 = vector.extract_strided_slice %10 {offsets = [0, 0], sizes = [16, 512], strides = [1, 1]} : vector<16x1024xf32> to vector<16x512xf32>
    %c0_7 = arith.constant 0 : index
    %c0_8 = arith.constant 0 : index
    %12 = vector.load %arg5[%c0_7, %c0_8] : memref<1x512xf32, #tpu.memory_space<vmem>>, vector<1x512xf32>
    %13 = vector.broadcast %12 : vector<1x512xf32> to vector<16x512xf32>
    %14 = arith.mulf %11, %13 : vector<16x512xf32>
    %cst_9 = arith.constant dense<0.000000e+00> : vector<16xf32>
    %15 = vector.multi_reduction <add>, %14, %cst_9 [1] : vector<16x512xf32> to vector<16xf32>
    %16 = vector.shape_cast %15 : vector<16xf32> to vector<16x1xf32>
    %c0_10 = arith.constant 0 : index
    %c0_11 = arith.constant 0 : index
    %17 = vector.load %arg6[%c0_10, %c0_11] : memref<1x1xf32, #tpu.memory_space<vmem>>, vector<1x1xf32>
    %18 = vector.broadcast %17 : vector<1x1xf32> to vector<16x1xf32>
    %19 = arith.addf %16, %18 : vector<16x1xf32>
    %20 = vector.extract_strided_slice %10 {offsets = [0, 512], sizes = [16, 512], strides = [1, 1]} : vector<16x1024xf32> to vector<16x512xf32>
    %c0_12 = arith.constant 0 : index
    %c0_13 = arith.constant 0 : index
    %21 = vector.load %arg7[%c0_12, %c0_13] : memref<512x256xf32, #tpu.memory_space<vmem>>, vector<512x256xf32>
    %cst_14 = arith.constant dense<0.000000e+00> : vector<16x256xf32>
    %22 = tpu.matmul %20, %21, %cst_14 {dimension_numbers = #tpu.dot_dimension_numbers<[1], [0], [0], [1], [0, 0, 1, 1], [], []>} : vector<16x512xf32>, vector<512x256xf32>, vector<16x256xf32> -> vector<16x256xf32>
    %c0_15 = arith.constant 0 : index
    %c0_16 = arith.constant 0 : index
    %23 = vector.load %arg8[%c0_15, %c0_16] : memref<1x256xf32, #tpu.memory_space<vmem>>, vector<1x256xf32>
    %24 = vector.broadcast %23 : vector<1x256xf32> to vector<16x256xf32>
    %25 = arith.addf %22, %24 : vector<16x256xf32>
    %26 = tpu.iota {dimensions = array<i32: 1>} : vector<16x8xi32>
    %c0_17 = arith.constant 0 : index
    %c0_18 = arith.constant 0 : index
    %27 = vector.load %arg2[%c0_17, %c0_18] : memref<16x1xi32, #tpu.memory_space<vmem>>, vector<16x1xi32>
    %28 = vector.broadcast %27 : vector<16x1xi32> to vector<16x8xi32>
    %29 = arith.cmpi eq, %28, %26 : vector<16x8xi32>
    %30 = arith.extui %29 : vector<16x8xi1> to vector<16x8xi32>
    %31 = arith.sitofp %30 : vector<16x8xi32> to vector<16x8xf32>
    %cst_19 = arith.constant -1.000000e+30 : f32
    %32 = vector.shape_cast %19 : vector<16x1xf32> to vector<16x1xf32>
    %33 = vector.broadcast %32 : vector<16x1xf32> to vector<16x8xf32>
    %34 = vector.broadcast %cst_19 : f32 to vector<16x8xf32>
    %35 = arith.select %29, %33, %34 : vector<16x8xi1>, vector<16x8xf32>
    %c0_20 = arith.constant 0 : index
    %c0_21 = arith.constant 0 : index
    %36 = vector.load %arg14[%c0_20, %c0_21] : memref<1x8xf32, #tpu.memory_space<vmem>>, vector<1x8xf32>
    %cst_22 = arith.constant dense<0xFF800000> : vector<8xf32>
    %37 = vector.multi_reduction <maximumf>, %35, %cst_22 [0] : vector<16x8xf32> to vector<8xf32>
    %38 = vector.shape_cast %37 : vector<8xf32> to vector<1x8xf32>
    %39 = arith.maximumf %36, %38 : vector<1x8xf32>
    %40 = arith.subf %36, %39 : vector<1x8xf32>
    %41 = math.exp %40 : vector<1x8xf32>
    %42 = vector.broadcast %39 : vector<1x8xf32> to vector<16x8xf32>
    %43 = arith.subf %35, %42 : vector<16x8xf32>
    %44 = math.exp %43 : vector<16x8xf32>
    %45 = arith.mulf %44, %31 : vector<16x8xf32>
    %c0_23 = arith.constant 0 : index
    %c0_24 = arith.constant 0 : index
    %46 = vector.load %arg15[%c0_23, %c0_24] : memref<1x8xf32, #tpu.memory_space<vmem>>, vector<1x8xf32>
    %47 = arith.mulf %41, %46 : vector<1x8xf32>
    %cst_25 = arith.constant dense<0.000000e+00> : vector<8xf32>
    %48 = vector.multi_reduction <add>, %45, %cst_25 [0] : vector<16x8xf32> to vector<8xf32>
    %49 = vector.shape_cast %48 : vector<8xf32> to vector<1x8xf32>
    %50 = arith.addf %47, %49 : vector<1x8xf32>
    %c0_26 = arith.constant 0 : index
    %c0_27 = arith.constant 0 : index
    %51 = vector.load %arg15[%c0_26, %c0_27] : memref<1x8xf32, #tpu.memory_space<vmem>>, vector<1x8xf32>
    tpu.vector_store %arg15[%c0_26, %c0_27], %50 {strides = array<i32>} : memref<1x8xf32, #tpu.memory_space<vmem>>, vector<1x8xf32>,
    %c0_28 = arith.constant 0 : index
    %c0_29 = arith.constant 0 : index
    %52 = vector.load %arg16[%c0_28, %c0_29] : memref<256x8xf32, #tpu.memory_space<vmem>>, vector<256x8xf32>
    %53 = vector.broadcast %41 : vector<1x8xf32> to vector<256x8xf32>
    %54 = arith.mulf %53, %52 : vector<256x8xf32>
    %cst_30 = arith.constant dense<0.000000e+00> : vector<256x8xf32>
    %55 = tpu.matmul %25, %45, %cst_30 {dimension_numbers = #tpu.dot_dimension_numbers<[0], [0], [1], [1], [0, 1, 1, 1], [], []>} : vector<16x256xf32>, vector<16x8xf32>, vector<256x8xf32> -> vector<256x8xf32>
    %56 = arith.addf %54, %55 : vector<256x8xf32>
    %c0_31 = arith.constant 0 : index
    %c0_32 = arith.constant 0 : index
    %57 = vector.load %arg16[%c0_31, %c0_32] : memref<256x8xf32, #tpu.memory_space<vmem>>, vector<256x8xf32>
    tpu.vector_store %arg16[%c0_31, %c0_32], %56 {strides = array<i32>} : memref<256x8xf32, #tpu.memory_space<vmem>>, vector<256x8xf32>,
    %c0_33 = arith.constant 0 : index
    %c0_34 = arith.constant 0 : index
    %58 = vector.load %arg14[%c0_33, %c0_34] : memref<1x8xf32, #tpu.memory_space<vmem>>, vector<1x8xf32>
    tpu.vector_store %arg14[%c0_33, %c0_34], %39 {strides = array<i32>} : memref<1x8xf32, #tpu.memory_space<vmem>>, vector<1x8xf32>,
    %c0_i32_35 = arith.constant 0 : i32
    %59 = arith.cmpi eq, %arg0, %c0_i32_35 : i32
    %60 = arith.extui %59 : i1 to i32
    %c0_i32_36 = arith.constant 0 : i32
    %61 = arith.cmpi ne, %60, %c0_i32_36 : i32
    scf.if %61 {
      %c0_37 = arith.constant 0 : index
      %c0_38 = arith.constant 0 : index
      %62 = vector.load %arg15[%c0_37, %c0_38] : memref<1x8xf32, #tpu.memory_space<vmem>>, vector<1x8xf32>
      %c0_39 = arith.constant 0 : index
      %c0_40 = arith.constant 0 : index
      %63 = vector.load %arg16[%c0_39, %c0_40] : memref<256x8xf32, #tpu.memory_space<vmem>>, vector<256x8xf32>
      %cst_41 = arith.constant 0.000000e+00 : f32
      %64 = vector.broadcast %cst_41 : f32 to vector<1x8xf32>
      %65 = arith.cmpf ogt, %62, %64 : vector<1x8xf32>
      %cst_42 = arith.constant 1.000000e+00 : f32
      %66 = vector.broadcast %cst_42 : f32 to vector<1x8xf32>
      %67 = arith.select %65, %62, %66 : vector<1x8xi1>, vector<1x8xf32>
      %68 = tpu.reciprocal %67 {approx = true} : vector<1x8xf32> -> vector<1x8xf32>
      %69 = vector.broadcast %68 : vector<1x8xf32> to vector<256x8xf32>
      %70 = arith.mulf %63, %69 : vector<256x8xf32>
      %cst_43 = arith.constant 0.000000e+00 : f32
      %71 = vector.broadcast %cst_43 : f32 to vector<256x8xf32>
      %72 = arith.maximumf %70, %71 : vector<256x8xf32>
      %c0_44 = arith.constant 0 : index
      %c0_45 = arith.constant 0 : index
      %73 = vector.load %arg9[%c0_44, %c0_45] : memref<256x1024xf32, #tpu.memory_space<vmem>>, vector<256x1024xf32>
      %cst_46 = arith.constant dense<0.000000e+00> : vector<8x1024xf32>
      %74 = tpu.matmul %72, %73, %cst_46 {dimension_numbers = #tpu.dot_dimension_numbers<[0], [0], [1], [1], [0, 1, 1, 1], [], []>} : vector<256x8xf32>, vector<256x1024xf32>, vector<8x1024xf32> -> vector<8x1024xf32>
      %c0_47 = arith.constant 0 : index
      %c0_48 = arith.constant 0 : index
      %75 = vector.load %arg10[%c0_47, %c0_48] : memref<1x1024xf32, #tpu.memory_space<vmem>>, vector<1x1024xf32>
      %76 = vector.broadcast %75 : vector<1x1024xf32> to vector<8x1024xf32>
      %77 = arith.addf %74, %76 : vector<8x1024xf32>
      %78 = arith.negf %77 : vector<8x1024xf32>
      %79 = math.exp %78 : vector<8x1024xf32>
      %cst_49 = arith.constant 1.000000e+00 : f32
      %80 = vector.broadcast %cst_49 : f32 to vector<8x1024xf32>
      %81 = arith.addf %80, %79 : vector<8x1024xf32>
      %82 = arith.divf %80, %81 : vector<8x1024xf32>
      %c0_50 = arith.constant 0 : index
      %c0_51 = arith.constant 0 : index
      %83 = vector.load %arg11[%c0_50, %c0_51] : memref<1024x7xf32, #tpu.memory_space<vmem>>, vector<1024x7xf32>
      %cst_52 = arith.constant dense<0.000000e+00> : vector<8x7xf32>
      %84 = tpu.matmul %82, %83, %cst_52 {dimension_numbers = #tpu.dot_dimension_numbers<[1], [0], [0], [1], [0, 0, 1, 1], [], []>} : vector<8x1024xf32>, vector<1024x7xf32>, vector<8x7xf32> -> vector<8x7xf32>
      %c0_53 = arith.constant 0 : index
      %c0_54 = arith.constant 0 : index
      %85 = vector.load %arg12[%c0_53, %c0_54] : memref<1x7xf32, #tpu.memory_space<vmem>>, vector<1x7xf32>
      %86 = vector.broadcast %85 : vector<1x7xf32> to vector<8x7xf32>
      %87 = arith.addf %84, %86 : vector<8x7xf32>
      %c0_55 = arith.constant 0 : index
      %c0_56 = arith.constant 0 : index
      %88 = vector.load %arg13[%c0_55, %c0_56] : memref<8x7xf32, #tpu.memory_space<vmem>>, vector<8x7xf32>
      tpu.vector_store %arg13[%c0_55, %c0_56], %87 {strides = array<i32>} : memref<8x7xf32, #tpu.memory_space<vmem>>, vector<8x7xf32>,
    } else {
    }
    return
  }
  func.func @transform_0(%arg0: i32) -> (i32, i32) {
    %c0_i32 = arith.constant 0 : i32
    %c0_i32_0 = arith.constant 0 : i32
    return %arg0, %c0_i32 : i32, i32
  }
  func.func @transform_1(%arg0: i32) -> (i32, i32) {
    %c0_i32 = arith.constant 0 : i32
    %c0_i32_0 = arith.constant 0 : i32
    return %arg0, %c0_i32 : i32, i32
  }
  func.func @transform_2(%arg0: i32) -> (i32, i32) {
    %c0_i32 = arith.constant 0 : i32
    %c0_i32_0 = arith.constant 0 : i32
    %c0_i32_1 = arith.constant 0 : i32
    return %c0_i32, %c0_i32_0 : i32, i32
  }
  func.func @transform_3(%arg0: i32) -> (i32, i32) {
    %c0_i32 = arith.constant 0 : i32
    %c0_i32_0 = arith.constant 0 : i32
    %c0_i32_1 = arith.constant 0 : i32
    return %c0_i32, %c0_i32_0 : i32, i32
  }
  func.func @transform_4(%arg0: i32) -> (i32, i32) {
    %c0_i32 = arith.constant 0 : i32
    %c0_i32_0 = arith.constant 0 : i32
    %c0_i32_1 = arith.constant 0 : i32
    return %c0_i32, %c0_i32_0 : i32, i32
  }
  func.func @transform_5(%arg0: i32) -> (i32, i32) {
    %c0_i32 = arith.constant 0 : i32
    %c0_i32_0 = arith.constant 0 : i32
    %c0_i32_1 = arith.constant 0 : i32
    return %c0_i32, %c0_i32_0 : i32, i32
  }
  func.func @transform_6(%arg0: i32) -> (i32, i32) {
    %c0_i32 = arith.constant 0 : i32
    %c0_i32_0 = arith.constant 0 : i32
    %c0_i32_1 = arith.constant 0 : i32
    return %c0_i32, %c0_i32_0 : i32, i32
  }
  func.func @transform_7(%arg0: i32) -> (i32, i32) {
    %c0_i32 = arith.constant 0 : i32
    %c0_i32_0 = arith.constant 0 : i32
    %c0_i32_1 = arith.constant 0 : i32
    return %c0_i32, %c0_i32_0 : i32, i32
  }
  func.func @transform_8(%arg0: i32) -> (i32, i32) {
    %c0_i32 = arith.constant 0 : i32
    %c0_i32_0 = arith.constant 0 : i32
    %c0_i32_1 = arith.constant 0 : i32
    return %c0_i32, %c0_i32_0 : i32, i32
  }
  func.func @transform_9(%arg0: i32) -> (i32, i32) {
    %c0_i32 = arith.constant 0 : i32
    %c0_i32_0 = arith.constant 0 : i32
    %c0_i32_1 = arith.constant 0 : i32
    return %c0_i32, %c0_i32_0 : i32, i32
  }
  func.func @transform_10(%arg0: i32) -> (i32, i32) {
    %c0_i32 = arith.constant 0 : i32
    %c0_i32_0 = arith.constant 0 : i32
    %c0_i32_1 = arith.constant 0 : i32
    return %c0_i32, %c0_i32_0 : i32, i32
  }
  func.func @transform_11(%arg0: i32) -> (i32, i32) {
    %c0_i32 = arith.constant 0 : i32
    %c0_i32_0 = arith.constant 0 : i32
    %c0_i32_1 = arith.constant 0 : i32
    return %c0_i32, %c0_i32_0 : i32, i32
  }
  func.func @transform_12(%arg0: i32) -> (i32, i32) {
    %c0_i32 = arith.constant 0 : i32
    %c0_i32_0 = arith.constant 0 : i32
    %c0_i32_1 = arith.constant 0 : i32
    return %c0_i32, %c0_i32_0 : i32, i32
  }
}

</mosaic_0001>

<bundles_post_ra>
// kernel: gatf_forward.10
= control target key start
LH: loop header
LB: loop body
LE: loop exit
PB: predicated region body
PF: predicated region fallthrough
CT: control target
= control target key end

     0   :  { %vm40_vm0 = vcmask 1046528   ;;  %vm33_vm1 = vcmask 646144   ;;  %s231_s1 = inlined_call_operand.vmem [shape: f32[79,128], index: 1, kind: input, shape index: {}]   ;;  %s232_s0 = inlined_call_operand.vmem [shape: f32[16,79], index: 0, kind: input, shape index: {}]   ;;  %s233_s2 = inlined_call_operand.vmem [shape: f32[1,128], index: 2, kind: input, shape index: {}]   ;;  %s234_s3 = inlined_call_operand.vmem [shape: f32[16,128], index: 3, kind: output, shape index: {}]  }
   0x1   :  { %v25_v0 = vld [vmem:[%s231_s1 + $0x48] sm:$0x7f]  ;;  %v24_v1 = vld [vmem:[%s231_s1 + $0x40] sm:$0xff]  ;;  %v23_v2 = vld [vmem:[%s231_s1 + $0x38] sm:$0xff] }
   0x2   :  { %141 = vmatprep.subr.msk.mxu0 %vm40_vm0, %v25_v0  ;;  %v14_v3 = vld [vmem:[%s232_s0] sm:$0xff]  ;;  %v22_v4 = vld [vmem:[%s231_s1 + $0x30] sm:$0xff]  ;;  %v21_v5 = vld [vmem:[%s231_s1 + $0x28] sm:$0xff] }
   0x3   :  { %142 = vmatpush3.msk.msra.mxu0 %vm40_vm0, %v25_v0  ;;  %161 = vmatprep.mubr.msk.f32.mxu0 %vm33_vm1, %v14_v3  ;;  %v20_v6 = vld [vmem:[%s231_s1 + $0x20] sm:$0xff]  ;;  %v19_v7 = vld [vmem:[%s231_s1 + $0x18] sm:$0xff]  ;;  %v18_v8 = vld [vmem:[%s231_s1 + $0x10] sm:$0xff] }
   0x4   :  { %143 = vmatprep.subr.mxu0 %v24_v1  ;;  %v17_v9 = vld [vmem:[%s231_s1 + $0x8] sm:$0xff]  ;;  %v16_v10 = vld [vmem:[%s231_s1] sm:$0xff] }
   0x5   :  { %144 = vmatpush3.msra.mxu0 %v24_v1  ;;  %v15_v11 = vld [vmem:[%s232_s0 + $0x8] sm:$0xff]  ;;  %v125_v12 = vld [vmem:[%s233_s2] ss:$0 sm:$0xff] }
   0x6   :  { %145 = vmatprep.subr.mxu0 %v23_v2 }
   0x7   :  { %146 = vmatpush3.msra.mxu0 %v23_v2 }
   0x8   :  { %147 = vmatprep.subr.mxu0 %v22_v4 }
   0x9   :  { %148 = vmatpush3.msra.mxu0 %v22_v4 }
   0xa   :  { %149 = vmatprep.subr.mxu0 %v21_v5 }
   0xb   :  { %150 = vmatpush3.msra.mxu0 %v21_v5 }
   0xc   :  { %151 = vmatprep.subr.mxu0 %v20_v6 }
   0xd   :  { %152 = vmatpush3.msra.mxu0 %v20_v6 }
   0xe   :  { %153 = vmatprep.subr.mxu0 %v19_v7 }
   0xf   :  { %154 = vmatpush3.msra.mxu0 %v19_v7 }
  0x10   :  { %155 = vmatprep.subr.mxu0 %v18_v8 }
  0x11   :  { %156 = vmatpush3.msra.mxu0 %v18_v8 }
  0x12   :  { %157 = vmatprep.subr.mxu0 %v17_v9 }
  0x13   :  { %158 = vmatpush3.msra.mxu0 %v17_v9 }
  0x14   :  { %159 = vmatprep.subr.mxu0 %v16_v10 }
  0x15   :  { %160 = vmatpush3.msra.mxu0 %v16_v10 }
  0x16   :  { %162 = vmatmul.mubr.msk.f32.vlgmr.msra.gmra.mxu0 %vm33_vm1, %v15_v11 }
  0xd6   :  { %v163_v13 = vpop.f32.mrf.mxu0 }
  0xd7   :  { %v116_v14 = vadd.f32 %v163_v13, %v125_v12 }
  0xd8   :  { %v110_v15 = vpop.f32.mrf.mxu0 }
  0xd9   :  { %120 = vst [vmem:[%s234_s3 + $0x8] sm:$0xff] %v116_v14  ;;  %v111_v16 = vadd.f32 %v125_v12, %v110_v15 }
  0xdb   :  { %119 = vst [vmem:[%s234_s3] sm:$0xff] %v111_v16 }

// kernel: gatf_forward.13
= control target key start
LH: loop header
LB: loop body
LE: loop exit
PB: predicated region body
PF: predicated region fallthrough
CT: control target
= control target key end

     0   :  { %v161_v3 = vmov 0.0   ;;  %vm50_vm2 = vcmask 523264   ;;  %v40_v23 = vlaneseq  ;;  %s251_s1 = inlined_call_operand.vmem [shape: f32[64,256], index: 1, kind: input, shape index: {}]   ;;  %s252_s0 = inlined_call_operand.vmem [shape: f32[16,64], index: 0, kind: input, shape index: {}]   ;;  %s253_s2 = inlined_call_operand.vmem [shape: f32[1,256], index: 2, kind: input, shape index: {}]   ;;  %s254_s3 = inlined_call_operand.vmem [shape: f32[16,256], index: 3, kind: output, shape index: {}]  }
   0x1   :  { %v37_v0 = vld [vmem:[%s251_s1 + $0x78] sm:$0xff]  ;;  %v36_v1 = vld [vmem:[%s251_s1 + $0x70] sm:$0xff]  ;;  %v35_v2 = vld [vmem:[%s251_s1 + $0x68] sm:$0xff]  ;;  %121 = vmatprep.mubr.f32.mxu0 %v161_v3  ;;  %127 = vmatprep.mubr.f32.mxu1 %v161_v3 }
   0x2   :  { %73 = vmatprep.subr.mxu0 %v37_v0  ;;  %144 = vmatprep.subr.mxu1 %v37_v0  ;;  %v34_v4 = vld [vmem:[%s251_s1 + $0x60] sm:$0xff]  ;;  %v33_v5 = vld [vmem:[%s251_s1 + $0x58] sm:$0xff]  ;;  %v32_v6 = vld [vmem:[%s251_s1 + $0x50] sm:$0xff]  ;;  %v41_v24 = vshrl.u32 %v40_v23, 7 }
   0x3   :  { %74 = vmatpush1.msra.mxu0 %v36_v1  ;;  %152 = vmatpush1.msra.mxu1 %v36_v1  ;;  %v31_v7 = vld [vmem:[%s251_s1 + $0x48] sm:$0xff]  ;;  %v30_v8 = vld [vmem:[%s251_s1 + $0x40] sm:$0xff]  ;;  %v29_v9 = vld [vmem:[%s251_s1 + $0x38] sm:$0xff] }
   0x4   :  { %75 = vmatprep.subr.mxu0 %v35_v2  ;;  %145 = vmatprep.subr.mxu1 %v35_v2  ;;  %v28_v10 = vld [vmem:[%s251_s1 + $0x30] sm:$0xff]  ;;  %v14_v11 = vld [vmem:[%s252_s0] sm:$0xff]  ;;  %v15_v12 = vld [vmem:[%s252_s0 + $0x8] sm:$0xff]  ;;  %v42_v25 = vsub.s32 0, %v41_v24  ;;  %v46_v27 = vsub.s32 1, %v41_v24 }
   0x5   :  { %76 = vmatpush1.msra.mxu0 %v34_v4  ;;  %153 = vmatpush1.msra.mxu1 %v34_v4  ;;  %v27_v13 = vld [vmem:[%s251_s1 + $0x28] sm:$0xff]  ;;  %v26_v14 = vld [vmem:[%s251_s1 + $0x20] sm:$0xff]  ;;  %v25_v15 = vld [vmem:[%s251_s1 + $0x18] sm:$0xff]  ;;  %v18_v16 = vmul.f32 0.01, %v14_v11  ;;  %vm16_vm0 = vcmp.gt.f32.partialorder %v14_v11, 0.0 }
   0x6   :  { %77 = vmatprep.subr.mxu0 %v33_v5  ;;  %146 = vmatprep.subr.mxu1 %v33_v5  ;;  %v19_v17 = vmul.f32 0.01, %v15_v12  ;;  %v24_v18 = vld [vmem:[%s251_s1 + $0x10] sm:$0xff]  ;;  %vm17_vm1 = vcmp.gt.f32.partialorder %v15_v12, 0.0  ;;  %v23_v19 = vld [vmem:[%s251_s1 + $0x8] sm:$0xff]  ;;  %v22_v20 = vld [vmem:[%s251_s1] sm:$0xff] }
   0x7   :  { %78 = vmatpush1.msra.mxu0 %v32_v6  ;;  %154 = vmatpush1.msra.mxu1 %v32_v6  ;;  %v20_v21 = vsel %vm16_vm0, %v14_v11, %v18_v16  ;;  %v38_v26 = vld [vmem:[%s253_s2] sm:$0x3] }
   0x8   :  { %79 = vmatprep.subr.mxu0 %v31_v7  ;;  %147 = vmatprep.subr.mxu1 %v31_v7  ;;  %v21_v22 = vsel %vm17_vm1, %v15_v12, %v19_v17  ;;  %v43_v28 = vrot.slane %v38_v26, %v42_v25  ;;  %v47_v29 = vrot.slane %v38_v26, %v46_v27 }
   0x9   :  { %80 = vmatpush1.msra.mxu0 %v30_v8  ;;  %155 = vmatpush1.msra.mxu1 %v30_v8 }
   0xa   :  { %81 = vmatprep.subr.mxu0 %v29_v9  ;;  %148 = vmatprep.subr.mxu1 %v29_v9 }
   0xb   :  { %82 = vmatpush1.msra.mxu0 %v28_v10  ;;  %156 = vmatpush1.msra.mxu1 %v28_v10 }
   0xc   :  { %83 = vmatprep.subr.mxu0 %v27_v13  ;;  %149 = vmatprep.subr.mxu1 %v27_v13 }
   0xd   :  { %84 = vmatpush1.msra.mxu0 %v26_v14  ;;  %157 = vmatpush1.msra.mxu1 %v26_v14 }
   0xe   :  { %85 = vmatprep.subr.mxu0 %v25_v15  ;;  %150 = vmatprep.subr.mxu1 %v25_v15 }
   0xf   :  { %86 = vmatpush1.msra.mxu0 %v24_v18  ;;  %158 = vmatpush1.msra.mxu1 %v24_v18 }
  0x10   :  { %87 = vmatprep.subr.mxu0 %v23_v19  ;;  %151 = vmatprep.subr.mxu1 %v23_v19 }
  0x11   :  { %88 = vmatpush1.msra.mxu0 %v22_v20  ;;  %159 = vmatpush1.msra.mxu1 %v22_v20 }
  0x12   :  { %142 = vmatmul.mubr.msk.f32.vlgmr.msra.gmra.mxu0 %vm50_vm2, %v20_v21  ;;  %143 = vmatmul.mubr.msk.f32.vlgmr.msra.gmra.mxu1 %vm50_vm2, %v21_v22 }
  0xd2   :  { %v123_v30 = vpop.f32.mrf.mxu0  ;;  %v129_v31 = vpop.f32.mrf.mxu1 }
  0xd3   :  { %v124_v32 = vadd.f32 %v123_v30, %v43_v28  ;;  %v130_v33 = vadd.f32 %v129_v31, %v43_v28 }
  0xd4   :  { %v125_v34 = vpop.f32.mrf.mxu0  ;;  %v131_v35 = vpop.f32.mrf.mxu1 }
  0xd5   :  { %134 = vst [vmem:[%s254_s3] sm:$0xff] %v124_v32  ;;  %136 = vst [vmem:[%s254_s3 + $0x10] sm:$0xff] %v130_v33  ;;  %v126_v36 = vadd.f32 %v125_v34, %v47_v29  ;;  %v132_v37 = vadd.f32 %v131_v35, %v47_v29 }
  0xd7   :  { %135 = vst [vmem:[%s254_s3 + $0x8] sm:$0xff] %v126_v36  ;;  %137 = vst [vmem:[%s254_s3 + $0x18] sm:$0xff] %v132_v37 }

// kernel: gatf_forward.11
= control target key start
LH: loop header
LB: loop body
LE: loop exit
PB: predicated region body
PF: predicated region fallthrough
CT: control target
= control target key end

     0   :  { %vm51_vm0 = vcmask 1041408   ;;  %vm38_vm1 = vcmask 80896   ;;  %s249_s19 = smov 96   ;;  %vm167_vm6 = vcmask 261120   ;;  %vm208_vm7 = vcmask 7168   ;;  %s345_s3 = inlined_call_operand.vmem [shape: f32[10,64], index: 3, kind: input, shape index: {}]   ;;  %s346_s2 = inlined_call_operand.vmem [shape: f32[32,10], index: 2, kind: input, shape index: {}]   ;;  %s347_s0 = inlined_call_operand.vmem [shape: f32[32,64], index: 0, kind: input, shape index: {}]   ;;  %s348_s1 = inlined_call_operand.vmem [shape: f32[32,64], index: 1, kind: input, shape index: {}]   ;;  %s349_s4 = inlined_call_operand.vmem [shape: f32[1,64], index: 4, kind: input, shape index: {}]   ;;  %s350_s5 = inlined_call_operand.vmem [shape: f32[32,2], index: 5, kind: output, shape index: {}]  }
   0x1   :  { %v37_v0 = vld [vmem:[%s345_s3 + $0x8] sm:$0x3]  ;;  %v36_v1 = vld [vmem:[%s345_s3] sm:$0xff]  ;;  %v34_v3 = vld [vmem:[%s346_s2 + $0x10] sm:$0xff]  ;;  %vm213_vm8 = vcmask 15360  }
   0x2   :  { %234 = vmatprep.subr.msk.mxu0 %vm51_vm0, %v37_v0  ;;  %244 = vmatprep.subr.msk.mxu1 %vm51_vm0, %v37_v0  ;;  %v32_v2 = vld [vmem:[%s346_s2] sm:$0xff]  ;;  %v33_v4 = vld [vmem:[%s346_s2 + $0x8] sm:$0xff]  ;;  %v35_v5 = vld [vmem:[%s346_s2 + $0x18] sm:$0xff] }
   0x3   :  { %235 = vmatpush3.msk.msra.mxu0 %vm51_vm0, %v37_v0  ;;  %246 = vmatpush3.msk.msra.mxu1 %vm51_vm0, %v37_v0  ;;  %v21_v6 = vld [vmem:[%s347_s0 + $0x8] sm:$0xff]  ;;  %v23_v8 = vld [vmem:[%s347_s0 + $0x18] sm:$0xff]  ;;  %v20_v10 = vld [vmem:[%s347_s0] sm:$0xff] }
   0x4   :  { %236 = vmatprep.subr.mxu0 %v36_v1  ;;  %245 = vmatprep.subr.mxu1 %v36_v1  ;;  %v25_v7 = vld [vmem:[%s348_s1 + $0x8] sm:$0xff]  ;;  %v27_v9 = vld [vmem:[%s348_s1 + $0x18] sm:$0xff]  ;;  %v24_v13 = vld [vmem:[%s348_s1] sm:$0xff] }
   0x5   :  { %237 = vmatpush3.msra.mxu0 %v36_v1  ;;  %247 = vmatpush3.msra.mxu1 %v36_v1  ;;  %v29_v11 = vadd.f32 %v25_v7, %v21_v6  ;;  %v31_v12 = vadd.f32 %v27_v9, %v23_v8  ;;  %v22_v14 = vld [vmem:[%s347_s0 + $0x10] sm:$0xff]  ;;  %v28_v18 = vadd.f32 %v24_v13, %v20_v10  ;;  %v227_v31 = vld [vmem:[%s349_s4] ss:$0 sm:$0xff] }
   0x6   :  { %238 = vmatprep.mubr.msk.f32.mxu0 %vm38_vm1, %v32_v2  ;;  %241 = vmatprep.mubr.msk.f32.mxu1 %vm38_vm1, %v34_v3  ;;  %v26_v15 = vld [vmem:[%s348_s1 + $0x10] sm:$0xff] }
   0x7   :  { %239 = vmatmul.mubr.msk.f32.vlgmr.msra.gmra.mxu0 %vm38_vm1, %v33_v4  ;;  %242 = vmatmul.mubr.msk.f32.vlgmr.msra.gmra.mxu1 %vm38_vm1, %v35_v5  ;;  %v30_v19 = vadd.f32 %v26_v15, %v22_v14 }
  0xc7   :  { %v240_v16 = vpop.f32.mrf.mxu0  ;;  %v243_v17 = vpop.f32.mrf.mxu1 }
  0xc8   :  { %v141_v20 = vadd.f32 %v240_v16, %v29_v11  ;;  %v143_v21 = vadd.f32 %v243_v17, %v31_v12 }
  0xc9   :  { %v121_v22 = vpop.f32.mrf.mxu0  ;;  %v131_v23 = vpop.f32.mrf.mxu1 }
  0xca   :  { %v140_v24 = vadd.f32 %v121_v22, %v28_v18  ;;  %v142_v25 = vadd.f32 %v131_v23, %v30_v19  ;;  %v149_v26 = vmul.f32 0.2, %v141_v20  ;;  %v151_v27 = vmul.f32 0.2, %v143_v21 }
  0xcb   :  { %vm145_vm4 = vcmp.gt.f32.partialorder %v141_v20, 0.0  ;;  %vm147_vm5 = vcmp.gt.f32.partialorder %v143_v21, 0.0 }
  0xcc   :  { %v148_v28 = vmul.f32 0.2, %v140_v24  ;;  %v150_v29 = vmul.f32 0.2, %v142_v25  ;;  %vm146_vm2 = vcmp.gt.f32.partialorder %v142_v25, 0.0  ;;  %vm144_vm3 = vcmp.gt.f32.partialorder %v140_v24, 0.0 }
  0xcd   :  { %v155_v35 = vsel %vm147_vm5, %v143_v21, %v151_v27  ;;  %v153_v36 = vsel %vm145_vm4, %v141_v20, %v149_v26 }
  0xce   :  { %v154_v30 = vsel %vm146_vm2, %v142_v25, %v150_v29  ;;  %v152_v32 = vsel %vm144_vm3, %v140_v24, %v148_v28  ;;  %v166_v37 = vmul.f32 %v227_v31, %v155_v35  ;;  %v164_v38 = vmul.f32 %v227_v31, %v153_v36 }
  0xcf   :  { %v165_v33 = vmul.f32 %v227_v31, %v154_v30  ;;  %v163_v34 = vmul.f32 %v227_v31, %v152_v32 }
  0xd0   :  { %v177_v39 = vsel %vm167_vm6, %v166_v37, 0.0  ;;  %v171_v41 = vsel %vm167_vm6, %v164_v38, 0.0 }
  0xd1   :  { %188 = vrot.lane.b32.xlu1 %v165_v33, %s249_s19  ;;  %184 = vrot.lane.b32.xlu0 %v163_v34, %s249_s19  ;;  %v168_v40 = vsel %vm167_vm6, %v163_v34, 0.0  ;;  %v174_v42 = vsel %vm167_vm6, %v165_v33, 0.0 }
  0xd5   :  { %190 = vrot.lane.b32.xlu1 %v166_v37, %s249_s19  ;;  %186 = vrot.lane.b32.xlu0 %v164_v38, %s249_s19 }
  0xf4   :  { %178 = vadd.xlane.f32.xlu0 %v177_v39 }
  0xf8   :  { %169 = vadd.xlane.f32.xlu0 %v168_v40 }
  0xf9   :  { %172 = vadd.xlane.f32.xlu1 %v171_v41 }
  0xfc   :  { %175 = vadd.xlane.f32.xlu0 %v174_v42 }
 0x143   :  { %v189_v43 = vpop.permute.xlu1 %188  ;;  %v185_v44 = vpop.permute.xlu0 %184 }
 0x144   :  { %v196_v45 = vsel %vm167_vm6, %v185_v44, 0.0  ;;  %v202_v47 = vsel %vm167_vm6, %v189_v43, 0.0 }
 0x145   :  { %197 = vadd.xlane.f32.xlu1 %v196_v45 }
 0x147   :  { %v187_v46 = vpop.permute.xlu0 %186  ;;  %v191_v49 = vpop.permute.xlu1 %190 }
 0x148   :  { %v199_v48 = vsel %vm167_vm6, %v187_v46, 0.0  ;;  %v205_v50 = vsel %vm167_vm6, %v191_v49, 0.0 }
 0x149   :  { %203 = vadd.xlane.f32.xlu1 %v202_v47  ;;  %200 = vadd.xlane.f32.xlu0 %v199_v48 }
 0x14d   :  { %206 = vadd.xlane.f32.xlu0 %v205_v50 }
 0x17d   :  { %v179_v51 = vpop.xlane.xlu0 %178 }
 0x181   :  { %v170_v52 = vpop.xlane.xlu0 %169 }
 0x182   :  { %v173_v53 = vpop.xlane.xlu1 %172 }
 0x185   :  { %v176_v54 = vpop.xlane.xlu0 %175 }
 0x1ce   :  { %v198_v55 = vpop.xlane.xlu1 %197 }
 0x1cf   :  { %v209_v56 = vsel %vm208_vm7, %v170_v52, %v198_v55 }
 0x1d0   :  { %214 = vst.msk [vmem:[%s350_s5] sm:$0xff] %vm213_vm8, %v209_v56 }
 0x1d2   :  { %v204_v57 = vpop.xlane.xlu1 %203  ;;  %v201_v58 = vpop.xlane.xlu0 %200 }
 0x1d3   :  { %v211_v59 = vsel %vm208_vm7, %v176_v54, %v204_v57  ;;  %v210_v60 = vsel %vm208_vm7, %v173_v53, %v201_v58 }
 0x1d4   :  { %216 = vst.msk [vmem:[%s350_s5 + $0x10] sm:$0xff] %vm213_vm8, %v211_v59  ;;  %215 = vst.msk [vmem:[%s350_s5 + $0x8] sm:$0xff] %vm213_vm8, %v210_v60 }
 0x1d6   :  { %v207_v61 = vpop.xlane.xlu0 %206 }
 0x1d7   :  { %v212_v62 = vsel %vm208_vm7, %v179_v51, %v207_v61 }
 0x1d8   :  { %217 = vst.msk [vmem:[%s350_s5 + $0x18] sm:$0xff] %vm213_vm8, %v212_v62 }

// kernel: gatf_forward.12
= control target key start
LH: loop header
LB: loop body
LE: loop exit
PB: predicated region body
PF: predicated region fallthrough
CT: control target
= control target key end

     0   :  { %v545_v0 = vmov 0   ;;  %v546_v7 = vmov 1   ;;  %s547_s8 = smov 96   ;;  %v18_v16 = vlaneseq  ;;  %vm78_vm2 = vcmask 130048   ;;  %s699_s0 = inlined_call_operand.vmem [shape: s32[32,1], index: 0, kind: input, shape index: {}]   ;;  %s700_s1 = inlined_call_operand.vmem [shape: f32[32,2], index: 1, kind: input, shape index: {}]   ;;  %s701_s2 = inlined_call_operand.vmem [shape: f32[32,64], index: 2, kind: input, shape index: {}]   ;;  %s702_s3 = inlined_call_operand.vmem [shape: f32[1,64], index: 3, kind: input, shape index: {}]   ;;  %s703_s4 = inlined_call_operand.vmem [shape: f32[16,64], index: 4, kind: output, shape index: {}]  }
   0x1   :  { %519 = vset.pattern.permute.xlu1 %v545_v0  ;;  %518 = vset.pattern.permute.xlu0 %v545_v0  ;;  %v24_v1 = vld [vmem:[%s699_s0 + $0x10] sm:$0xff]  ;;  %v22_v2 = vld [vmem:[%s699_s0] sm:$0xff]  ;;  %v25_v3 = vld [vmem:[%s699_s0 + $0x18] sm:$0xff]  ;;  %vm164_vm7 = vcmask 261120   ;;  %vm463_vm8 = vcmask 523264  }
   0x2   :  { %33 = vperm.xlu1 %519, %v24_v1   ;;  %27 = vperm.xlu0 %518, %v22_v2   ;;  %v23_v4 = vld [vmem:[%s699_s0 + $0x8] sm:$0xff]  ;;  %v50_v6 = vld [vmem:[%s700_s1] sm:$0xff]  ;;  %v52_v8 = vld [vmem:[%s700_s1 + $0x10] sm:$0xff]  ;;  %v621_v19 = vand.u32 127, %v18_v16 }
   0x3   :  { %v51_v5 = vld [vmem:[%s700_s1 + $0x8] sm:$0xff]  ;;  %v53_v9 = vld [vmem:[%s700_s1 + $0x18] sm:$0xff]  ;;  %v130_v11 = vld [vmem:[%s701_s2 + $0x10] sm:$0xff] }
   0x4   :  { %v131_v10 = vld [vmem:[%s701_s2 + $0x18] sm:$0xff]  ;;  %v129_v12 = vld [vmem:[%s701_s2 + $0x8] sm:$0xff]  ;;  %v128_v13 = vld [vmem:[%s701_s2] sm:$0xff]  ;;  %s549_s2 = smov 32  }
   0x5   :  { %491 = vmatprep.subr.mxu0 %v131_v10 }
   0x6   :  { %36 = vperm.xlu1 %519, %v25_v3   ;;  %30 = vperm.xlu0 %518, %v23_v4  }
   0x7   :  { %492 = vmatpush3.msra.mxu0 %v131_v10 }
   0x8   :  { %493 = vmatprep.subr.mxu0 %v130_v11 }
   0x9   :  { %494 = vmatpush3.msra.mxu0 %v130_v11 }
   0xa   :  { %521 = vset.pattern.permute.xlu1 %v546_v7  ;;  %520 = vset.pattern.permute.xlu0 %v546_v7 }
   0xb   :  { %251 = vperm.xlu1 %521, %v51_v5   ;;  %247 = vperm.xlu0 %520, %v50_v6  }
   0xc   :  { %495 = vmatprep.subr.mxu0 %v129_v12 }
   0xd   :  { %496 = vmatpush3.msra.mxu0 %v129_v12 }
   0xe   :  { %497 = vmatprep.subr.mxu0 %v128_v13 }
   0xf   :  { %255 = vperm.xlu1 %521, %v52_v8   ;;  %259 = vperm.xlu0 %520, %v53_v9  }
  0x10   :  { %498 = vmatpush3.msra.mxu0 %v128_v13 }
  0x13   :  { %522 = vset.pattern.permute.xlu1 %v545_v0  ;;  %523 = vset.pattern.permute.xlu0 %v545_v0 }
  0x14   :  { %56 = vperm.xlu1 %522, %v50_v6   ;;  %61 = vperm.xlu0 %523, %v51_v5  }
  0x18   :  { %66 = vperm.xlu1 %522, %v52_v8   ;;  %357 = vrot.lane.b32.xlu0 %v131_v10, %s547_s8 }
  0x1c   :  { %71 = vperm.xlu1 %522, %v53_v9   ;;  %353 = vrot.lane.b32.xlu0 %v129_v12, %s547_s8 }
  0x20   :  { %355 = vrot.lane.b32.xlu1 %v130_v11, %s547_s8 }
  0x24   :  { %351 = vrot.lane.b32.xlu1 %v128_v13, %s547_s8 }
  0x7d   :  { %v613_v14 = vpop.permute.xlu1 %33  ;;  %v615_v15 = vpop.permute.xlu0 %27 }
  0x7e   :  { %vm38_vm0 = vcmp.eq.s32.totalorder %v615_v15, %v621_v19  ;;  %vm40_vm3 = vcmp.eq.s32.totalorder %v613_v14, %v621_v19 }
  0x81   :  { %v617_v17 = vpop.permute.xlu1 %36  ;;  %v619_v18 = vpop.permute.xlu0 %30 }
  0x82   :  { %vm39_vm1 = vcmp.eq.s32.totalorder %v619_v18, %v621_v19  ;;  %vm41_vm4 = vcmp.eq.s32.totalorder %v617_v17, %v621_v19 }
  0x86   :  { %v252_v20 = vpop.permute.xlu1 %251  ;;  %v248_v21 = vpop.permute.xlu0 %247 }
  0x87   :  { %v263_v22 = vsel %vm39_vm1, %v252_v20, -1e+30  ;;  %v262_v23 = vsel %vm38_vm0, %v248_v21, -1e+30 }
  0x88   :  { %v267_v24 = vsel %vm78_vm2, %v263_v22, -inf  ;;  %v266_v25 = vsel %vm78_vm2, %v262_v23, -inf }
  0x89   :  { %v270_v32 = vmax.f32 %v266_v25, %v267_v24  ;;  %v548_v24 = vmov 0.0  }
  0x8a   :  { %v256_v26 = vpop.permute.xlu1 %255  ;;  %v260_v27 = vpop.permute.xlu0 %259  ;;  %v470_v25 = vsel %vm38_vm0, 1.0, %v548_v24  ;;  %v473_v15 = vsel %vm41_vm4, 1.0, %v548_v24 }
  0x8b   :  { %v264_v28 = vsel %vm40_vm3, %v256_v26, -1e+30  ;;  %v265_v29 = vsel %vm41_vm4, %v260_v27, -1e+30  ;;  %v471_v27 = vsel %vm39_vm1, 1.0, %v548_v24 }
  0x8c   :  { %v268_v30 = vsel %vm78_vm2, %v264_v28, -inf  ;;  %v269_v31 = vsel %vm78_vm2, %v265_v29, -inf }
  0x8d   :  { %v271_v33 = vmax.f32 %v268_v30, %v269_v31  ;;  %v472_v30 = vsel %vm40_vm3, 1.0, %v548_v24 }
  0x8f   :  { %v272_v34 = vmax.f32 %v270_v32, %v271_v33  ;;  %v57_v35 = vpop.permute.xlu1 %56  ;;  %v62_v37 = vpop.permute.xlu0 %61 }
  0x90   :  { %v74_v40 = vsel %vm38_vm0, %v57_v35, -1e+30  ;;  %v75_v41 = vsel %vm39_vm1, %v62_v37, -1e+30 }
  0x91   :  { %v273_v36 = vrot.slane %v272_v34, 4  ;;  %v79_v45 = vsel %vm78_vm2, %v74_v40, -inf  ;;  %v80_v46 = vsel %vm78_vm2, %v75_v41, -inf }
  0x92   :  { %v83_v52 = vmax.f32 %v79_v45, %v80_v46 }
  0x93   :  { %v274_v38 = vmax.f32 %v272_v34, %v273_v36  ;;  %v67_v39 = vpop.permute.xlu1 %66  ;;  %v358_v4 = vpop.permute.xlu0 %357 }
  0x94   :  { %v76_v43 = vsel %vm40_vm3, %v67_v39, -1e+30  ;;  %502 = vmatprep.subr.mxu1 %v358_v4 }
  0x95   :  { %v275_v42 = vrot.slane %v274_v38, 2  ;;  %v81_v50 = vsel %vm78_vm2, %v76_v43, -inf  ;;  %503 = vmatpush3.msra.mxu1 %v358_v4 }
  0x97   :  { %v276_v44 = vmax.f32 %v274_v38, %v275_v42  ;;  %v72_v47 = vpop.permute.xlu1 %71  ;;  %v354_v9 = vpop.permute.xlu0 %353 }
  0x98   :  { %v77_v48 = vsel %vm41_vm4, %v72_v47, -1e+30 }
  0x99   :  { %v277_v49 = vrot.slane %v276_v44, 1  ;;  %v82_v51 = vsel %vm78_vm2, %v77_v48, -inf }
  0x9a   :  { %v84_v53 = vmax.f32 %v81_v50, %v82_v51 }
  0x9b   :  { %v278_v54 = vmax.f32 %v276_v44, %v277_v49  ;;  %v356_v5 = vpop.permute.xlu1 %355 }
  0x9c   :  { %v85_v55 = vmax.f32 %v83_v52, %v84_v53  ;;  %504 = vmatprep.subr.mxu1 %v356_v5 }
  0x9d   :  { %v279_v56 = vsub.f32 %v262_v23, %v278_v54  ;;  %v280_v57 = vsub.f32 %v263_v22, %v278_v54  ;;  %v281_v58 = vsub.f32 %v264_v28, %v278_v54  ;;  %v282_v59 = vsub.f32 %v265_v29, %v278_v54  ;;  %505 = vmatpush3.msra.mxu1 %v356_v5 }
  0x9e   :  { %v86_v60 = vrot.slane %v85_v55, 4  ;;  %506 = vmatprep.subr.mxu1 %v354_v9 }
  0x9f   :  { %v283_v61 = vmul.f32 1.442695, %v279_v56  ;;  %v285_v62 = vmul.f32 1.442695, %v280_v57  ;;  %v287_v63 = vmul.f32 1.442695, %v281_v58  ;;  %507 = vmatpush3.msra.mxu1 %v354_v9 }
  0xa0   :  { %v289_v0 = vmul.f32 1.442695, %v282_v59  ;;  %v87_v1 = vmax.f32 %v85_v55, %v86_v60 }
  0xa1   :  { %525 = vpow2.f32 %v283_v61 }
  0xa2   :  { %527 = vpow2.f32 %v285_v62  ;;  %v88_v2 = vrot.slane %v87_v1, 2 }
  0xa3   :  { %529 = vpow2.f32 %v287_v63 }
  0xa4   :  { %531 = vpow2.f32 %v289_v0  ;;  %v89_v3 = vmax.f32 %v87_v1, %v88_v2 }
  0xa6   :  { %v90_v6 = vrot.slane %v89_v3, 1 }
  0xa8   :  { %v91_v8 = vmax.f32 %v89_v3, %v90_v6  ;;  %v352_v3 = vpop.permute.xlu1 %351 }
  0xa9   :  { %508 = vmatprep.subr.mxu1 %v352_v3 }
  0xaa   :  { %v92_v10 = vsub.f32 %v74_v40, %v91_v8  ;;  %v93_v11 = vsub.f32 %v75_v41, %v91_v8  ;;  %v94_v12 = vsub.f32 %v76_v43, %v91_v8  ;;  %v95_v13 = vsub.f32 %v77_v48, %v91_v8  ;;  %509 = vmatpush3.msra.mxu1 %v352_v3 }
  0xac   :  { %v96_v16 = vmul.f32 1.442695, %v92_v10  ;;  %v98_v20 = vmul.f32 1.442695, %v93_v11  ;;  %v100_v21 = vmul.f32 1.442695, %v94_v12 }
  0xad   :  { %v102_v22 = vmul.f32 1.442695, %v95_v13 }
  0xae   :  { %v526_v23 = vpop.eup %525  ;;  %533 = vpow2.f32 %v96_v16 }
  0xaf   :  { %v528_v26 = vpop.eup %527  ;;  %535 = vpow2.f32 %v98_v20  ;;  %v291_v28 = vmul.f32 %v526_v23, %v470_v25 }
  0xb0   :  { %v530_v29 = vpop.eup %529  ;;  %537 = vpow2.f32 %v100_v21  ;;  %v292_v31 = vmul.f32 %v528_v26, %v471_v27 }
  0xb1   :  { %v532_v32 = vpop.eup %531  ;;  %539 = vpow2.f32 %v102_v22  ;;  %v293_v33 = vmul.f32 %v530_v29, %v472_v30  ;;  %v295_v34 = vsel %vm78_vm2, %v291_v28, 0.0 }
  0xb2   :  { %v294_v18 = vmul.f32 %v532_v32, %v473_v15  ;;  %v296_v35 = vsel %vm78_vm2, %v292_v31, 0.0 }
  0xb3   :  { %v297_v36 = vadd.f32 %v296_v35, %v295_v34  ;;  %v298_v37 = vsel %vm78_vm2, %v293_v33, 0.0 }
  0xb4   :  { %v300_v14 = vsel %vm78_vm2, %v294_v18, 0.0 }
  0xb5   :  { %v299_v38 = vadd.f32 %v298_v37, %v297_v36 }
  0xb7   :  { %v301_v39 = vadd.f32 %v300_v14, %v299_v38 }
  0xb9   :  { %v302_v40 = vrot.slane %v301_v39, 4 }
  0xbb   :  { %v534_v41 = vpop.eup %533  ;;  %v303_v42 = vadd.f32 %v302_v40, %v301_v39 }
  0xbc   :  { %v536_v43 = vpop.eup %535  ;;  %v104_v17 = vmul.f32 %v534_v41, %v470_v25 }
  0xbd   :  { %v538_v19 = vpop.eup %537  ;;  %v304_v44 = vrot.slane %v303_v42, 2  ;;  %v105_v45 = vmul.f32 %v536_v43, %v471_v27 }
  0xbe   :  { %v540_v46 = vpop.eup %539  ;;  %v106_v47 = vmul.f32 %v538_v19, %v472_v30  ;;  %v108_v48 = vsel %vm78_vm2, %v104_v17, 0.0 }
  0xbf   :  { %v305_v49 = vadd.f32 %v304_v44, %v303_v42  ;;  %v107_v50 = vmul.f32 %v540_v46, %v473_v15  ;;  %v109_v51 = vsel %vm78_vm2, %v105_v45, 0.0 }
  0xc0   :  { %v110_v52 = vadd.f32 %v109_v51, %v108_v48  ;;  %v111_v54 = vsel %vm78_vm2, %v106_v47, 0.0 }
  0xc1   :  { %v306_v53 = vrot.slane %v305_v49, 1  ;;  %v113_v57 = vsel %vm78_vm2, %v107_v50, 0.0 }
  0xc2   :  { %v112_v55 = vadd.f32 %v111_v54, %v110_v52 }
  0xc3   :  { %v307_v56 = vadd.f32 %v306_v53, %v305_v49 }
  0xc4   :  { %v114_v58 = vadd.f32 %v113_v57, %v112_v55 }
  0xc5   :  { %vm308_vm5 = vcmp.gt.f32.partialorder %v307_v56, 0.0 }
  0xc6   :  { %v309_v59 = vsel %vm308_vm5, %v307_v56, 1.0  ;;  %v115_v60 = vrot.slane %v114_v58, 4 }
  0xc7   :  { %541 = vrcp.f32 %v309_v59 }
  0xc8   :  { %v116_v61 = vadd.f32 %v115_v60, %v114_v58 }
  0xca   :  { %v117_v62 = vrot.slane %v116_v61, 2 }
  0xcc   :  { %v118_v63 = vadd.f32 %v117_v62, %v116_v61 }
  0xce   :  { %v119_v0 = vrot.slane %v118_v63, 1 }
  0xd0   :  { %v120_v1 = vadd.f32 %v119_v0, %v118_v63 }
  0xd2   :  { %vm121_vm6 = vcmp.gt.f32.partialorder %v120_v1, 0.0 }
  0xd3   :  { %v122_v2 = vsel %vm121_vm6, %v120_v1, 1.0 }
  0xd4   :  { %v542_v4 = vpop.eup %541  ;;  %543 = vrcp.f32 %v122_v2 }
  0xd5   :  { %v311_v5 = vmul.f32 %v542_v4, %v291_v28  ;;  %v312_v6 = vmul.f32 %v542_v4, %v292_v31  ;;  %v313_v8 = vmul.f32 %v542_v4, %v293_v33  ;;  %v314_v10 = vmul.f32 %v542_v4, %v294_v18 }
  0xd7   :  { %315 = vxpose.xlu0.b32.start [1/4] (short) (narrow) %v311_v5, 16 }
  0xdb   :  { %316 = vxpose.xlu0.b32.cont [2/4] (short) (narrow) %v312_v6, 16 }
  0xdf   :  { %317 = vxpose.xlu0.b32.cont [3/4] (short) (narrow) %v313_v8, 16 }
  0xe1   :  { %v544_v9 = vpop.eup %543 }
  0xe2   :  { %v124_v11 = vmul.f32 %v544_v9, %v104_v17  ;;  %v125_v12 = vmul.f32 %v544_v9, %v105_v45  ;;  %v126_v13 = vmul.f32 %v544_v9, %v106_v47  ;;  %v127_v16 = vmul.f32 %v544_v9, %v107_v50 }
  0xe3   :  { %318 = vxpose.xlu0.b32.end [4/4] (short) (narrow) %v314_v10, 16 }
  0xe4   :  { %132 = vxpose.xlu1.b32.start [1/4] (short) (narrow) %v124_v11, 16 }
  0xe8   :  { %133 = vxpose.xlu1.b32.cont [2/4] (short) (narrow) %v125_v12, 16 }
  0xec   :  { %134 = vxpose.xlu1.b32.cont [3/4] (short) (narrow) %v126_v13, 16 }
  0xf0   :  { %135 = vxpose.xlu1.b32.end [4/4] (short) (narrow) %v127_v16, 16 }
 0x10c   :  { %524 = vset.pattern.permute.xlu0 %v546_v7  ;;  %v478_v7 = vld [vmem:[%s702_s3] ss:$0 sm:$0xff] }
 0x153   :  { %v331_v20 = vpop.trf.xlu0 }
 0x154   :  { %510 = vmatprep.mubr.msk.f32.mxu1 %vm164_vm7, %v331_v20 }
 0x157   :  { %v332_v21 = vpop.trf.xlu0 }
 0x158   :  { %511 = vmatmul.mubr.msk.f32.vlgmr.msra.gmra.mxu1 %vm164_vm7, %v332_v21 }
 0x160   :  { %v148_v22 = vpop.trf.xlu1 }
 0x161   :  { %499 = vmatprep.mubr.msk.f32.mxu0 %vm164_vm7, %v148_v22 }
 0x164   :  { %v149_v23 = vpop.trf.xlu1 }
 0x165   :  { %500 = vmatmul.mubr.msk.f32.vlgmr.msra.gmra.mxu0 %vm164_vm7, %v149_v23 }
 0x218   :  { %v512_v24 = vpop.f32.mrf.mxu1 }
 0x219   :  { %448 = vrot.lane.b32.xlu1 %v512_v24, %s549_s2 }
 0x21a   :  { %v435_v25 = vpop.f32.mrf.mxu1 }
 0x21b   :  { %446 = vrot.lane.b32.xlu0 %v435_v25, %s549_s2 }
 0x225   :  { %v501_v26 = vpop.f32.mrf.mxu0 }
 0x227   :  { %v237_v29 = vpop.f32.mrf.mxu0 }
 0x28b   :  { %v449_v27 = vpop.permute.xlu1 %448 }
 0x28c   :  { %v453_v28 = vsel %vm164_vm7, %v501_v26, %v449_v27 }
 0x28d   :  { %v462_v30 = vadd.f32 %v478_v7, %v453_v28  ;;  %v447_v31 = vpop.permute.xlu0 %446 }
 0x28e   :  { %v452_v32 = vsel %vm164_vm7, %v237_v29, %v447_v31 }
 0x28f   :  { %465 = vst.msk [vmem:[%s703_s4 + $0x8] sm:$0xff] %vm463_vm8, %v462_v30  ;;  %v461_v15 = vadd.f32 %v478_v7, %v452_v32 }
 0x291   :  { %464 = vst.msk [vmem:[%s703_s4] sm:$0xff] %vm463_vm8, %v461_v15 }

// kernel: gatf_forward.15
= control target key start
LH: loop header
LB: loop body
LE: loop exit
PB: predicated region body
PF: predicated region fallthrough
CT: control target
= control target key end

     0   :  { %v533_v0 = vmov 0   ;;  %v534_v9 = vmov 1   ;;  %s535_s8 = smov 64   ;;  %v18_v14 = vlaneseq  ;;  %vm78_vm2 = vcmask 130048   ;;  %s677_s0 = inlined_call_operand.vmem [shape: s32[32,1], index: 0, kind: input, shape index: {}]   ;;  %s678_s1 = inlined_call_operand.vmem [shape: f32[32,2], index: 1, kind: input, shape index: {}]   ;;  %s679_s2 = inlined_call_operand.vmem [shape: f32[32,128], index: 2, kind: input, shape index: {}]   ;;  %s680_s3 = inlined_call_operand.vmem [shape: f32[1,64], index: 3, kind: input, shape index: {}]   ;;  %s681_s4 = inlined_call_operand.vmem [shape: f32[16,64], index: 4, kind: output, shape index: {}]  }
   0x1   :  { %510 = vset.pattern.permute.xlu1 %v533_v0  ;;  %509 = vset.pattern.permute.xlu0 %v533_v0  ;;  %v24_v1 = vld [vmem:[%s677_s0 + $0x10] sm:$0xff]  ;;  %v22_v2 = vld [vmem:[%s677_s0] sm:$0xff]  ;;  %v25_v3 = vld [vmem:[%s677_s0 + $0x18] sm:$0xff]  ;;  %vm249_vm7 = vcmask 261120   ;;  %vm455_vm8 = vcmask 523264  }
   0x2   :  { %33 = vperm.xlu1 %510, %v24_v1   ;;  %27 = vperm.xlu0 %509, %v22_v2   ;;  %v23_v4 = vld [vmem:[%s677_s0 + $0x8] sm:$0xff]  ;;  %v50_v6 = vld [vmem:[%s678_s1] sm:$0xff]  ;;  %v53_v7 = vld [vmem:[%s678_s1 + $0x18] sm:$0xff]  ;;  %v602_v17 = vand.u32 127, %v18_v14 }
   0x3   :  { %v51_v5 = vld [vmem:[%s678_s1 + $0x8] sm:$0xff]  ;;  %v52_v8 = vld [vmem:[%s678_s1 + $0x10] sm:$0xff]  ;;  %v131_v10 = vld [vmem:[%s679_s2 + $0x18] sm:$0xff] }
   0x4   :  { %v130_v11 = vld [vmem:[%s679_s2 + $0x10] sm:$0xff]  ;;  %v129_v12 = vld [vmem:[%s679_s2 + $0x8] sm:$0xff]  ;;  %v128_v13 = vld [vmem:[%s679_s2] sm:$0xff]  ;;  %494 = vmatprep.subr.mxu1 %v131_v10 }
   0x5   :  { %495 = vmatpush3.msra.mxu1 %v131_v10 }
   0x6   :  { %36 = vperm.xlu1 %510, %v25_v3   ;;  %30 = vperm.xlu0 %509, %v23_v4  }
   0x7   :  { %496 = vmatprep.subr.mxu1 %v130_v11 }
   0x8   :  { %497 = vmatpush3.msra.mxu1 %v130_v11 }
   0x9   :  { %498 = vmatprep.subr.mxu1 %v129_v12 }
   0xa   :  { %61 = vperm.xlu1 %510, %v51_v5   ;;  %56 = vperm.xlu0 %509, %v50_v6  }
   0xb   :  { %499 = vmatpush3.msra.mxu1 %v129_v12 }
   0xc   :  { %500 = vmatprep.subr.mxu1 %v128_v13 }
   0xd   :  { %501 = vmatpush3.msra.mxu1 %v128_v13 }
   0xe   :  { %71 = vperm.xlu1 %510, %v53_v7   ;;  %66 = vperm.xlu0 %509, %v52_v8  }
  0x12   :  { %512 = vset.pattern.permute.xlu1 %v534_v9  ;;  %511 = vset.pattern.permute.xlu0 %v534_v9 }
  0x13   :  { %137 = vperm.xlu1 %512, %v51_v5   ;;  %133 = vperm.xlu0 %511, %v50_v6  }
  0x17   :  { %141 = vperm.xlu1 %512, %v52_v8   ;;  %145 = vperm.xlu0 %511, %v53_v7  }
  0x1b   :  { %243 = vrot.lane.b32.xlu1 %v131_v10, %s535_s8  ;;  %241 = vrot.lane.b32.xlu0 %v130_v11, %s535_s8 }
  0x1f   :  { %239 = vrot.lane.b32.xlu1 %v129_v12, %s535_s8  ;;  %237 = vrot.lane.b32.xlu0 %v128_v13, %s535_s8 }
  0x7d   :  { %v598_v15 = vpop.permute.xlu1 %33  ;;  %v600_v16 = vpop.permute.xlu0 %27 }
  0x7e   :  { %vm38_vm0 = vcmp.eq.s32.totalorder %v600_v16, %v602_v17  ;;  %vm40_vm3 = vcmp.eq.s32.totalorder %v598_v15, %v602_v17 }
  0x81   :  { %v604_v18 = vpop.permute.xlu1 %36  ;;  %v606_v19 = vpop.permute.xlu0 %30 }
  0x82   :  { %vm39_vm1 = vcmp.eq.s32.totalorder %v606_v19, %v602_v17  ;;  %vm41_vm4 = vcmp.eq.s32.totalorder %v604_v18, %v602_v17 }
  0x85   :  { %v62_v20 = vpop.permute.xlu1 %61  ;;  %v57_v21 = vpop.permute.xlu0 %56 }
  0x86   :  { %v75_v22 = vsel %vm39_vm1, %v62_v20, -1e+30  ;;  %v74_v23 = vsel %vm38_vm0, %v57_v21, -1e+30 }
  0x87   :  { %v80_v24 = vsel %vm78_vm2, %v75_v22, -inf  ;;  %v79_v25 = vsel %vm78_vm2, %v74_v23, -inf }
  0x88   :  { %v83_v32 = vmax.f32 %v79_v25, %v80_v24  ;;  %v536_v24 = vmov 0.0  }
  0x89   :  { %v72_v26 = vpop.permute.xlu1 %71  ;;  %v67_v27 = vpop.permute.xlu0 %66  ;;  %v462_v25 = vsel %vm38_vm0, 1.0, %v536_v24 }
  0x8a   :  { %v77_v28 = vsel %vm41_vm4, %v72_v26, -1e+30  ;;  %v76_v29 = vsel %vm40_vm3, %v67_v27, -1e+30  ;;  %v463_v27 = vsel %vm39_vm1, 1.0, %v536_v24 }
  0x8b   :  { %v82_v30 = vsel %vm78_vm2, %v77_v28, -inf  ;;  %v81_v31 = vsel %vm78_vm2, %v76_v29, -inf }
  0x8c   :  { %v84_v33 = vmax.f32 %v81_v31, %v82_v30  ;;  %v464_v30 = vsel %vm40_vm3, 1.0, %v536_v24 }
  0x8e   :  { %v85_v34 = vmax.f32 %v83_v32, %v84_v33  ;;  %v138_v35 = vpop.permute.xlu1 %137  ;;  %v134_v36 = vpop.permute.xlu0 %133  ;;  %v465_v33 = vsel %vm41_vm4, 1.0, %v536_v24 }
  0x8f   :  { %v149_v37 = vsel %vm39_vm1, %v138_v35, -1e+30  ;;  %v148_v38 = vsel %vm38_vm0, %v134_v36, -1e+30 }
  0x90   :  { %v86_v39 = vrot.slane %v85_v34, 4  ;;  %v153_v41 = vsel %vm78_vm2, %v149_v37, -inf  ;;  %v152_v42 = vsel %vm78_vm2, %v148_v38, -inf }
  0x91   :  { %v156_v50 = vmax.f32 %v152_v42, %v153_v41 }
  0x92   :  { %v87_v40 = vmax.f32 %v85_v34, %v86_v39  ;;  %v142_v43 = vpop.permute.xlu1 %141  ;;  %v146_v44 = vpop.permute.xlu0 %145 }
  0x93   :  { %v150_v45 = vsel %vm40_vm3, %v142_v43, -1e+30  ;;  %v151_v46 = vsel %vm41_vm4, %v146_v44, -1e+30 }
  0x94   :  { %v88_v47 = vrot.slane %v87_v40, 2  ;;  %v154_v48 = vsel %vm78_vm2, %v150_v45, -inf  ;;  %v155_v49 = vsel %vm78_vm2, %v151_v46, -inf }
  0x95   :  { %v157_v51 = vmax.f32 %v154_v48, %v155_v49 }
  0x96   :  { %v89_v52 = vmax.f32 %v87_v40, %v88_v47  ;;  %v244_v4 = vpop.permute.xlu1 %243  ;;  %v242_v5 = vpop.permute.xlu0 %241 }
  0x97   :  { %v158_v53 = vmax.f32 %v156_v50, %v157_v51  ;;  %483 = vmatprep.subr.mxu0 %v244_v4 }
  0x98   :  { %v90_v54 = vrot.slane %v89_v52, 1  ;;  %484 = vmatpush3.msra.mxu0 %v244_v4 }
  0x99   :  { %v159_v55 = vrot.slane %v158_v53, 4  ;;  %485 = vmatprep.subr.mxu0 %v242_v5 }
  0x9a   :  { %v91_v56 = vmax.f32 %v89_v52, %v90_v54  ;;  %v240_v8 = vpop.permute.xlu1 %239  ;;  %486 = vmatpush3.msra.mxu0 %v242_v5  ;;  %v238_v9 = vpop.permute.xlu0 %237 }
  0x9b   :  { %v160_v57 = vmax.f32 %v158_v53, %v159_v55  ;;  %487 = vmatprep.subr.mxu0 %v240_v8 }
  0x9c   :  { %v92_v58 = vsub.f32 %v74_v23, %v91_v56  ;;  %v93_v59 = vsub.f32 %v75_v22, %v91_v56  ;;  %v94_v60 = vsub.f32 %v76_v29, %v91_v56  ;;  %v95_v61 = vsub.f32 %v77_v28, %v91_v56  ;;  %488 = vmatpush3.msra.mxu0 %v240_v8 }
  0x9d   :  { %v161_v62 = vrot.slane %v160_v57, 2  ;;  %489 = vmatprep.subr.mxu0 %v238_v9 }
  0x9e   :  { %v96_v63 = vmul.f32 1.442695, %v92_v58  ;;  %v98_v0 = vmul.f32 1.442695, %v93_v59  ;;  %v100_v1 = vmul.f32 1.442695, %v94_v60  ;;  %490 = vmatpush3.msra.mxu0 %v238_v9 }
  0x9f   :  { %v102_v2 = vmul.f32 1.442695, %v95_v61  ;;  %v162_v3 = vmax.f32 %v160_v57, %v161_v62 }
  0xa0   :  { %513 = vpow2.f32 %v96_v63 }
  0xa1   :  { %515 = vpow2.f32 %v98_v0  ;;  %v163_v6 = vrot.slane %v162_v3, 1 }
  0xa2   :  { %517 = vpow2.f32 %v100_v1 }
  0xa3   :  { %519 = vpow2.f32 %v102_v2  ;;  %v164_v7 = vmax.f32 %v162_v3, %v163_v6 }
  0xa5   :  { %v165_v10 = vsub.f32 %v148_v38, %v164_v7  ;;  %v166_v11 = vsub.f32 %v149_v37, %v164_v7  ;;  %v167_v12 = vsub.f32 %v150_v45, %v164_v7  ;;  %v168_v13 = vsub.f32 %v151_v46, %v164_v7 }
  0xa7   :  { %v169_v14 = vmul.f32 1.442695, %v165_v10  ;;  %v171_v20 = vmul.f32 1.442695, %v166_v11  ;;  %v173_v21 = vmul.f32 1.442695, %v167_v12 }
  0xa8   :  { %v175_v22 = vmul.f32 1.442695, %v168_v13 }
  0xa9   :  { %521 = vpow2.f32 %v169_v14 }
  0xaa   :  { %523 = vpow2.f32 %v171_v20 }
  0xab   :  { %525 = vpow2.f32 %v173_v21 }
  0xac   :  { %527 = vpow2.f32 %v175_v22 }
  0xad   :  { %v514_v23 = vpop.eup %513 }
  0xae   :  { %v516_v26 = vpop.eup %515  ;;  %v104_v28 = vmul.f32 %v514_v23, %v462_v25 }
  0xaf   :  { %v518_v29 = vpop.eup %517  ;;  %v105_v31 = vmul.f32 %v516_v26, %v463_v27 }
  0xb0   :  { %v520_v32 = vpop.eup %519  ;;  %v106_v34 = vmul.f32 %v518_v29, %v464_v30  ;;  %v108_v16 = vsel %vm78_vm2, %v104_v28, 0.0 }
  0xb1   :  { %v107_v35 = vmul.f32 %v520_v32, %v465_v33  ;;  %v109_v36 = vsel %vm78_vm2, %v105_v31, 0.0 }
  0xb2   :  { %v110_v19 = vadd.f32 %v109_v36, %v108_v16  ;;  %v111_v37 = vsel %vm78_vm2, %v106_v34, 0.0 }
  0xb3   :  { %v113_v39 = vsel %vm78_vm2, %v107_v35, 0.0 }
  0xb4   :  { %v112_v38 = vadd.f32 %v111_v37, %v110_v19 }
  0xb6   :  { %v522_v15 = vpop.eup %521  ;;  %v114_v40 = vadd.f32 %v113_v39, %v112_v38 }
  0xb7   :  { %v524_v41 = vpop.eup %523  ;;  %v177_v42 = vmul.f32 %v522_v15, %v462_v25  ;;  %v470_v25 = vld [vmem:[%s680_s3] ss:$0 sm:$0xff] }
  0xb8   :  { %v526_v43 = vpop.eup %525  ;;  %v115_v44 = vrot.slane %v114_v40, 4  ;;  %v178_v17 = vmul.f32 %v524_v41, %v463_v27 }
  0xb9   :  { %v528_v18 = vpop.eup %527  ;;  %v179_v45 = vmul.f32 %v526_v43, %v464_v30  ;;  %v181_v46 = vsel %vm78_vm2, %v177_v42, 0.0 }
  0xba   :  { %v116_v47 = vadd.f32 %v115_v44, %v114_v40  ;;  %v180_v48 = vmul.f32 %v528_v18, %v465_v33  ;;  %v182_v49 = vsel %vm78_vm2, %v178_v17, 0.0 }
  0xbb   :  { %v183_v50 = vadd.f32 %v182_v49, %v181_v46  ;;  %v184_v52 = vsel %vm78_vm2, %v179_v45, 0.0 }
  0xbc   :  { %v117_v51 = vrot.slane %v116_v47, 2  ;;  %v186_v55 = vsel %vm78_vm2, %v180_v48, 0.0 }
  0xbd   :  { %v185_v53 = vadd.f32 %v184_v52, %v183_v50 }
  0xbe   :  { %v118_v54 = vadd.f32 %v117_v51, %v116_v47 }
  0xbf   :  { %v187_v56 = vadd.f32 %v186_v55, %v185_v53 }
  0xc0   :  { %v119_v57 = vrot.slane %v118_v54, 1 }
  0xc1   :  { %v188_v58 = vrot.slane %v187_v56, 4 }
  0xc2   :  { %v120_v59 = vadd.f32 %v119_v57, %v118_v54 }
  0xc3   :  { %v189_v60 = vadd.f32 %v188_v58, %v187_v56 }
  0xc4   :  { %vm121_vm5 = vcmp.gt.f32.partialorder %v120_v59, 0.0 }
  0xc5   :  { %v122_v61 = vsel %vm121_vm5, %v120_v59, 1.0  ;;  %v190_v62 = vrot.slane %v189_v60, 2 }
  0xc6   :  { %529 = vrcp.f32 %v122_v61 }
  0xc7   :  { %v191_v63 = vadd.f32 %v190_v62, %v189_v60 }
  0xc9   :  { %v192_v0 = vrot.slane %v191_v63, 1 }
  0xcb   :  { %v193_v1 = vadd.f32 %v192_v0, %v191_v63 }
  0xcd   :  { %vm194_vm6 = vcmp.gt.f32.partialorder %v193_v1, 0.0 }
  0xce   :  { %v195_v2 = vsel %vm194_vm6, %v193_v1, 1.0 }
  0xcf   :  { %531 = vrcp.f32 %v195_v2 }
  0xd3   :  { %v530_v3 = vpop.eup %529 }
  0xd4   :  { %v124_v4 = vmul.f32 %v530_v3, %v104_v28  ;;  %v125_v5 = vmul.f32 %v530_v3, %v105_v31  ;;  %v126_v7 = vmul.f32 %v530_v3, %v106_v34  ;;  %v127_v9 = vmul.f32 %v530_v3, %v107_v35 }
  0xd6   :  { %331 = vxpose.xlu0.b32.start [1/4] (short) (narrow) %v124_v4, 16 }
  0xda   :  { %332 = vxpose.xlu0.b32.cont [2/4] (short) (narrow) %v125_v5, 16 }
  0xdc   :  { %v532_v6 = vpop.eup %531 }
  0xdd   :  { %v197_v8 = vmul.f32 %v532_v6, %v177_v42  ;;  %v198_v10 = vmul.f32 %v532_v6, %v178_v17  ;;  %v199_v11 = vmul.f32 %v532_v6, %v179_v45  ;;  %v200_v12 = vmul.f32 %v532_v6, %v180_v48 }
  0xde   :  { %333 = vxpose.xlu0.b32.cont [3/4] (short) (narrow) %v126_v7, 16 }
  0xdf   :  { %201 = vxpose.xlu1.b32.start [1/4] (short) (narrow) %v197_v8, 16 }
  0xe2   :  { %334 = vxpose.xlu0.b32.end [4/4] (short) (narrow) %v127_v9, 16 }
  0xe3   :  { %202 = vxpose.xlu1.b32.cont [2/4] (short) (narrow) %v198_v10, 16 }
  0xe7   :  { %203 = vxpose.xlu1.b32.cont [3/4] (short) (narrow) %v199_v11, 16 }
  0xeb   :  { %204 = vxpose.xlu1.b32.end [4/4] (short) (narrow) %v200_v12, 16 }
 0x152   :  { %v347_v13 = vpop.trf.xlu0 }
 0x153   :  { %502 = vmatprep.mubr.msk.f32.mxu1 %vm249_vm7, %v347_v13 }
 0x156   :  { %v348_v14 = vpop.trf.xlu0 }
 0x157   :  { %503 = vmatmul.mubr.msk.f32.vlgmr.msra.gmra.mxu1 %vm249_vm7, %v348_v14 }
 0x15b   :  { %v217_v20 = vpop.trf.xlu1 }
 0x15c   :  { %491 = vmatprep.mubr.msk.f32.mxu0 %vm249_vm7, %v217_v20 }
 0x15f   :  { %v218_v21 = vpop.trf.xlu1 }
 0x160   :  { %492 = vmatmul.mubr.msk.f32.vlgmr.msra.gmra.mxu0 %vm249_vm7, %v218_v21 }
 0x217   :  { %v504_v22 = vpop.f32.mrf.mxu1 }
 0x219   :  { %v435_v26 = vpop.f32.mrf.mxu1 }
 0x220   :  { %v493_v23 = vpop.f32.mrf.mxu0 }
 0x221   :  { %v441_v24 = vadd.f32 %v504_v22, %v493_v23 }
 0x222   :  { %v322_v27 = vpop.f32.mrf.mxu0 }
 0x223   :  { %v445_v28 = vmul.f32 0.5, %v441_v24  ;;  %v436_v29 = vadd.f32 %v435_v26, %v322_v27 }
 0x225   :  { %v454_v30 = vadd.f32 %v470_v25, %v445_v28  ;;  %v444_v31 = vmul.f32 0.5, %v436_v29 }
 0x227   :  { %457 = vst.msk [vmem:[%s681_s4 + $0x8] sm:$0xff] %vm455_vm8, %v454_v30  ;;  %v453_v32 = vadd.f32 %v470_v25, %v444_v31 }
 0x229   :  { %456 = vst.msk [vmem:[%s681_s4] sm:$0xff] %vm455_vm8, %v453_v32 }

// kernel: gatf_forward.14
= control target key start
LH: loop header
LB: loop body
LE: loop exit
PB: predicated region body
PF: predicated region fallthrough
CT: control target
= control target key end

     0   :  { %vm51_vm0 = vcmask 1041408   ;;  %vm38_vm1 = vcmask 80896   ;;  %s249_s19 = smov 64   ;;  %vm167_vm6 = vcmask 523264   ;;  %vm208_vm7 = vcmask 7168   ;;  %s345_s3 = inlined_call_operand.vmem [shape: f32[10,128], index: 3, kind: input, shape index: {}]   ;;  %s346_s2 = inlined_call_operand.vmem [shape: f32[32,10], index: 2, kind: input, shape index: {}]   ;;  %s347_s0 = inlined_call_operand.vmem [shape: f32[32,128], index: 0, kind: input, shape index: {}]   ;;  %s348_s1 = inlined_call_operand.vmem [shape: f32[32,128], index: 1, kind: input, shape index: {}]   ;;  %s349_s4 = inlined_call_operand.vmem [shape: f32[1,128], index: 4, kind: input, shape index: {}]   ;;  %s350_s5 = inlined_call_operand.vmem [shape: f32[32,2], index: 5, kind: output, shape index: {}]  }
   0x1   :  { %v37_v0 = vld [vmem:[%s345_s3 + $0x8] sm:$0x3]  ;;  %v36_v1 = vld [vmem:[%s345_s3] sm:$0xff]  ;;  %v34_v3 = vld [vmem:[%s346_s2 + $0x10] sm:$0xff]  ;;  %vm213_vm8 = vcmask 15360  }
   0x2   :  { %234 = vmatprep.subr.msk.mxu0 %vm51_vm0, %v37_v0  ;;  %244 = vmatprep.subr.msk.mxu1 %vm51_vm0, %v37_v0  ;;  %v32_v2 = vld [vmem:[%s346_s2] sm:$0xff]  ;;  %v33_v4 = vld [vmem:[%s346_s2 + $0x8] sm:$0xff]  ;;  %v35_v5 = vld [vmem:[%s346_s2 + $0x18] sm:$0xff] }
   0x3   :  { %235 = vmatpush3.msk.msra.mxu0 %vm51_vm0, %v37_v0  ;;  %246 = vmatpush3.msk.msra.mxu1 %vm51_vm0, %v37_v0  ;;  %v21_v6 = vld [vmem:[%s347_s0 + $0x8] sm:$0xff]  ;;  %v23_v8 = vld [vmem:[%s347_s0 + $0x18] sm:$0xff]  ;;  %v20_v10 = vld [vmem:[%s347_s0] sm:$0xff] }
   0x4   :  { %236 = vmatprep.subr.mxu0 %v36_v1  ;;  %245 = vmatprep.subr.mxu1 %v36_v1  ;;  %v25_v7 = vld [vmem:[%s348_s1 + $0x8] sm:$0xff]  ;;  %v27_v9 = vld [vmem:[%s348_s1 + $0x18] sm:$0xff]  ;;  %v24_v13 = vld [vmem:[%s348_s1] sm:$0xff] }
   0x5   :  { %237 = vmatpush3.msra.mxu0 %v36_v1  ;;  %247 = vmatpush3.msra.mxu1 %v36_v1  ;;  %v29_v11 = vadd.f32 %v25_v7, %v21_v6  ;;  %v31_v12 = vadd.f32 %v27_v9, %v23_v8  ;;  %v22_v14 = vld [vmem:[%s347_s0 + $0x10] sm:$0xff]  ;;  %v28_v18 = vadd.f32 %v24_v13, %v20_v10  ;;  %v227_v31 = vld [vmem:[%s349_s4] ss:$0 sm:$0xff] }
   0x6   :  { %238 = vmatprep.mubr.msk.f32.mxu0 %vm38_vm1, %v32_v2  ;;  %241 = vmatprep.mubr.msk.f32.mxu1 %vm38_vm1, %v34_v3  ;;  %v26_v15 = vld [vmem:[%s348_s1 + $0x10] sm:$0xff] }
   0x7   :  { %239 = vmatmul.mubr.msk.f32.vlgmr.msra.gmra.mxu0 %vm38_vm1, %v33_v4  ;;  %242 = vmatmul.mubr.msk.f32.vlgmr.msra.gmra.mxu1 %vm38_vm1, %v35_v5  ;;  %v30_v19 = vadd.f32 %v26_v15, %v22_v14 }
  0xc7   :  { %v240_v16 = vpop.f32.mrf.mxu0  ;;  %v243_v17 = vpop.f32.mrf.mxu1 }
  0xc8   :  { %v141_v20 = vadd.f32 %v240_v16, %v29_v11  ;;  %v143_v21 = vadd.f32 %v243_v17, %v31_v12 }
  0xc9   :  { %v121_v22 = vpop.f32.mrf.mxu0  ;;  %v131_v23 = vpop.f32.mrf.mxu1 }
  0xca   :  { %v140_v24 = vadd.f32 %v121_v22, %v28_v18  ;;  %v142_v25 = vadd.f32 %v131_v23, %v30_v19  ;;  %v149_v26 = vmul.f32 0.2, %v141_v20  ;;  %v151_v27 = vmul.f32 0.2, %v143_v21 }
  0xcb   :  { %vm145_vm4 = vcmp.gt.f32.partialorder %v141_v20, 0.0  ;;  %vm147_vm5 = vcmp.gt.f32.partialorder %v143_v21, 0.0 }
  0xcc   :  { %v148_v28 = vmul.f32 0.2, %v140_v24  ;;  %v150_v29 = vmul.f32 0.2, %v142_v25  ;;  %vm146_vm2 = vcmp.gt.f32.partialorder %v142_v25, 0.0  ;;  %vm144_vm3 = vcmp.gt.f32.partialorder %v140_v24, 0.0 }
  0xcd   :  { %v155_v35 = vsel %vm147_vm5, %v143_v21, %v151_v27  ;;  %v153_v36 = vsel %vm145_vm4, %v141_v20, %v149_v26 }
  0xce   :  { %v154_v30 = vsel %vm146_vm2, %v142_v25, %v150_v29  ;;  %v152_v32 = vsel %vm144_vm3, %v140_v24, %v148_v28  ;;  %v166_v37 = vmul.f32 %v227_v31, %v155_v35  ;;  %v164_v38 = vmul.f32 %v227_v31, %v153_v36 }
  0xcf   :  { %v165_v33 = vmul.f32 %v227_v31, %v154_v30  ;;  %v163_v34 = vmul.f32 %v227_v31, %v152_v32 }
  0xd0   :  { %v177_v39 = vsel %vm167_vm6, %v166_v37, 0.0  ;;  %v171_v41 = vsel %vm167_vm6, %v164_v38, 0.0 }
  0xd1   :  { %188 = vrot.lane.b32.xlu1 %v165_v33, %s249_s19  ;;  %184 = vrot.lane.b32.xlu0 %v163_v34, %s249_s19  ;;  %v168_v40 = vsel %vm167_vm6, %v163_v34, 0.0  ;;  %v174_v42 = vsel %vm167_vm6, %v165_v33, 0.0 }
  0xd5   :  { %190 = vrot.lane.b32.xlu1 %v166_v37, %s249_s19  ;;  %186 = vrot.lane.b32.xlu0 %v164_v38, %s249_s19 }
  0xf4   :  { %178 = vadd.xlane.f32.xlu0 %v177_v39 }
  0xf8   :  { %169 = vadd.xlane.f32.xlu0 %v168_v40 }
  0xf9   :  { %172 = vadd.xlane.f32.xlu1 %v171_v41 }
  0xfc   :  { %175 = vadd.xlane.f32.xlu0 %v174_v42 }
 0x143   :  { %v189_v43 = vpop.permute.xlu1 %188  ;;  %v185_v44 = vpop.permute.xlu0 %184 }
 0x144   :  { %v196_v45 = vsel %vm167_vm6, %v185_v44, 0.0  ;;  %v202_v47 = vsel %vm167_vm6, %v189_v43, 0.0 }
 0x145   :  { %197 = vadd.xlane.f32.xlu1 %v196_v45 }
 0x147   :  { %v187_v46 = vpop.permute.xlu0 %186  ;;  %v191_v49 = vpop.permute.xlu1 %190 }
 0x148   :  { %v199_v48 = vsel %vm167_vm6, %v187_v46, 0.0  ;;  %v205_v50 = vsel %vm167_vm6, %v191_v49, 0.0 }
 0x149   :  { %203 = vadd.xlane.f32.xlu1 %v202_v47  ;;  %200 = vadd.xlane.f32.xlu0 %v199_v48 }
 0x14d   :  { %206 = vadd.xlane.f32.xlu0 %v205_v50 }
 0x17d   :  { %v179_v51 = vpop.xlane.xlu0 %178 }
 0x181   :  { %v170_v52 = vpop.xlane.xlu0 %169 }
 0x182   :  { %v173_v53 = vpop.xlane.xlu1 %172 }
 0x185   :  { %v176_v54 = vpop.xlane.xlu0 %175 }
 0x1ce   :  { %v198_v55 = vpop.xlane.xlu1 %197 }
 0x1cf   :  { %v209_v56 = vsel %vm208_vm7, %v170_v52, %v198_v55 }
 0x1d0   :  { %214 = vst.msk [vmem:[%s350_s5] sm:$0xff] %vm213_vm8, %v209_v56 }
 0x1d2   :  { %v204_v57 = vpop.xlane.xlu1 %203  ;;  %v201_v58 = vpop.xlane.xlu0 %200 }
 0x1d3   :  { %v211_v59 = vsel %vm208_vm7, %v176_v54, %v204_v57  ;;  %v210_v60 = vsel %vm208_vm7, %v173_v53, %v201_v58 }
 0x1d4   :  { %216 = vst.msk [vmem:[%s350_s5 + $0x10] sm:$0xff] %vm213_vm8, %v211_v59  ;;  %215 = vst.msk [vmem:[%s350_s5 + $0x8] sm:$0xff] %vm213_vm8, %v210_v60 }
 0x1d6   :  { %v207_v61 = vpop.xlane.xlu0 %206 }
 0x1d7   :  { %v212_v62 = vsel %vm208_vm7, %v179_v51, %v207_v61 }
 0x1d8   :  { %217 = vst.msk [vmem:[%s350_s5 + $0x18] sm:$0xff] %vm213_vm8, %v212_v62 }

// kernel: gatf_forward.19
= control target key start
LH: loop header
LB: loop body
LE: loop exit
PB: predicated region body
PF: predicated region fallthrough
CT: control target
= control target key end

     0   :  { %v3041_v3 = vmov 0.0   ;;  %vm191_vm0 = vcmask 523264   ;;  %vm50_vm1 = vcmask 64512   ;;  %vm47_vm2 = vcmask 57344   ;;  %s5183_s2 = inlined_call_operand.vmem [shape: f32[64,1024], index: 2, kind: input, shape index: {}]   ;;  %s5184_s0 = inlined_call_operand.vmem [shape: f32[16,64], index: 0, kind: input, shape index: {}]   ;;  %s5185_s6 = inlined_call_operand.vmem [shape: f32[512,256], index: 6, kind: input, shape index: {}]   ;;  %s5186_s1 = inlined_call_operand.vmem [shape: s32[16,1], index: 1, kind: input, shape index: {}]   ;;  %s5187_s5 = inlined_call_operand.<no memory space> [shape: f32[1,1], index: 5, kind: input, shape index: {}]   ;;  %s5188_s3 = inlined_call_operand.vmem [shape: f32[1,1024], index: 3, kind: input, shape index: {}]   ;;  %s5189_s4 = inlined_call_operand.vmem [shape: f32[1,512], index: 4, kind: input, shape index: {}]   ;;  %s5190_s7 = inlined_call_operand.vmem [shape: f32[1,256], index: 7, kind: input, shape index: {}]   ;;  %s5191_s8 = inlined_call_operand.vmem [shape: f32[256,1024], index: 8, kind: input, shape index: {}]   ;;  %s5192_s10 = inlined_call_operand.vmem [shape: f32[1024,7], index: 10, kind: input, shape index: {}]   ;;  %s5193_s9 = inlined_call_operand.vmem [shape: f32[1,1024], index: 9, kind: input, shape index: {}]   ;;  %s5194_s11 = inlined_call_operand.vmem [shape: f32[1,7], index: 11, kind: input, shape index: {}]   ;;  %s5195_s12 = inlined_call_operand.vmem [shape: f32[8,7], index: 12, kind: output, shape index: {}]  }
   0x1   :  { %v142_v0 = vld [vmem:[%s5183_s2 + $0x1c8] sm:$0xff]  ;;  %v144_v1 = vld [vmem:[%s5183_s2 + $0x1d8] sm:$0xff]  ;;  %v141_v2 = vld [vmem:[%s5183_s2 + $0x1c0] sm:$0xff]  ;;  %262 = vmatprep.mubr.f32.mxu0 %v3041_v3  ;;  %339 = vmatprep.mubr.f32.mxu1 %v3041_v3  ;;  %51 = vst.msk [vmem:[#allocation4] sm:$0xff] %vm50_vm1, %v3041_v3  ;;  %vm1070_vm5 = vcmask 130048   ;;  %vm2675_vm7 = vcmask 56320  }
   0x2   :  { %214 = vmatprep.subr.mxu0 %v142_v0  ;;  %291 = vmatprep.subr.mxu1 %v144_v1  ;;  %v143_v4 = vld [vmem:[%s5183_s2 + $0x1d0] sm:$0xff]  ;;  %v134_v5 = vld [vmem:[%s5183_s2 + $0x188] sm:$0xff]  ;;  %v136_v6 = vld [vmem:[%s5183_s2 + $0x198] sm:$0xff]  ;;  %52 = vst.msk [vmem:[#allocation4 + $0x8] sm:$0xff] %vm50_vm1, %v3041_v3 }
   0x3   :  { %215 = vmatpush1.msra.mxu0 %v141_v2  ;;  %292 = vmatpush1.msra.mxu1 %v143_v4  ;;  %v133_v7 = vld [vmem:[%s5183_s2 + $0x180] sm:$0xff]  ;;  %v135_v8 = vld [vmem:[%s5183_s2 + $0x190] sm:$0xff]  ;;  %v126_v9 = vld [vmem:[%s5183_s2 + $0x148] sm:$0xff]  ;;  %53 = vst.msk [vmem:[#allocation4 + $0x10] sm:$0xff] %vm50_vm1, %v3041_v3 }
   0x4   :  { %216 = vmatprep.subr.mxu0 %v134_v5  ;;  %293 = vmatprep.subr.mxu1 %v136_v6  ;;  %v128_v10 = vld [vmem:[%s5183_s2 + $0x158] sm:$0xff]  ;;  %v125_v11 = vld [vmem:[%s5183_s2 + $0x140] sm:$0xff]  ;;  %v127_v12 = vld [vmem:[%s5183_s2 + $0x150] sm:$0xff]  ;;  %54 = vst.msk [vmem:[#allocation4 + $0x18] sm:$0xff] %vm50_vm1, %v3041_v3 }
   0x5   :  { %217 = vmatpush1.msra.mxu0 %v133_v7  ;;  %294 = vmatpush1.msra.mxu1 %v135_v8  ;;  %v118_v13 = vld [vmem:[%s5183_s2 + $0x108] sm:$0xff]  ;;  %v120_v14 = vld [vmem:[%s5183_s2 + $0x118] sm:$0xff]  ;;  %v117_v15 = vld [vmem:[%s5183_s2 + $0x100] sm:$0xff]  ;;  %55 = vst.msk [vmem:[#allocation4 + $0x20] sm:$0xff] %vm50_vm1, %v3041_v3 }
   0x6   :  { %218 = vmatprep.subr.mxu0 %v126_v9  ;;  %295 = vmatprep.subr.mxu1 %v128_v10  ;;  %v119_v16 = vld [vmem:[%s5183_s2 + $0x110] sm:$0xff]  ;;  %v110_v17 = vld [vmem:[%s5183_s2 + $0xc8] sm:$0xff]  ;;  %v112_v18 = vld [vmem:[%s5183_s2 + $0xd8] sm:$0xff]  ;;  %56 = vst.msk [vmem:[#allocation4 + $0x28] sm:$0xff] %vm50_vm1, %v3041_v3 }
   0x7   :  { %219 = vmatpush1.msra.mxu0 %v125_v11  ;;  %296 = vmatpush1.msra.mxu1 %v127_v12  ;;  %v109_v19 = vld [vmem:[%s5183_s2 + $0xc0] sm:$0xff]  ;;  %v111_v20 = vld [vmem:[%s5183_s2 + $0xd0] sm:$0xff]  ;;  %v102_v21 = vld [vmem:[%s5183_s2 + $0x88] sm:$0xff]  ;;  %57 = vst.msk [vmem:[#allocation4 + $0x30] sm:$0xff] %vm50_vm1, %v3041_v3 }
   0x8   :  { %220 = vmatprep.subr.mxu0 %v118_v13  ;;  %297 = vmatprep.subr.mxu1 %v120_v14  ;;  %v104_v22 = vld [vmem:[%s5183_s2 + $0x98] sm:$0xff]  ;;  %v101_v23 = vld [vmem:[%s5183_s2 + $0x80] sm:$0xff]  ;;  %v103_v24 = vld [vmem:[%s5183_s2 + $0x90] sm:$0xff]  ;;  %58 = vst.msk [vmem:[#allocation4 + $0x38] sm:$0xff] %vm50_vm1, %v3041_v3 }
   0x9   :  { %221 = vmatpush1.msra.mxu0 %v117_v15  ;;  %298 = vmatpush1.msra.mxu1 %v119_v16  ;;  %v94_v25 = vld [vmem:[%s5183_s2 + $0x48] sm:$0xff]  ;;  %v96_v26 = vld [vmem:[%s5183_s2 + $0x58] sm:$0xff]  ;;  %v93_v27 = vld [vmem:[%s5183_s2 + $0x40] sm:$0xff]  ;;  %59 = vst.msk [vmem:[#allocation4 + $0x40] sm:$0xff] %vm50_vm1, %v3041_v3 }
   0xa   :  { %222 = vmatprep.subr.mxu0 %v110_v17  ;;  %299 = vmatprep.subr.mxu1 %v112_v18  ;;  %v95_v28 = vld [vmem:[%s5183_s2 + $0x50] sm:$0xff]  ;;  %v86_v29 = vld [vmem:[%s5183_s2 + $0x8] sm:$0xff]  ;;  %v88_v30 = vld [vmem:[%s5183_s2 + $0x18] sm:$0xff]  ;;  %60 = vst.msk [vmem:[#allocation4 + $0x48] sm:$0xff] %vm50_vm1, %v3041_v3 }
   0xb   :  { %223 = vmatpush1.msra.mxu0 %v109_v19  ;;  %300 = vmatpush1.msra.mxu1 %v111_v20  ;;  %v85_v31 = vld [vmem:[%s5183_s2] sm:$0xff]  ;;  %v87_v32 = vld [vmem:[%s5183_s2 + $0x10] sm:$0xff]  ;;  %v146_v34 = vld [vmem:[%s5183_s2 + $0x1e8] sm:$0xff]  ;;  %61 = vst.msk [vmem:[#allocation4 + $0x50] sm:$0xff] %vm50_vm1, %v3041_v3 }
   0xc   :  { %224 = vmatprep.subr.mxu0 %v102_v21  ;;  %301 = vmatprep.subr.mxu1 %v104_v22  ;;  %v3210_v33 = vld [vmem:[%s5184_s0] sm:$0xff]  ;;  %v148_v35 = vld [vmem:[%s5183_s2 + $0x1f8] sm:$0xff]  ;;  %v147_v37 = vld [vmem:[%s5183_s2 + $0x1f0] sm:$0xff]  ;;  %62 = vst.msk [vmem:[#allocation4 + $0x58] sm:$0xff] %vm50_vm1, %v3041_v3 }
   0xd   :  { %225 = vmatpush1.msra.mxu0 %v101_v23  ;;  %302 = vmatpush1.msra.mxu1 %v103_v24  ;;  %v145_v36 = vld [vmem:[%s5183_s2 + $0x1e0] sm:$0xff]  ;;  %v138_v38 = vld [vmem:[%s5183_s2 + $0x1a8] sm:$0xff]  ;;  %v140_v39 = vld [vmem:[%s5183_s2 + $0x1b8] sm:$0xff]  ;;  %63 = vst.msk [vmem:[#allocation4 + $0x60] sm:$0xff] %vm50_vm1, %v3041_v3 }
   0xe   :  { %226 = vmatprep.subr.mxu0 %v94_v25  ;;  %303 = vmatprep.subr.mxu1 %v96_v26  ;;  %v137_v40 = vld [vmem:[%s5183_s2 + $0x1a0] sm:$0xff]  ;;  %v139_v41 = vld [vmem:[%s5183_s2 + $0x1b0] sm:$0xff]  ;;  %v3243_v42 = vld [vmem:[%s5184_s0 + $0x8] sm:$0xff]  ;;  %64 = vst.msk [vmem:[#allocation4 + $0x68] sm:$0xff] %vm50_vm1, %v3041_v3 }
   0xf   :  { %227 = vmatpush1.msra.mxu0 %v93_v27  ;;  %304 = vmatpush1.msra.mxu1 %v95_v28  ;;  %v130_v43 = vld [vmem:[%s5183_s2 + $0x168] sm:$0xff]  ;;  %v132_v44 = vld [vmem:[%s5183_s2 + $0x178] sm:$0xff]  ;;  %v129_v45 = vld [vmem:[%s5183_s2 + $0x160] sm:$0xff]  ;;  %65 = vst.msk [vmem:[#allocation4 + $0x70] sm:$0xff] %vm50_vm1, %v3041_v3 }
  0x10   :  { %228 = vmatprep.subr.mxu0 %v86_v29  ;;  %305 = vmatprep.subr.mxu1 %v88_v30  ;;  %v131_v46 = vld [vmem:[%s5183_s2 + $0x170] sm:$0xff]  ;;  %v122_v47 = vld [vmem:[%s5183_s2 + $0x128] sm:$0xff]  ;;  %v124_v48 = vld [vmem:[%s5183_s2 + $0x138] sm:$0xff]  ;;  %66 = vst.msk [vmem:[#allocation4 + $0x78] sm:$0xff] %vm50_vm1, %v3041_v3 }
  0x11   :  { %229 = vmatpush1.msra.mxu0 %v85_v31  ;;  %306 = vmatpush1.msra.mxu1 %v87_v32  ;;  %v121_v49 = vld [vmem:[%s5183_s2 + $0x120] sm:$0xff]  ;;  %v123_v50 = vld [vmem:[%s5183_s2 + $0x130] sm:$0xff]  ;;  %v114_v51 = vld [vmem:[%s5183_s2 + $0xe8] sm:$0xff]  ;;  %67 = vst.msk [vmem:[#allocation4 + $0x80] sm:$0xff] %vm50_vm1, %v3041_v3 }
  0x12   :  { %2681 = vmatmul.mubr.msk.f32.vlgmr.msra.gmra.mxu0 %vm191_vm0, %v3210_v33  ;;  %368 = vmatprep.subr.mxu0 %v146_v34  ;;  %v116_v52 = vld [vmem:[%s5183_s2 + $0xf8] sm:$0xff]  ;;  %v113_v53 = vld [vmem:[%s5183_s2 + $0xe0] sm:$0xff]  ;;  %v115_v54 = vld [vmem:[%s5183_s2 + $0xf0] sm:$0xff]  ;;  %68 = vst.msk [vmem:[#allocation4 + $0x88] sm:$0xff] %vm50_vm1, %v3041_v3 }
  0x13   :  { %445 = vmatprep.subr.mxu1 %v148_v35  ;;  %2683 = vmatmul.mubr.msk.f32.vlgmr.msra.gmra.mxu1 %vm191_vm0, %v3210_v33  ;;  %v106_v55 = vld [vmem:[%s5183_s2 + $0xa8] sm:$0xff]  ;;  %v108_v56 = vld [vmem:[%s5183_s2 + $0xb8] sm:$0xff]  ;;  %v105_v57 = vld [vmem:[%s5183_s2 + $0xa0] sm:$0xff]  ;;  %69 = vst.msk [vmem:[#allocation4 + $0x90] sm:$0xff] %vm50_vm1, %v3041_v3 }
  0x14   :  { %369 = vmatpush1.msra.mxu0 %v145_v36  ;;  %446 = vmatpush1.msra.mxu1 %v147_v37  ;;  %v107_v58 = vld [vmem:[%s5183_s2 + $0xb0] sm:$0xff]  ;;  %v98_v59 = vld [vmem:[%s5183_s2 + $0x68] sm:$0xff]  ;;  %v100_v60 = vld [vmem:[%s5183_s2 + $0x78] sm:$0xff]  ;;  %70 = vst.msk [vmem:[#allocation4 + $0x98] sm:$0xff] %vm50_vm1, %v3041_v3 }
  0x15   :  { %370 = vmatprep.subr.mxu0 %v138_v38  ;;  %447 = vmatprep.subr.mxu1 %v140_v39  ;;  %v97_v61 = vld [vmem:[%s5183_s2 + $0x60] sm:$0xff]  ;;  %v99_v62 = vld [vmem:[%s5183_s2 + $0x70] sm:$0xff]  ;;  %v90_v63 = vld [vmem:[%s5183_s2 + $0x28] sm:$0xff]  ;;  %71 = vst.msk [vmem:[#allocation4 + $0xa0] sm:$0xff] %vm50_vm1, %v3041_v3 }
  0x16   :  { %268 = vmatprep.mubr.f32.mxu0 %v3041_v3  ;;  %371 = vmatpush1.msra.mxu0 %v137_v40  ;;  %v92_v0 = vld [vmem:[%s5183_s2 + $0x38] sm:$0xff]  ;;  %v89_v1 = vld [vmem:[%s5183_s2 + $0x20] sm:$0xff]  ;;  %v91_v2 = vld [vmem:[%s5183_s2 + $0x30] sm:$0xff]  ;;  %72 = vst.msk [vmem:[#allocation4 + $0xa8] sm:$0xff] %vm50_vm1, %v3041_v3 }
  0x17   :  { %448 = vmatpush1.msra.mxu1 %v139_v41  ;;  %2682 = vmatmul.mubr.msk.f32.gmra.mxu0 %vm191_vm0, %v3243_v42  ;;  %v602_v4 = vld [vmem:[%s5185_s6 + $0xf8] sm:$0xff]  ;;  %v601_v6 = vld [vmem:[%s5185_s6 + $0xf0] sm:$0xff]  ;;  %v600_v8 = vld [vmem:[%s5185_s6 + $0xe8] sm:$0xff]  ;;  %73 = vst.msk [vmem:[#allocation4 + $0xb0] sm:$0xff] %vm50_vm1, %v3041_v3 }
  0x18   :  { %372 = vmatprep.subr.mxu0 %v130_v43  ;;  %449 = vmatprep.subr.mxu1 %v132_v44  ;;  %v666_v5 = vld [vmem:[%s5185_s6 + $0x2f8] sm:$0xff]  ;;  %v665_v7 = vld [vmem:[%s5185_s6 + $0x2f0] sm:$0xff]  ;;  %v664_v9 = vld [vmem:[%s5185_s6 + $0x2e8] sm:$0xff]  ;;  %74 = vst.msk [vmem:[#allocation4 + $0xb8] sm:$0xff] %vm50_vm1, %v3041_v3 }
  0x19   :  { %373 = vmatpush1.msra.mxu0 %v129_v45  ;;  %450 = vmatpush1.msra.mxu1 %v131_v46  ;;  %v599_v10 = vld [vmem:[%s5185_s6 + $0xe0] sm:$0xff]  ;;  %v598_v12 = vld [vmem:[%s5185_s6 + $0xd8] sm:$0xff]  ;;  %v597_v14 = vld [vmem:[%s5185_s6 + $0xd0] sm:$0xff]  ;;  %75 = vst.msk [vmem:[#allocation4 + $0xc0] sm:$0xff] %vm50_vm1, %v3041_v3 }
  0x1a   :  { %374 = vmatprep.subr.mxu0 %v122_v47  ;;  %451 = vmatprep.subr.mxu1 %v124_v48  ;;  %v663_v11 = vld [vmem:[%s5185_s6 + $0x2e0] sm:$0xff]  ;;  %v662_v13 = vld [vmem:[%s5185_s6 + $0x2d8] sm:$0xff]  ;;  %v661_v15 = vld [vmem:[%s5185_s6 + $0x2d0] sm:$0xff]  ;;  %76 = vst.msk [vmem:[#allocation4 + $0xc8] sm:$0xff] %vm50_vm1, %v3041_v3 }
  0x1b   :  { %345 = vmatprep.mubr.f32.mxu1 %v3041_v3  ;;  %375 = vmatpush1.msra.mxu0 %v121_v49  ;;  %v596_v16 = vld [vmem:[%s5185_s6 + $0xc8] sm:$0xff]  ;;  %v595_v18 = vld [vmem:[%s5185_s6 + $0xc0] sm:$0xff]  ;;  %v594_v20 = vld [vmem:[%s5185_s6 + $0xb8] sm:$0xff]  ;;  %77 = vst.msk [vmem:[#allocation4 + $0xd0] sm:$0xff] %vm50_vm1, %v3041_v3 }
  0x1c   :  { %452 = vmatpush1.msra.mxu1 %v123_v50  ;;  %376 = vmatprep.subr.mxu0 %v114_v51  ;;  %v660_v17 = vld [vmem:[%s5185_s6 + $0x2c8] sm:$0xff]  ;;  %v659_v19 = vld [vmem:[%s5185_s6 + $0x2c0] sm:$0xff]  ;;  %v658_v21 = vld [vmem:[%s5185_s6 + $0x2b8] sm:$0xff]  ;;  %78 = vst.msk [vmem:[#allocation4 + $0xd8] sm:$0xff] %vm50_vm1, %v3041_v3 }
  0x1d   :  { %2684 = vmatmul.mubr.msk.f32.gmra.mxu1 %vm191_vm0, %v3243_v42  ;;  %453 = vmatprep.subr.mxu1 %v116_v52  ;;  %v593_v22 = vld [vmem:[%s5185_s6 + $0xb0] sm:$0xff]  ;;  %v592_v24 = vld [vmem:[%s5185_s6 + $0xa8] sm:$0xff]  ;;  %v591_v26 = vld [vmem:[%s5185_s6 + $0xa0] sm:$0xff]  ;;  %79 = vst.msk [vmem:[#allocation4 + $0xe0] sm:$0xff] %vm50_vm1, %v3041_v3 }
  0x1e   :  { %377 = vmatpush1.msra.mxu0 %v113_v53  ;;  %454 = vmatpush1.msra.mxu1 %v115_v54  ;;  %v657_v23 = vld [vmem:[%s5185_s6 + $0x2b0] sm:$0xff]  ;;  %v656_v25 = vld [vmem:[%s5185_s6 + $0x2a8] sm:$0xff]  ;;  %v655_v27 = vld [vmem:[%s5185_s6 + $0x2a0] sm:$0xff]  ;;  %80 = vst.msk [vmem:[#allocation4 + $0xe8] sm:$0xff] %vm50_vm1, %v3041_v3 }
  0x1f   :  { %378 = vmatprep.subr.mxu0 %v106_v55  ;;  %455 = vmatprep.subr.mxu1 %v108_v56  ;;  %v590_v28 = vld [vmem:[%s5185_s6 + $0x98] sm:$0xff]  ;;  %v589_v30 = vld [vmem:[%s5185_s6 + $0x90] sm:$0xff]  ;;  %v588_v32 = vld [vmem:[%s5185_s6 + $0x88] sm:$0xff]  ;;  %81 = vst.msk [vmem:[#allocation4 + $0xf0] sm:$0xff] %vm50_vm1, %v3041_v3 }
  0x20   :  { %379 = vmatpush1.msra.mxu0 %v105_v57  ;;  %456 = vmatpush1.msra.mxu1 %v107_v58  ;;  %v654_v29 = vld [vmem:[%s5185_s6 + $0x298] sm:$0xff]  ;;  %v653_v31 = vld [vmem:[%s5185_s6 + $0x290] sm:$0xff]  ;;  %v587_v34 = vld [vmem:[%s5185_s6 + $0x80] sm:$0xff]  ;;  %82 = vst.msk [vmem:[#allocation4 + $0xf8] sm:$0xff] %vm50_vm1, %v3041_v3 }
  0x21   :  { %380 = vmatprep.subr.mxu0 %v98_v59  ;;  %457 = vmatprep.subr.mxu1 %v100_v60  ;;  %v651_v35 = vld [vmem:[%s5185_s6 + $0x280] sm:$0xff]  ;;  %v586_v36 = vld [vmem:[%s5185_s6 + $0x78] sm:$0xff]  ;;  %v585_v38 = vld [vmem:[%s5185_s6 + $0x70] sm:$0xff]  ;;  %49 = vst.msk [vmem:[#allocation3] sm:$0x1] %vm47_vm2, %v3041_v3 }
  0x22   :  { %381 = vmatpush1.msra.mxu0 %v97_v61  ;;  %458 = vmatpush1.msra.mxu1 %v99_v62  ;;  %v650_v37 = vld [vmem:[%s5185_s6 + $0x278] sm:$0xff]  ;;  %v649_v39 = vld [vmem:[%s5185_s6 + $0x270] sm:$0xff]  ;;  %v584_v40 = vld [vmem:[%s5185_s6 + $0x68] sm:$0xff] }
  0x23   :  { %382 = vmatprep.subr.mxu0 %v90_v63  ;;  %459 = vmatprep.subr.mxu1 %v92_v0  ;;  %v648_v41 = vld [vmem:[%s5185_s6 + $0x268] sm:$0xff]  ;;  %v647_v43 = vld [vmem:[%s5185_s6 + $0x260] sm:$0xff]  ;;  %v582_v44 = vld [vmem:[%s5185_s6 + $0x58] sm:$0xff] }
  0x24   :  { %383 = vmatpush1.msra.mxu0 %v89_v1  ;;  %416 = vmatprep.mubr.f32.mxu0 %v3041_v3  ;;  %v646_v45 = vld [vmem:[%s5185_s6 + $0x258] sm:$0xff]  ;;  %v581_v46 = vld [vmem:[%s5185_s6 + $0x50] sm:$0xff]  ;;  %v580_v48 = vld [vmem:[%s5185_s6 + $0x48] sm:$0xff] }
  0x25   :  { %460 = vmatpush1.msra.mxu1 %v91_v2  ;;  %493 = vmatprep.mubr.f32.mxu1 %v3041_v3  ;;  %v645_v47 = vld [vmem:[%s5185_s6 + $0x250] sm:$0xff]  ;;  %v644_v49 = vld [vmem:[%s5185_s6 + $0x248] sm:$0xff]  ;;  %v579_v50 = vld [vmem:[%s5185_s6 + $0x40] sm:$0xff] }
  0x26   :  { %2685 = vmatmul.mubr.msk.f32.vlgmr.msra.gmra.mxu0 %vm191_vm0, %v3210_v33  ;;  %2687 = vmatmul.mubr.msk.f32.vlgmr.msra.gmra.mxu1 %vm191_vm0, %v3210_v33  ;;  %v652_v33 = vld [vmem:[%s5185_s6 + $0x288] sm:$0xff]  ;;  %v643_v51 = vld [vmem:[%s5185_s6 + $0x240] sm:$0xff]  ;;  %v578_v52 = vld [vmem:[%s5185_s6 + $0x38] sm:$0xff] }
  0x27   :  { %422 = vmatprep.mubr.f32.mxu0 %v3041_v3  ;;  %499 = vmatprep.mubr.f32.mxu1 %v3041_v3  ;;  %v642_v53 = vld [vmem:[%s5185_s6 + $0x238] sm:$0xff]  ;;  %v577_v54 = vld [vmem:[%s5185_s6 + $0x30] sm:$0xff]  ;;  %v576_v56 = vld [vmem:[%s5185_s6 + $0x28] sm:$0xff] }
  0x28   :  { %711 = vmatprep.subr.mxu0 %v602_v4  ;;  %788 = vmatprep.subr.mxu1 %v666_v5  ;;  %v641_v55 = vld [vmem:[%s5185_s6 + $0x230] sm:$0xff]  ;;  %v640_v57 = vld [vmem:[%s5185_s6 + $0x228] sm:$0xff]  ;;  %v575_v58 = vld [vmem:[%s5185_s6 + $0x20] sm:$0xff] }
  0x29   :  { %712 = vmatpush1.msra.mxu0 %v601_v6  ;;  %789 = vmatpush1.msra.mxu1 %v665_v7  ;;  %v639_v59 = vld [vmem:[%s5185_s6 + $0x220] sm:$0xff]  ;;  %v574_v60 = vld [vmem:[%s5185_s6 + $0x18] sm:$0xff]  ;;  %v573_v62 = vld [vmem:[%s5185_s6 + $0x10] sm:$0xff] }
  0x2a   :  { %2686 = vmatmul.mubr.msk.f32.gmra.mxu0 %vm191_vm0, %v3243_v42  ;;  %2688 = vmatmul.mubr.msk.f32.gmra.mxu1 %vm191_vm0, %v3243_v42  ;;  %v583_v42 = vld [vmem:[%s5185_s6 + $0x60] sm:$0xff]  ;;  %v638_v61 = vld [vmem:[%s5185_s6 + $0x218] sm:$0xff]  ;;  %v637_v63 = vld [vmem:[%s5185_s6 + $0x210] sm:$0xff] }
  0x2b   :  { %713 = vmatprep.subr.mxu0 %v600_v8  ;;  %790 = vmatprep.subr.mxu1 %v664_v9  ;;  %v572_v0 = vld [vmem:[%s5185_s6 + $0x8] sm:$0xff]  ;;  %v571_v2 = vld [vmem:[%s5185_s6] sm:$0xff]  ;;  %v634_v5 = vld [vmem:[%s5185_s6 + $0x1f8] sm:$0xff] }
  0x2c   :  { %714 = vmatpush1.msra.mxu0 %v599_v10  ;;  %791 = vmatpush1.msra.mxu1 %v663_v11  ;;  %v636_v1 = vld [vmem:[%s5185_s6 + $0x208] sm:$0xff]  ;;  %v635_v4 = vld [vmem:[%s5185_s6 + $0x200] sm:$0xff]  ;;  %v698_v6 = vld [vmem:[%s5185_s6 + $0x3f8] sm:$0xff] }
  0x2d   :  { %715 = vmatprep.subr.mxu0 %v598_v12  ;;  %792 = vmatprep.subr.mxu1 %v662_v13  ;;  %v633_v7 = vld [vmem:[%s5185_s6 + $0x1f0] sm:$0xff]  ;;  %v632_v9 = vld [vmem:[%s5185_s6 + $0x1e8] sm:$0xff]  ;;  %v631_v11 = vld [vmem:[%s5185_s6 + $0x1e0] sm:$0xff] }
  0x2e   :  { %716 = vmatpush1.msra.mxu0 %v597_v14  ;;  %793 = vmatpush1.msra.mxu1 %v661_v15  ;;  %v697_v8 = vld [vmem:[%s5185_s6 + $0x3f0] sm:$0xff]  ;;  %v696_v10 = vld [vmem:[%s5185_s6 + $0x3e8] sm:$0xff]  ;;  %v695_v12 = vld [vmem:[%s5185_s6 + $0x3e0] sm:$0xff] }
  0x2f   :  { %717 = vmatprep.subr.mxu0 %v596_v16  ;;  %794 = vmatprep.subr.mxu1 %v660_v17  ;;  %v630_v13 = vld [vmem:[%s5185_s6 + $0x1d8] sm:$0xff]  ;;  %v629_v15 = vld [vmem:[%s5185_s6 + $0x1d0] sm:$0xff]  ;;  %v628_v17 = vld [vmem:[%s5185_s6 + $0x1c8] sm:$0xff] }
  0x30   :  { %718 = vmatpush1.msra.mxu0 %v595_v18  ;;  %795 = vmatpush1.msra.mxu1 %v659_v19  ;;  %v694_v14 = vld [vmem:[%s5185_s6 + $0x3d8] sm:$0xff]  ;;  %v693_v16 = vld [vmem:[%s5185_s6 + $0x3d0] sm:$0xff]  ;;  %v692_v18 = vld [vmem:[%s5185_s6 + $0x3c8] sm:$0xff] }
  0x31   :  { %719 = vmatprep.subr.mxu0 %v594_v20  ;;  %796 = vmatprep.subr.mxu1 %v658_v21  ;;  %v627_v19 = vld [vmem:[%s5185_s6 + $0x1c0] sm:$0xff]  ;;  %v626_v21 = vld [vmem:[%s5185_s6 + $0x1b8] sm:$0xff] }
  0x32   :  { %720 = vmatpush1.msra.mxu0 %v593_v22  ;;  %797 = vmatpush1.msra.mxu1 %v657_v23  ;;  %v691_v20 = vld [vmem:[%s5185_s6 + $0x3c0] sm:$0xff]  ;;  %v690_v22 = vld [vmem:[%s5185_s6 + $0x3b8] sm:$0xff]  ;;  %v625_v23 = vld [vmem:[%s5185_s6 + $0x1b0] sm:$0xff] }
  0x33   :  { %721 = vmatprep.subr.mxu0 %v592_v24  ;;  %798 = vmatprep.subr.mxu1 %v656_v25  ;;  %v689_v24 = vld [vmem:[%s5185_s6 + $0x3b0] sm:$0xff]  ;;  %v624_v25 = vld [vmem:[%s5185_s6 + $0x1a8] sm:$0xff] }
  0x34   :  { %722 = vmatpush1.msra.mxu0 %v591_v26  ;;  %799 = vmatpush1.msra.mxu1 %v655_v27  ;;  %v688_v26 = vld [vmem:[%s5185_s6 + $0x3a8] sm:$0xff]  ;;  %v623_v27 = vld [vmem:[%s5185_s6 + $0x1a0] sm:$0xff] }
  0x35   :  { %723 = vmatprep.subr.mxu0 %v590_v28  ;;  %800 = vmatprep.subr.mxu1 %v654_v29  ;;  %v687_v28 = vld [vmem:[%s5185_s6 + $0x3a0] sm:$0xff]  ;;  %v622_v29 = vld [vmem:[%s5185_s6 + $0x198] sm:$0xff] }
  0x36   :  { %724 = vmatpush1.msra.mxu0 %v589_v30  ;;  %801 = vmatpush1.msra.mxu1 %v653_v31  ;;  %v686_v30 = vld [vmem:[%s5185_s6 + $0x398] sm:$0xff]  ;;  %v621_v31 = vld [vmem:[%s5185_s6 + $0x190] sm:$0xff] }
  0x37   :  { %725 = vmatprep.subr.mxu0 %v588_v32  ;;  %802 = vmatprep.subr.mxu1 %v652_v33  ;;  %v685_v32 = vld [vmem:[%s5185_s6 + $0x390] sm:$0xff]  ;;  %v620_v33 = vld [vmem:[%s5185_s6 + $0x188] sm:$0xff] }
  0x38   :  { %726 = vmatpush1.msra.mxu0 %v587_v34  ;;  %803 = vmatpush1.msra.mxu1 %v651_v35  ;;  %v684_v34 = vld [vmem:[%s5185_s6 + $0x388] sm:$0xff]  ;;  %v619_v35 = vld [vmem:[%s5185_s6 + $0x180] sm:$0xff] }
  0x39   :  { %727 = vmatprep.subr.mxu0 %v586_v36  ;;  %804 = vmatprep.subr.mxu1 %v650_v37  ;;  %v683_v36 = vld [vmem:[%s5185_s6 + $0x380] sm:$0xff]  ;;  %v618_v37 = vld [vmem:[%s5185_s6 + $0x178] sm:$0xff] }
  0x3a   :  { %728 = vmatpush1.msra.mxu0 %v585_v38  ;;  %805 = vmatpush1.msra.mxu1 %v649_v39  ;;  %v682_v38 = vld [vmem:[%s5185_s6 + $0x378] sm:$0xff]  ;;  %v617_v39 = vld [vmem:[%s5185_s6 + $0x170] sm:$0xff] }
  0x3b   :  { %729 = vmatprep.subr.mxu0 %v584_v40  ;;  %806 = vmatprep.subr.mxu1 %v648_v41  ;;  %v681_v40 = vld [vmem:[%s5185_s6 + $0x370] sm:$0xff]  ;;  %v616_v41 = vld [vmem:[%s5185_s6 + $0x168] sm:$0xff] }
  0x3c   :  { %730 = vmatpush1.msra.mxu0 %v583_v42  ;;  %807 = vmatpush1.msra.mxu1 %v647_v43  ;;  %v680_v42 = vld [vmem:[%s5185_s6 + $0x368] sm:$0xff]  ;;  %v615_v43 = vld [vmem:[%s5185_s6 + $0x160] sm:$0xff] }
  0x3d   :  { %731 = vmatprep.subr.mxu0 %v582_v44  ;;  %808 = vmatprep.subr.mxu1 %v646_v45  ;;  %v679_v44 = vld [vmem:[%s5185_s6 + $0x360] sm:$0xff]  ;;  %v614_v45 = vld [vmem:[%s5185_s6 + $0x158] sm:$0xff] }
  0x3e   :  { %732 = vmatpush1.msra.mxu0 %v581_v46  ;;  %809 = vmatpush1.msra.mxu1 %v645_v47  ;;  %v678_v46 = vld [vmem:[%s5185_s6 + $0x358] sm:$0xff]  ;;  %v613_v47 = vld [vmem:[%s5185_s6 + $0x150] sm:$0xff] }
  0x3f   :  { %733 = vmatprep.subr.mxu0 %v580_v48  ;;  %810 = vmatprep.subr.mxu1 %v644_v49  ;;  %v677_v48 = vld [vmem:[%s5185_s6 + $0x350] sm:$0xff]  ;;  %v612_v49 = vld [vmem:[%s5185_s6 + $0x148] sm:$0xff] }
  0x40   :  { %734 = vmatpush1.msra.mxu0 %v579_v50  ;;  %811 = vmatpush1.msra.mxu1 %v643_v51  ;;  %v676_v50 = vld [vmem:[%s5185_s6 + $0x348] sm:$0xff]  ;;  %v611_v51 = vld [vmem:[%s5185_s6 + $0x140] sm:$0xff] }
  0x41   :  { %735 = vmatprep.subr.mxu0 %v578_v52  ;;  %812 = vmatprep.subr.mxu1 %v642_v53  ;;  %v675_v52 = vld [vmem:[%s5185_s6 + $0x340] sm:$0xff]  ;;  %v610_v53 = vld [vmem:[%s5185_s6 + $0x138] sm:$0xff] }
  0x42   :  { %736 = vmatpush1.msra.mxu0 %v577_v54  ;;  %813 = vmatpush1.msra.mxu1 %v641_v55  ;;  %v674_v54 = vld [vmem:[%s5185_s6 + $0x338] sm:$0xff]  ;;  %v609_v55 = vld [vmem:[%s5185_s6 + $0x130] sm:$0xff] }
  0x43   :  { %737 = vmatprep.subr.mxu0 %v576_v56  ;;  %814 = vmatprep.subr.mxu1 %v640_v57  ;;  %v673_v56 = vld [vmem:[%s5185_s6 + $0x330] sm:$0xff]  ;;  %v608_v57 = vld [vmem:[%s5185_s6 + $0x128] sm:$0xff] }
  0x44   :  { %738 = vmatpush1.msra.mxu0 %v575_v58  ;;  %815 = vmatpush1.msra.mxu1 %v639_v59  ;;  %v672_v58 = vld [vmem:[%s5185_s6 + $0x328] sm:$0xff]  ;;  %v607_v59 = vld [vmem:[%s5185_s6 + $0x120] sm:$0xff] }
  0x45   :  { %739 = vmatprep.subr.mxu0 %v574_v60  ;;  %816 = vmatprep.subr.mxu1 %v638_v61  ;;  %v671_v60 = vld [vmem:[%s5185_s6 + $0x320] sm:$0xff]  ;;  %v606_v61 = vld [vmem:[%s5185_s6 + $0x118] sm:$0xff] }
  0x46   :  { %740 = vmatpush1.msra.mxu0 %v573_v62  ;;  %817 = vmatpush1.msra.mxu1 %v637_v63  ;;  %v670_v62 = vld [vmem:[%s5185_s6 + $0x318] sm:$0xff]  ;;  %v605_v63 = vld [vmem:[%s5185_s6 + $0x110] sm:$0xff] }
  0x47   :  { %741 = vmatprep.subr.mxu0 %v572_v0  ;;  %818 = vmatprep.subr.mxu1 %v636_v1  ;;  %v669_v0 = vld [vmem:[%s5185_s6 + $0x310] sm:$0xff]  ;;  %v604_v1 = vld [vmem:[%s5185_s6 + $0x108] sm:$0xff] }
  0x48   :  { %742 = vmatpush1.msra.mxu0 %v571_v2  ;;  %819 = vmatpush1.msra.mxu1 %v635_v4  ;;  %v668_v2 = vld [vmem:[%s5185_s6 + $0x308] sm:$0xff]  ;;  %v603_v4 = vld [vmem:[%s5185_s6 + $0x100] sm:$0xff] }
  0x49   :  { %743 = vmatprep.subr.mxu0 %v634_v5  ;;  %820 = vmatprep.subr.mxu1 %v698_v6  ;;  %v667_v5 = vld [vmem:[%s5185_s6 + $0x300] sm:$0xff]  ;;  %v3042_v6 = vmov 0  }
  0x4a   :  { %744 = vmatpush2.msra.mxu0 %v633_v7  ;;  %821 = vmatpush2.msra.mxu1 %v697_v8  ;;  %v867_v7 = vld [vmem:[%s5186_s1] sm:$0xff]  ;;  %v17_v8 = vstv %s5187_s5 }
  0x4b   :  { %745 = vmatprep.subr.mxu0 %v632_v9  ;;  %822 = vmatprep.subr.mxu1 %v696_v10  ;;  %18 = vst [vmem:[#allocation5] sm:$0x1] %v17_v8  ;;  %v151_v9 = vlaneseq }
  0x4c   :  { %746 = vmatpush2.msra.mxu0 %v631_v11  ;;  %823 = vmatpush2.msra.mxu1 %v695_v12  ;;  %v149_v12 = vld [vmem:[%s5188_s3] sm:$0xff] }
  0x4d   :  { %747 = vmatprep.subr.mxu0 %v630_v13  ;;  %824 = vmatprep.subr.mxu1 %v694_v14  ;;  %v3726_v10 = vshrl.u32 %v151_v9, 7 }
  0x4e   :  { %748 = vmatpush2.msra.mxu0 %v629_v15  ;;  %825 = vmatpush2.msra.mxu1 %v693_v16 }
  0x4f   :  { %749 = vmatprep.subr.mxu0 %v628_v17  ;;  %826 = vmatprep.subr.mxu1 %v692_v18  ;;  %v3729_v11 = vsub.s32 0, %v3726_v10  ;;  %v3735_v13 = vsub.s32 2, %v3726_v10  ;;  %v3738_v14 = vsub.s32 1, %v3726_v10  ;;  %v3741_v15 = vsub.s32 3, %v3726_v10  ;;  %v522_v17 = vld [vmem:[%s5189_s4] sm:$0xf] }
  0x50   :  { %750 = vmatpush2.msra.mxu0 %v627_v19  ;;  %827 = vmatpush2.msra.mxu1 %v691_v20 }
  0x51   :  { %751 = vmatprep.subr.mxu0 %v626_v21  ;;  %828 = vmatprep.subr.mxu1 %v690_v22  ;;  %v154_v16 = vrot.slane %v149_v12, %v3729_v11  ;;  %v162_v18 = vrot.slane %v149_v12, %v3735_v13  ;;  %v158_v19 = vrot.slane %v149_v12, %v3738_v14 }
  0x52   :  { %752 = vmatpush2.msra.mxu0 %v625_v23  ;;  %829 = vmatpush2.msra.mxu1 %v689_v24  ;;  %v166_v21 = vrot.slane %v149_v12, %v3741_v15  ;;  %v527_v23 = vrot.slane %v522_v17, %v3729_v11 }
  0x53   :  { %753 = vmatprep.subr.mxu0 %v624_v25  ;;  %830 = vmatprep.subr.mxu1 %v688_v26 }
  0x54   :  { %754 = vmatpush2.msra.mxu0 %v623_v27  ;;  %831 = vmatpush2.msra.mxu1 %v687_v28  ;;  %v535_v28 = vrot.slane %v522_v17, %v3735_v13 }
  0x55   :  { %755 = vmatprep.subr.mxu0 %v622_v29  ;;  %832 = vmatprep.subr.mxu1 %v686_v30  ;;  %v531_v30 = vrot.slane %v522_v17, %v3738_v14 }
  0x56   :  { %756 = vmatpush2.msra.mxu0 %v621_v31  ;;  %833 = vmatpush2.msra.mxu1 %v685_v32 }
  0x57   :  { %757 = vmatprep.subr.mxu0 %v620_v33  ;;  %834 = vmatprep.subr.mxu1 %v684_v34 }
  0x58   :  { %758 = vmatpush2.msra.mxu0 %v619_v35  ;;  %835 = vmatpush2.msra.mxu1 %v683_v36 }
  0x59   :  { %759 = vmatprep.subr.mxu0 %v618_v37  ;;  %836 = vmatprep.subr.mxu1 %v682_v38 }
  0x5a   :  { %760 = vmatpush2.msra.mxu0 %v617_v39  ;;  %837 = vmatpush2.msra.mxu1 %v681_v40 }
  0x5b   :  { %761 = vmatprep.subr.mxu0 %v616_v41  ;;  %838 = vmatprep.subr.mxu1 %v680_v42  ;;  %v539_v42 = vrot.slane %v522_v17, %v3741_v15 }
  0x5c   :  { %762 = vmatpush2.msra.mxu0 %v615_v43  ;;  %839 = vmatpush2.msra.mxu1 %v679_v44 }
  0x5d   :  { %763 = vmatprep.subr.mxu0 %v614_v45  ;;  %840 = vmatprep.subr.mxu1 %v678_v46 }
  0x5e   :  { %764 = vmatpush2.msra.mxu0 %v613_v47  ;;  %841 = vmatpush2.msra.mxu1 %v677_v48 }
  0x5f   :  { %765 = vmatprep.subr.mxu0 %v612_v49  ;;  %842 = vmatprep.subr.mxu1 %v676_v50 }
  0x60   :  { %766 = vmatpush2.msra.mxu0 %v611_v51  ;;  %843 = vmatpush2.msra.mxu1 %v675_v52 }
  0x61   :  { %767 = vmatprep.subr.mxu0 %v610_v53  ;;  %844 = vmatprep.subr.mxu1 %v674_v54 }
  0x62   :  { %768 = vmatpush2.msra.mxu0 %v609_v55  ;;  %845 = vmatpush2.msra.mxu1 %v673_v56  ;;  %v177_v55 = vsub.s32 6, %v3726_v10 }
  0x63   :  { %769 = vmatprep.subr.mxu0 %v608_v57  ;;  %846 = vmatprep.subr.mxu1 %v672_v58 }
  0x64   :  { %770 = vmatpush2.msra.mxu0 %v607_v59  ;;  %847 = vmatpush2.msra.mxu1 %v671_v60  ;;  %v169_v59 = vsub.s32 4, %v3726_v10  ;;  %v173_v60 = vsub.s32 5, %v3726_v10 }
  0x65   :  { %771 = vmatprep.subr.mxu0 %v606_v61  ;;  %848 = vmatprep.subr.mxu1 %v670_v62  ;;  %v181_v61 = vsub.s32 7, %v3726_v10  ;;  %v2357_v10 = vld [vmem:[%s5192_s10 + $0x308] sm:$0xff] }
  0x66   :  { %772 = vmatpush2.msra.mxu0 %v605_v63  ;;  %849 = vmatpush2.msra.mxu1 %v669_v0  ;;  %v178_v0 = vrot.slane %v149_v12, %v177_v55 }
  0x67   :  { %773 = vmatprep.subr.mxu0 %v604_v1  ;;  %850 = vmatprep.subr.mxu1 %v668_v2  ;;  %v170_v2 = vrot.slane %v149_v12, %v169_v59 }
  0x68   :  { %774 = vmatpush2.msra.mxu0 %v603_v4  ;;  %851 = vmatpush2.msra.mxu1 %v667_v5  ;;  %v174_v5 = vrot.slane %v149_v12, %v173_v60 }
  0x69   :  { %2962 = vset.pattern.permute.xlu1 %v3042_v6  ;;  %2963 = vset.pattern.permute.xlu0 %v3042_v6  ;;  %v182_v6 = vrot.slane %v149_v12, %v181_v61  ;;  %v868_v12 = vld [vmem:[%s5186_s1 + $0x8] sm:$0xff] }
  0x6a   :  { %870 = vperm.xlu1 %2962, %v867_v7  }
  0x6e   :  { %873 = vperm.xlu1 %2962, %v868_v12  }
  0xd2   :  { %v264_v20 = vpop.f32.mrf.mxu0 }
  0xd3   :  { %v265_v22 = vadd.f32 %v264_v20, %v154_v16  ;;  %v341_v24 = vpop.f32.mrf.mxu1 }
  0xd4   :  { %v342_v25 = vadd.f32 %v341_v24, %v162_v18  ;;  %v266_v26 = vpop.f32.mrf.mxu0 }
  0xd5   :  { %v506_v27 = vmax.f32 %v265_v22, 0.0  ;;  %v267_v29 = vadd.f32 %v266_v26, %v158_v19  ;;  %v343_v31 = vpop.f32.mrf.mxu1 }
  0xd6   :  { %v508_v32 = vmax.f32 %v342_v25, 0.0  ;;  %v344_v33 = vadd.f32 %v343_v31, %v166_v21 }
  0xd7   :  { %v544_v34 = vmul.f32 %v527_v23, %v506_v27  ;;  %v507_v35 = vmax.f32 %v267_v29, 0.0  ;;  %v270_v36 = vpop.f32.mrf.mxu0 }
  0xd8   :  { %v271_v37 = vadd.f32 %v270_v36, %v154_v16  ;;  %v546_v38 = vmul.f32 %v535_v28, %v508_v32  ;;  %v509_v40 = vmax.f32 %v344_v33, 0.0 }
  0xd9   :  { %v545_v39 = vmul.f32 %v531_v30, %v507_v35  ;;  %v272_v41 = vpop.f32.mrf.mxu0 }
  0xda   :  { %v514_v43 = vmax.f32 %v271_v37, 0.0  ;;  %v273_v44 = vadd.f32 %v272_v41, %v158_v19  ;;  %v547_v49 = vmul.f32 %v539_v42, %v509_v40 }
  0xdb   :  { %v552_v45 = vadd.f32 %v545_v39, %v544_v34  ;;  %v2689_v39 = vld [vmem:[#allocation5] ss:$0 sm:$0xff] }
  0xdc   :  { %v548_v46 = vmul.f32 %v527_v23, %v514_v43  ;;  %v515_v47 = vmax.f32 %v273_v44, 0.0 }
  0xdd   :  { %v347_v48 = vpop.f32.mrf.mxu1  ;;  %v553_v50 = vadd.f32 %v552_v45, %v546_v38  ;;  %v699_v45 = vld [vmem:[%s5190_s7] sm:$0x3] }
  0xde   :  { %v549_v51 = vmul.f32 %v531_v30, %v515_v47  ;;  %v348_v52 = vadd.f32 %v347_v48, %v162_v18  ;;  %v708_v47 = vrot.slane %v699_v45, %v3738_v14 }
  0xdf   :  { %v349_v53 = vpop.f32.mrf.mxu1  ;;  %v554_v54 = vadd.f32 %v553_v50, %v547_v49 }
  0xe0   :  { %v557_v56 = vadd.f32 %v549_v51, %v548_v46  ;;  %v516_v57 = vmax.f32 %v348_v52, 0.0  ;;  %v350_v58 = vadd.f32 %v349_v53, %v166_v21  ;;  %v704_v46 = vrot.slane %v699_v45, %v3729_v11 }
  0xe1   :  { %555 = vadd.xlane.f32.xlu0 %v554_v54 }
  0xe2   :  { %v550_v62 = vmul.f32 %v535_v28, %v516_v57  ;;  %v517_v63 = vmax.f32 %v350_v58, 0.0 }
  0xe4   :  { %v551_v1 = vmul.f32 %v539_v42, %v517_v63  ;;  %v558_v4 = vadd.f32 %v557_v56, %v550_v62  ;;  %v3043_v42 = vmov -1e+30  }
  0xe5   :  { %48 = vst.msk [vmem:[#allocation2] sm:$0x1] %vm47_vm2, %v3043_v42 }
  0xe6   :  { %v418_v7 = vpop.f32.mrf.mxu0  ;;  %v495_v8 = vpop.f32.mrf.mxu1  ;;  %v559_v16 = vadd.f32 %v558_v4, %v551_v1 }
  0xe7   :  { %v496_v17 = vadd.f32 %v495_v8, %v178_v0  ;;  %v419_v18 = vadd.f32 %v418_v7, %v170_v2 }
  0xe8   :  { %v420_v19 = vpop.f32.mrf.mxu0  ;;  %v497_v20 = vpop.f32.mrf.mxu1  ;;  %560 = vadd.xlane.f32.xlu0 %v559_v16 }
  0xe9   :  { %v421_v21 = vadd.f32 %v420_v19, %v174_v5  ;;  %v498_v22 = vadd.f32 %v497_v20, %v182_v6  ;;  %v512_v23 = vmax.f32 %v496_v17, 0.0  ;;  %v510_v29 = vmax.f32 %v419_v18, 0.0 }
  0xea   :  { %v424_v24 = vpop.f32.mrf.mxu0  ;;  %v501_v25 = vpop.f32.mrf.mxu1 }
  0xeb   :  { %v511_v26 = vmax.f32 %v421_v21, 0.0  ;;  %v513_v27 = vmax.f32 %v498_v22, 0.0  ;;  %v502_v28 = vadd.f32 %v501_v25, %v178_v0  ;;  %v425_v30 = vadd.f32 %v424_v24, %v170_v2 }
  0xec   :  { %v426_v31 = vpop.f32.mrf.mxu0  ;;  %v503_v32 = vpop.f32.mrf.mxu1 }
  0xed   :  { %v427_v33 = vadd.f32 %v426_v31, %v174_v5  ;;  %v504_v34 = vadd.f32 %v503_v32, %v182_v6  ;;  %775 = vmatprep.mubr.f32.mxu0 %v511_v26  ;;  %852 = vmatprep.mubr.f32.mxu1 %v513_v27  ;;  %v520_v35 = vmax.f32 %v502_v28, 0.0  ;;  %v518_v38 = vmax.f32 %v425_v30, 0.0  ;;  %v871_v5 = vpop.permute.xlu1 %870 }
  0xee   :  { %776 = vmatmul.mubr.f32.vlgmr.msra.gmra.mxu0 %v510_v29  ;;  %853 = vmatmul.mubr.f32.vlgmr.msra.gmra.mxu1 %v512_v23  ;;  %v866_v6 = vand.u32 127, %v151_v9  ;;  %v893_v9 = vld [vmem:[#allocation2] sm:$0x1] }
  0xef   :  { %v519_v36 = vmax.f32 %v427_v33, 0.0  ;;  %v521_v37 = vmax.f32 %v504_v34, 0.0 }
  0xf0   :  { %vm875_vm3 = vcmp.eq.s32.totalorder %v871_v5, %v866_v6 }
  0xf1   :  { %781 = vmatprep.mubr.f32.mxu0 %v519_v36  ;;  %858 = vmatprep.mubr.f32.mxu1 %v521_v37  ;;  %v874_v7 = vpop.permute.xlu1 %873  ;;  %v2690_v36 = vsel %vm875_vm3, 1.0, %v3041_v3 }
  0xf2   :  { %782 = vmatmul.mubr.f32.gmra.mxu0 %v518_v38  ;;  %859 = vmatmul.mubr.f32.gmra.mxu1 %v520_v35  ;;  %vm876_vm4 = vcmp.eq.s32.totalorder %v874_v7, %v866_v6 }
  0xf3   :  { %v2691_v38 = vsel %vm876_vm4, 1.0, %v3041_v3 }
 0x16a   :  { %v556_v40 = vpop.xlane.xlu0 %555 }
 0x16b   :  { %v569_v41 = vadd.f32 %v2689_v39, %v556_v40 }
 0x16d   :  { %883 = vperm.xlu0 %2963, %v569_v41  }
 0x171   :  { %v561_v43 = vpop.xlane.xlu0 %560 }
 0x172   :  { %v570_v44 = vadd.f32 %v2689_v39, %v561_v43 }
 0x174   :  { %888 = vperm.xlu1 %2962, %v570_v44  }
 0x1ae   :  { %v777_v48 = vpop.f32.mrf.mxu0  ;;  %v854_v49 = vpop.f32.mrf.mxu1 }
 0x1af   :  { %v778_v50 = vadd.f32 %v777_v48, %v704_v46 }
 0x1b0   :  { %v779_v51 = vpop.f32.mrf.mxu0  ;;  %v856_v52 = vpop.f32.mrf.mxu1 }
 0x1b1   :  { %v855_v53 = vadd.f32 %v854_v49, %v778_v50  ;;  %v780_v54 = vadd.f32 %v779_v51, %v708_v47  ;;  %v922_v49 = vld [vmem:[#allocation3] sm:$0x1] }
 0x1b2   :  { %v783_v56 = vpop.f32.mrf.mxu0  ;;  %v860_v57 = vpop.f32.mrf.mxu1 }
 0x1b3   :  { %v857_v58 = vadd.f32 %v856_v52, %v780_v54  ;;  %v784_v62 = vadd.f32 %v783_v56, %v704_v46  ;;  %1006 = vxpose.xlu1.b32.start [1/2] (short) %v855_v53, 128 }
 0x1b4   :  { %v785_v63 = vpop.f32.mrf.mxu0  ;;  %v862_v2 = vpop.f32.mrf.mxu1 }
 0x1b5   :  { %v861_v0 = vadd.f32 %v860_v57, %v784_v62  ;;  %v786_v1 = vadd.f32 %v785_v63, %v708_v47  ;;  %1038 = vxpose.xlu0.b32.start [1/2] (short) %v857_v58, 128 }
 0x1b7   :  { %v863_v4 = vadd.f32 %v862_v2, %v786_v1  ;;  %1007 = vxpose.xlu1.b32.end [2/2] (short) %v861_v0, 128 }
 0x1b9   :  { %1039 = vxpose.xlu0.b32.end [2/2] (short) %v863_v4, 128 }
 0x1e8   :  { %v884_v8 = vpop.permute.xlu0 %883 }
 0x1e9   :  { %v891_v16 = vsel %vm875_vm3, %v884_v8, -1e+30 }
 0x1ea   :  { %v895_v19 = vsel %vm50_vm1, %v891_v16, -inf }
 0x1ef   :  { %v889_v17 = vpop.permute.xlu1 %888 }
 0x1f0   :  { %v892_v18 = vsel %vm876_vm4, %v889_v17, -1e+30 }
 0x1f1   :  { %v896_v20 = vsel %vm50_vm1, %v892_v18, -inf }
 0x1f2   :  { %v897_v21 = vmax.f32 %v895_v19, %v896_v20 }
 0x1f4   :  { %v898_v22 = vrot.slane %v897_v21, 4 }
 0x1f6   :  { %v899_v23 = vmax.f32 %v897_v21, %v898_v22 }
 0x1f8   :  { %v900_v24 = vrot.slane %v899_v23, 2 }
 0x1fa   :  { %v901_v25 = vmax.f32 %v899_v23, %v900_v24 }
 0x1fc   :  { %v902_v26 = vrot.slane %v901_v25, 1 }
 0x1fe   :  { %v903_v27 = vmax.f32 %v901_v25, %v902_v26 }
 0x200   :  { %v904_v28 = vmax.f32 %v893_v9, %v903_v27 }
 0x202   :  { %v912_v12 = vrot.slane %v904_v28, %v3729_v11  ;;  %1456 = vst.msk [vmem:[#allocation2] sm:$0x1] %vm47_vm2, %v904_v28  ;;  %v905_v33 = vsub.f32 %v893_v9, %v904_v28 }
 0x204   :  { %v914_v29 = vsub.f32 %v891_v16, %v912_v12  ;;  %v915_v30 = vsub.f32 %v892_v18, %v912_v12  ;;  %v906_v34 = vmul.f32 1.442695, %v905_v33  ;;  %v936_v33 = vld [vmem:[#allocation4] sm:$0xff] }
 0x206   :  { %v916_v31 = vmul.f32 1.442695, %v914_v29  ;;  %v918_v32 = vmul.f32 1.442695, %v915_v30 }
 0x208   :  { %3001 = vpow2.f32 %v916_v31 }
 0x209   :  { %3003 = vpow2.f32 %v918_v32  ;;  %v937_v32 = vld [vmem:[#allocation4 + $0x8] sm:$0xff] }
 0x20a   :  { %3005 = vpow2.f32 %v906_v34 }
 0x215   :  { %v3002_v35 = vpop.eup %3001 }
 0x216   :  { %v3004_v37 = vpop.eup %3003  ;;  %v920_v39 = vmul.f32 %v3002_v35, %v2690_v36 }
 0x217   :  { %v921_v40 = vmul.f32 %v3004_v37, %v2691_v38  ;;  %v3854_v48 = vpop.eup %3005 }
 0x218   :  { %v924_v41 = vsel %vm50_vm1, %v920_v39, 0.0  ;;  %v923_v50 = vmul.f32 %v3854_v48, %v922_v49  ;;  %v3892_v31 = vrot.slane %v3854_v48, %v3729_v11  ;;  %v941_v48 = vld [vmem:[#allocation4 + $0x28] sm:$0xff]  ;;  %v940_v49 = vld [vmem:[#allocation4 + $0x20] sm:$0xff] }
 0x219   :  { %v925_v42 = vsel %vm50_vm1, %v921_v40, 0.0  ;;  %2907 = vmatprep.subr.mxu0 %v921_v40 }
 0x21a   :  { %2908 = vmatpush3.msra.mxu0 %v921_v40  ;;  %v926_v43 = vadd.f32 %v925_v42, %v924_v41  ;;  %v975_v34 = vmul.f32 %v3892_v31, %v937_v32  ;;  %v974_v37 = vmul.f32 %v3892_v31, %v936_v33  ;;  %v939_v40 = vld [vmem:[#allocation4 + $0x18] sm:$0xff]  ;;  %v938_v41 = vld [vmem:[#allocation4 + $0x10] sm:$0xff] }
 0x21b   :  { %2909 = vmatprep.subr.mxu0 %v920_v39  ;;  %v977_v42 = vmul.f32 %v3892_v31, %v939_v40  ;;  %v1640_v32 = vld [vmem:[%s5191_s8 + $0x250] sm:$0xff] }
 0x21c   :  { %v927_v44 = vrot.slane %v926_v43, 4  ;;  %2910 = vmatpush3.msra.mxu0 %v920_v39 }
 0x21e   :  { %v928_v45 = vadd.f32 %v927_v44, %v926_v43 }
 0x220   :  { %v929_v46 = vrot.slane %v928_v45, 2 }
 0x222   :  { %v930_v47 = vadd.f32 %v929_v46, %v928_v45  ;;  %v976_v45 = vmul.f32 %v3892_v31, %v938_v41  ;;  %v1623_v41 = vld [vmem:[%s5191_s8 + $0x1c8] sm:$0xff] }
 0x224   :  { %v931_v3 = vrot.slane %v930_v47, 1 }
 0x226   :  { %v932_v51 = vadd.f32 %v931_v3, %v930_v47  ;;  %v1687_v3 = vld [vmem:[%s5191_s8 + $0x3c8] sm:$0xff] }
 0x227   :  { %1928 = vmatprep.subr.mxu1 %v1687_v3  ;;  %v1616_v3 = vld [vmem:[%s5191_s8 + $0x190] sm:$0xff] }
 0x228   :  { %v933_v52 = vadd.f32 %v932_v51, %v923_v50  ;;  %v1689_v50 = vld [vmem:[%s5191_s8 + $0x3d8] sm:$0xff]  ;;  %v1686_v51 = vld [vmem:[%s5191_s8 + $0x3c0] sm:$0xff] }
 0x229   :  { %1999 = vmatprep.subr.mxu0 %v1689_v50  ;;  %1929 = vmatpush1.msra.mxu1 %v1686_v51  ;;  %v944_v50 = vld [vmem:[#allocation4 + $0x40] sm:$0xff] }
 0x22a   :  { %935 = vst.msk [vmem:[#allocation3] sm:$0x1] %vm47_vm2, %v933_v52  ;;  %v1688_v52 = vld [vmem:[%s5191_s8 + $0x3d0] sm:$0xff]  ;;  %v1607_v51 = vld [vmem:[%s5191_s8 + $0x148] sm:$0xff] }
 0x22f   :  { %v1022_v53 = vpop.trf.xlu1 }
 0x230   :  { %2911 = vmatprep.mubr.msk.f32.mxu0 %vm1070_vm5, %v1022_v53  ;;  %v1679_v53 = vld [vmem:[%s5191_s8 + $0x388] sm:$0xff] }
 0x231   :  { %v1054_v54 = vpop.trf.xlu0  ;;  %1930 = vmatprep.subr.mxu1 %v1679_v53 }
 0x233   :  { %v1023_v56 = vpop.trf.xlu1 }
 0x234   :  { %2912 = vmatmul.mubr.msk.f32.vlgmr.msra.gmra.mxu0 %vm1070_vm5, %v1023_v56  ;;  %v1678_v56 = vld [vmem:[%s5191_s8 + $0x380] sm:$0xff] }
 0x235   :  { %v1055_v57 = vpop.trf.xlu0  ;;  %2000 = vmatpush1.msra.mxu0 %v1688_v52  ;;  %1931 = vmatpush1.msra.mxu1 %v1678_v56  ;;  %v1609_v52 = vld [vmem:[%s5191_s8 + $0x158] sm:$0xff]  ;;  %v1608_v56 = vld [vmem:[%s5191_s8 + $0x150] sm:$0xff] }
 0x237   :  { %v1024_v58 = vpop.trf.xlu1 }
 0x238   :  { %2914 = vmatprep.mubr.msk.f32.mxu0 %vm1070_vm5, %v1024_v58  ;;  %v979_v58 = vmul.f32 %v3892_v31, %v941_v48  ;;  %v1617_v48 = vld [vmem:[%s5191_s8 + $0x198] sm:$0xff] }
 0x239   :  { %v1056_v63 = vpop.trf.xlu0 }
 0x23b   :  { %v1025_v62 = vpop.trf.xlu1 }
 0x23c   :  { %2915 = vmatmul.mubr.msk.f32.gmra.mxu0 %vm1070_vm5, %v1025_v62  ;;  %v1671_v62 = vld [vmem:[%s5191_s8 + $0x348] sm:$0xff] }
 0x23d   :  { %v1057_v1 = vpop.trf.xlu0  ;;  %1932 = vmatprep.subr.mxu1 %v1671_v62  ;;  %v1601_v62 = vld [vmem:[%s5191_s8 + $0x118] sm:$0xff] }
 0x23f   :  { %v1026_v0 = vpop.trf.xlu1 }
 0x240   :  { %2917 = vmatprep.mubr.msk.f32.mxu0 %vm1070_vm5, %v1026_v0  ;;  %v1670_v0 = vld [vmem:[%s5191_s8 + $0x340] sm:$0xff] }
 0x241   :  { %v1058_v5 = vpop.trf.xlu0  ;;  %1933 = vmatpush1.msra.mxu1 %v1670_v0  ;;  %v982_v0 = vmul.f32 %v3892_v31, %v944_v50  ;;  %v1800_v50 = vld [vmem:[%s5191_s8 + $0x750] sm:$0xff] }
 0x243   :  { %v1027_v2 = vpop.trf.xlu1 }
 0x244   :  { %2918 = vmatmul.mubr.msk.f32.gmra.mxu0 %vm1070_vm5, %v1027_v2  ;;  %v1672_v2 = vld [vmem:[%s5191_s8 + $0x350] sm:$0xff] }
 0x245   :  { %v1059_v7 = vpop.trf.xlu0 }
 0x247   :  { %v1028_v4 = vpop.trf.xlu1 }
 0x248   :  { %2920 = vmatprep.mubr.msk.f32.mxu0 %vm1070_vm5, %v1028_v4  ;;  %v1663_v4 = vld [vmem:[%s5191_s8 + $0x308] sm:$0xff] }
 0x249   :  { %v1060_v17 = vpop.trf.xlu0  ;;  %1934 = vmatprep.subr.mxu1 %v1663_v4 }
 0x24b   :  { %v1029_v6 = vpop.trf.xlu1 }
 0x24c   :  { %2921 = vmatmul.mubr.msk.f32.gmra.mxu0 %vm1070_vm5, %v1029_v6 }
 0x24d   :  { %v1061_v19 = vpop.trf.xlu0 }
 0x24f   :  { %v1030_v8 = vpop.trf.xlu1 }
 0x250   :  { %2923 = vmatprep.mubr.msk.f32.mxu0 %vm1070_vm5, %v1030_v8  ;;  %v1662_v8 = vld [vmem:[%s5191_s8 + $0x300] sm:$0xff] }
 0x251   :  { %v1062_v22 = vpop.trf.xlu0  ;;  %1935 = vmatpush1.msra.mxu1 %v1662_v8  ;;  %v1590_v8 = vld [vmem:[%s5191_s8 + $0xc0] sm:$0xff] }
 0x253   :  { %v1031_v16 = vpop.trf.xlu1 }
 0x254   :  { %2924 = vmatmul.mubr.msk.f32.gmra.mxu0 %vm1070_vm5, %v1031_v16  ;;  %v1664_v16 = vld [vmem:[%s5191_s8 + $0x310] sm:$0xff] }
 0x255   :  { %v1063_v24 = vpop.trf.xlu0 }
 0x257   :  { %v1032_v18 = vpop.trf.xlu1 }
 0x258   :  { %2926 = vmatprep.mubr.msk.f32.mxu0 %vm1070_vm5, %v1032_v18  ;;  %v1655_v18 = vld [vmem:[%s5191_s8 + $0x2c8] sm:$0xff] }
 0x259   :  { %v1064_v9 = vpop.trf.xlu0  ;;  %1936 = vmatprep.subr.mxu1 %v1655_v18  ;;  %v1583_v18 = vld [vmem:[%s5191_s8 + $0x88] sm:$0xff] }
 0x25b   :  { %v1033_v20 = vpop.trf.xlu1 }
 0x25c   :  { %2927 = vmatmul.mubr.msk.f32.gmra.mxu0 %vm1070_vm5, %v1033_v20 }
 0x25d   :  { %v1065_v27 = vpop.trf.xlu0 }
 0x25f   :  { %v1034_v21 = vpop.trf.xlu1 }
 0x260   :  { %2929 = vmatprep.mubr.msk.f32.mxu0 %vm1070_vm5, %v1034_v21  ;;  %v1654_v21 = vld [vmem:[%s5191_s8 + $0x2c0] sm:$0xff] }
 0x261   :  { %v1066_v28 = vpop.trf.xlu0  ;;  %1937 = vmatpush1.msra.mxu1 %v1654_v21  ;;  %v1584_v21 = vld [vmem:[%s5191_s8 + $0x90] sm:$0xff] }
 0x263   :  { %v1035_v23 = vpop.trf.xlu1 }
 0x264   :  { %2930 = vmatmul.mubr.msk.f32.gmra.mxu0 %vm1070_vm5, %v1035_v23  ;;  %v943_v23 = vld [vmem:[#allocation4 + $0x38] sm:$0xff] }
 0x265   :  { %v1067_v12 = vpop.trf.xlu0 }
 0x267   :  { %v1036_v25 = vpop.trf.xlu1 }
 0x268   :  { %2932 = vmatprep.mubr.msk.f32.mxu0 %vm1070_vm5, %v1036_v25  ;;  %v1649_v25 = vld [vmem:[%s5191_s8 + $0x298] sm:$0xff] }
 0x269   :  { %v1068_v29 = vpop.trf.xlu0 }
 0x26b   :  { %v1037_v26 = vpop.trf.xlu1 }
 0x26c   :  { %2933 = vmatmul.mubr.msk.f32.gmra.mxu0 %vm1070_vm5, %v1037_v26  ;;  %v1646_v26 = vld [vmem:[%s5191_s8 + $0x280] sm:$0xff] }
 0x26d   :  { %2935 = vmatprep.mubr.msk.f32.mxu0 %vm1070_vm5, %v1054_v54  ;;  %v1069_v30 = vpop.trf.xlu0  ;;  %v1681_v54 = vld [vmem:[%s5191_s8 + $0x398] sm:$0xff] }
 0x26e   :  { %2001 = vmatprep.subr.mxu0 %v1681_v54  ;;  %v1606_v54 = vld [vmem:[%s5191_s8 + $0x140] sm:$0xff] }
 0x270   :  { %2936 = vmatmul.mubr.msk.f32.gmra.mxu0 %vm1070_vm5, %v1055_v57  ;;  %v1680_v57 = vld [vmem:[%s5191_s8 + $0x390] sm:$0xff] }
 0x271   :  { %2938 = vmatprep.mubr.msk.f32.mxu0 %vm1070_vm5, %v1056_v63  ;;  %v1673_v63 = vld [vmem:[%s5191_s8 + $0x358] sm:$0xff]  ;;  %2002 = vmatpush1.msra.mxu0 %v1680_v57 }
 0x272   :  { %2003 = vmatprep.subr.mxu0 %v1673_v63 }
 0x273   :  { %2004 = vmatpush1.msra.mxu0 %v1672_v2  ;;  %v1600_v2 = vld [vmem:[%s5191_s8 + $0x110] sm:$0xff] }
 0x274   :  { %2939 = vmatmul.mubr.msk.f32.gmra.mxu0 %vm1070_vm5, %v1057_v1 }
 0x275   :  { %2941 = vmatprep.mubr.msk.f32.mxu0 %vm1070_vm5, %v1058_v5  ;;  %v1665_v5 = vld [vmem:[%s5191_s8 + $0x318] sm:$0xff] }
 0x276   :  { %2005 = vmatprep.subr.mxu0 %v1665_v5  ;;  %v1591_v5 = vld [vmem:[%s5191_s8 + $0xc8] sm:$0xff] }
 0x277   :  { %2006 = vmatpush1.msra.mxu0 %v1664_v16  ;;  %v1592_v16 = vld [vmem:[%s5191_s8 + $0xd0] sm:$0xff] }
 0x278   :  { %2942 = vmatmul.mubr.msk.f32.gmra.mxu0 %vm1070_vm5, %v1059_v7  ;;  %v978_v7 = vmul.f32 %v3892_v31, %v940_v49  ;;  %v1614_v49 = vld [vmem:[%s5191_s8 + $0x180] sm:$0xff] }
 0x279   :  { %2944 = vmatprep.mubr.msk.f32.mxu0 %vm1070_vm5, %v1060_v17 }
 0x27c   :  { %2945 = vmatmul.mubr.msk.f32.gmra.mxu0 %vm1070_vm5, %v1061_v19  ;;  %v1657_v19 = vld [vmem:[%s5191_s8 + $0x2d8] sm:$0xff] }
 0x27d   :  { %2947 = vmatprep.mubr.msk.f32.mxu0 %vm1070_vm5, %v1062_v22  ;;  %v1656_v22 = vld [vmem:[%s5191_s8 + $0x2d0] sm:$0xff]  ;;  %2007 = vmatprep.subr.mxu0 %v1657_v19  ;;  %v1585_v19 = vld [vmem:[%s5191_s8 + $0x98] sm:$0xff] }
 0x27e   :  { %2008 = vmatpush1.msra.mxu0 %v1656_v22  ;;  %v946_v22 = vld [vmem:[#allocation4 + $0x50] sm:$0xff] }
 0x27f   :  { %2009 = vmatprep.subr.mxu0 %v1649_v25 }
 0x280   :  { %2948 = vmatmul.mubr.msk.f32.gmra.mxu0 %vm1070_vm5, %v1063_v24  ;;  %v1647_v24 = vld [vmem:[%s5191_s8 + $0x288] sm:$0xff] }
 0x281   :  { %2950 = vmatprep.mubr.msk.f32.mxu0 %vm1070_vm5, %v1064_v9  ;;  %v1648_v9 = vld [vmem:[%s5191_s8 + $0x290] sm:$0xff]  ;;  %1938 = vmatprep.subr.mxu1 %v1647_v24  ;;  %v1577_v24 = vld [vmem:[%s5191_s8 + $0x58] sm:$0xff] }
 0x282   :  { %1939 = vmatpush1.msra.mxu1 %v1646_v26  ;;  %2010 = vmatpush1.msra.mxu0 %v1648_v9  ;;  %v1574_v26 = vld [vmem:[%s5191_s8 + $0x40] sm:$0xff]  ;;  %v1576_v9 = vld [vmem:[%s5191_s8 + $0x50] sm:$0xff] }
 0x284   :  { %2951 = vmatmul.mubr.msk.f32.gmra.mxu0 %vm1070_vm5, %v1065_v27  ;;  %v942_v27 = vld [vmem:[#allocation4 + $0x30] sm:$0xff] }
 0x285   :  { %2953 = vmatprep.mubr.msk.f32.mxu0 %vm1070_vm5, %v1066_v28  ;;  %v1639_v28 = vld [vmem:[%s5191_s8 + $0x248] sm:$0xff] }
 0x286   :  { %1940 = vmatprep.subr.mxu1 %v1639_v28  ;;  %v1567_v28 = vld [vmem:[%s5191_s8 + $0x8] sm:$0xff] }
 0x288   :  { %2954 = vmatmul.mubr.msk.f32.gmra.mxu0 %vm1070_vm5, %v1067_v12  ;;  %v1641_v12 = vld [vmem:[%s5191_s8 + $0x258] sm:$0xff] }
 0x289   :  { %2956 = vmatprep.mubr.msk.f32.mxu0 %vm1070_vm5, %v1068_v29  ;;  %v981_v29 = vmul.f32 %v3892_v31, %v943_v23  ;;  %2011 = vmatprep.subr.mxu0 %v1641_v12  ;;  %v1575_v23 = vld [vmem:[%s5191_s8 + $0x48] sm:$0xff]  ;;  %v1569_v12 = vld [vmem:[%s5191_s8 + $0x18] sm:$0xff] }
 0x28a   :  { %2012 = vmatpush1.msra.mxu0 %v1640_v32  ;;  %v1566_v32 = vld [vmem:[%s5191_s8] sm:$0xff] }
 0x28c   :  { %2957 = vmatmul.mubr.msk.f32.gmra.mxu0 %vm1070_vm5, %v1069_v30  ;;  %v1638_v30 = vld [vmem:[%s5191_s8 + $0x240] sm:$0xff] }
 0x28d   :  { %1941 = vmatpush1.msra.mxu1 %v1638_v30  ;;  %v984_v30 = vmul.f32 %v3892_v31, %v946_v22  ;;  %v1766_v22 = vld [vmem:[%s5191_s8 + $0x640] sm:$0xff] }
 0x2f4   :  { %v2913_v35 = vpop.f32.mrf.mxu0 }
 0x2f5   :  { %v1393_v36 = vadd.f32 %v2913_v35, %v975_v34  ;;  %v1631_v34 = vld [vmem:[%s5191_s8 + $0x208] sm:$0xff]  ;;  %v1633_v35 = vld [vmem:[%s5191_s8 + $0x218] sm:$0xff] }
 0x2f6   :  { %v1233_v38 = vpop.f32.mrf.mxu0  ;;  %1942 = vmatprep.subr.mxu1 %v1631_v34  ;;  %2013 = vmatprep.subr.mxu0 %v1633_v35  ;;  %v1815_v35 = vld [vmem:[%s5191_s8 + $0x7c8] sm:$0xff] }
 0x2f7   :  { %1425 = vst.msk [vmem:[#allocation4 + $0x8] sm:$0xff] %vm50_vm1, %v1393_v36  ;;  %v1392_v39 = vadd.f32 %v1233_v38, %v974_v37  ;;  %v980_v37 = vmul.f32 %v3892_v31, %v942_v27  ;;  %v1630_v38 = vld [vmem:[%s5191_s8 + $0x200] sm:$0xff] }
 0x2f8   :  { %1943 = vmatpush1.msra.mxu1 %v1630_v38  ;;  %v949_v38 = vld [vmem:[#allocation4 + $0x68] sm:$0xff] }
 0x2f9   :  { %1424 = vst.msk [vmem:[#allocation4] sm:$0xff] %vm50_vm1, %v1392_v39  ;;  %v1632_v39 = vld [vmem:[%s5191_s8 + $0x210] sm:$0xff]  ;;  %1944 = vmatprep.subr.mxu1 %v1623_v41  ;;  %v1460_v41 = vld [vmem:[#allocation3] sm:$0x1] }
 0x2fa   :  { %2014 = vmatpush1.msra.mxu0 %v1632_v39  ;;  %v1814_v39 = vld [vmem:[%s5191_s8 + $0x7c0] sm:$0xff]  ;;  %vm1493_vm6 = vcmp.gt.f32.partialorder %v1460_v41, 0.0 }
 0x2fc   :  { %v2916_v43 = vpop.f32.mrf.mxu0 }
 0x2fd   :  { %v1395_v44 = vadd.f32 %v2916_v43, %v977_v42  ;;  %v1625_v42 = vld [vmem:[%s5191_s8 + $0x1d8] sm:$0xff] }
 0x2fe   :  { %v1243_v46 = vpop.f32.mrf.mxu0  ;;  %2015 = vmatprep.subr.mxu0 %v1625_v42  ;;  %v1807_v42 = vld [vmem:[%s5191_s8 + $0x788] sm:$0xff] }
 0x2ff   :  { %1427 = vst.msk [vmem:[#allocation4 + $0x18] sm:$0xff] %vm50_vm1, %v1395_v44  ;;  %v1394_v47 = vadd.f32 %v1243_v46, %v976_v45  ;;  %v1622_v44 = vld [vmem:[%s5191_s8 + $0x1c0] sm:$0xff]  ;;  %v1624_v45 = vld [vmem:[%s5191_s8 + $0x1d0] sm:$0xff] }
 0x300   :  { %v945_v46 = vld [vmem:[#allocation4 + $0x48] sm:$0xff]  ;;  %1945 = vmatpush1.msra.mxu1 %v1622_v44  ;;  %2016 = vmatpush1.msra.mxu0 %v1624_v45  ;;  %v1806_v44 = vld [vmem:[%s5191_s8 + $0x780] sm:$0xff] }
 0x301   :  { %1426 = vst.msk [vmem:[#allocation4 + $0x10] sm:$0xff] %vm50_vm1, %v1394_v47  ;;  %v1615_v47 = vld [vmem:[%s5191_s8 + $0x188] sm:$0xff]  ;;  %v983_v53 = vmul.f32 %v3892_v31, %v945_v46  ;;  %2017 = vmatprep.subr.mxu0 %v1617_v48  ;;  %v1808_v45 = vld [vmem:[%s5191_s8 + $0x790] sm:$0xff]  ;;  %v1801_v48 = vld [vmem:[%s5191_s8 + $0x758] sm:$0xff] }
 0x302   :  { %1946 = vmatprep.subr.mxu1 %v1615_v47  ;;  %2018 = vmatpush1.msra.mxu0 %v1616_v3  ;;  %v948_v46 = vld [vmem:[#allocation4 + $0x60] sm:$0xff] }
 0x303   :  { %1947 = vmatpush1.msra.mxu1 %v1614_v49  ;;  %2019 = vmatprep.subr.mxu0 %v1609_v52  ;;  %v1799_v47 = vld [vmem:[%s5191_s8 + $0x748] sm:$0xff]  ;;  %v987_v49 = vmul.f32 %v3892_v31, %v949_v38  ;;  %v1798_v3 = vld [vmem:[%s5191_s8 + $0x740] sm:$0xff]  ;;  %v1752_v38 = vld [vmem:[%s5191_s8 + $0x5d0] sm:$0xff] }
 0x304   :  { %v2919_v1 = vpop.f32.mrf.mxu0  ;;  %1948 = vmatprep.subr.mxu1 %v1607_v51  ;;  %2020 = vmatpush1.msra.mxu0 %v1608_v56  ;;  %v1791_v52 = vld [vmem:[%s5191_s8 + $0x708] sm:$0xff]  ;;  %v986_v56 = vmul.f32 %v3892_v31, %v948_v46  ;;  %v1744_v46 = vld [vmem:[%s5191_s8 + $0x590] sm:$0xff] }
 0x305   :  { %v1397_v6 = vadd.f32 %v2919_v1, %v979_v58  ;;  %v1599_v58 = vld [vmem:[%s5191_s8 + $0x108] sm:$0xff]  ;;  %v1598_v1 = vld [vmem:[%s5191_s8 + $0x100] sm:$0xff]  ;;  %1949 = vmatpush1.msra.mxu1 %v1606_v54  ;;  %2021 = vmatprep.subr.mxu0 %v1601_v62  ;;  %v1494_v62 = vsel %vm1493_vm6, %v1460_v41, 1.0 }
 0x306   :  { %v1253_v17 = vpop.f32.mrf.mxu0  ;;  %1950 = vmatprep.subr.mxu1 %v1599_v58  ;;  %2022 = vmatpush1.msra.mxu0 %v1600_v2  ;;  %v1792_v58 = vld [vmem:[%s5191_s8 + $0x710] sm:$0xff]  ;;  %3007 = vrcp.f32 %v1494_v62  ;;  %v1743_v41 = vld [vmem:[%s5191_s8 + $0x588] sm:$0xff] }
 0x307   :  { %1429 = vst.msk [vmem:[#allocation4 + $0x28] sm:$0xff] %vm50_vm1, %v1397_v6  ;;  %v1396_v20 = vadd.f32 %v1253_v17, %v978_v7  ;;  %v1593_v6 = vld [vmem:[%s5191_s8 + $0xd8] sm:$0xff]  ;;  %1951 = vmatpush1.msra.mxu1 %v1598_v1 }
 0x308   :  { %v947_v17 = vld [vmem:[#allocation4 + $0x58] sm:$0xff]  ;;  %1952 = vmatprep.subr.mxu1 %v1591_v5  ;;  %2023 = vmatprep.subr.mxu0 %v1593_v6  ;;  %v1784_v5 = vld [vmem:[%s5191_s8 + $0x6d0] sm:$0xff] }
 0x309   :  { %1428 = vst.msk [vmem:[#allocation4 + $0x20] sm:$0xff] %vm50_vm1, %v1396_v20  ;;  %v1582_v20 = vld [vmem:[%s5191_s8 + $0x80] sm:$0xff]  ;;  %1953 = vmatpush1.msra.mxu1 %v1590_v8  ;;  %2024 = vmatpush1.msra.mxu0 %v1592_v16  ;;  %v985_v25 = vmul.f32 %v3892_v31, %v947_v17  ;;  %v1785_v1 = vld [vmem:[%s5191_s8 + $0x6d8] sm:$0xff]  ;;  %v1776_v17 = vld [vmem:[%s5191_s8 + $0x690] sm:$0xff] }
 0x30a   :  { %1954 = vmatprep.subr.mxu1 %v1583_v18  ;;  %2025 = vmatprep.subr.mxu0 %v1585_v19  ;;  %v951_v6 = vld [vmem:[#allocation4 + $0x78] sm:$0xff]  ;;  %v950_v18 = vld [vmem:[#allocation4 + $0x70] sm:$0xff]  ;;  %v1767_v19 = vld [vmem:[%s5191_s8 + $0x648] sm:$0xff] }
 0x30b   :  { %1955 = vmatpush1.msra.mxu1 %v1582_v20  ;;  %2026 = vmatpush1.msra.mxu0 %v1584_v21  ;;  %v1777_v8 = vld [vmem:[%s5191_s8 + $0x698] sm:$0xff]  ;;  %v1774_v16 = vld [vmem:[%s5191_s8 + $0x680] sm:$0xff]  ;;  %v989_v21 = vmul.f32 %v3892_v31, %v951_v6  ;;  %v1719_v6 = vld [vmem:[%s5191_s8 + $0x4c8] sm:$0xff] }
 0x30c   :  { %v2922_v33 = vpop.f32.mrf.mxu0  ;;  %1956 = vmatprep.subr.mxu1 %v1575_v23  ;;  %2027 = vmatprep.subr.mxu0 %v1577_v24  ;;  %v1769_v20 = vld [vmem:[%s5191_s8 + $0x658] sm:$0xff]  ;;  %v1768_v23 = vld [vmem:[%s5191_s8 + $0x650] sm:$0xff] }
 0x30d   :  { %v1399_v36 = vadd.f32 %v2922_v33, %v981_v29  ;;  %v1568_v33 = vld [vmem:[%s5191_s8 + $0x10] sm:$0xff]  ;;  %1957 = vmatpush1.msra.mxu1 %v1574_v26  ;;  %2028 = vmatpush1.msra.mxu0 %v1576_v9  ;;  %v1759_v26 = vld [vmem:[%s5191_s8 + $0x608] sm:$0xff]  ;;  %v1761_v9 = vld [vmem:[%s5191_s8 + $0x618] sm:$0xff] }
 0x30e   :  { %v1263_v40 = vpop.f32.mrf.mxu0  ;;  %1958 = vmatprep.subr.mxu1 %v1567_v28  ;;  %2029 = vmatprep.subr.mxu0 %v1569_v12  ;;  %v988_v28 = vmul.f32 %v3892_v31, %v950_v18  ;;  %v1758_v12 = vld [vmem:[%s5191_s8 + $0x600] sm:$0xff] }
 0x30f   :  { %1431 = vst.msk [vmem:[#allocation4 + $0x38] sm:$0xff] %vm50_vm1, %v1399_v36  ;;  %v1398_v43 = vadd.f32 %v1263_v40, %v980_v37  ;;  %v1817_v36 = vld [vmem:[%s5191_s8 + $0x7d8] sm:$0xff]  ;;  %v1816_v40 = vld [vmem:[%s5191_s8 + $0x7d0] sm:$0xff]  ;;  %1959 = vmatpush1.msra.mxu1 %v1566_v32  ;;  %2030 = vmatpush1.msra.mxu0 %v1568_v33  ;;  %v952_v32 = vld [vmem:[#allocation4 + $0x80] sm:$0xff] }
 0x310   :  { %1960 = vmatprep.subr.mxu1 %v1815_v35  ;;  %2031 = vmatprep.subr.mxu0 %v1817_v36  ;;  %v1751_v33 = vld [vmem:[%s5191_s8 + $0x5c8] sm:$0xff]  ;;  %v1718_v18 = vld [vmem:[%s5191_s8 + $0x4c0] sm:$0xff] }
 0x311   :  { %1430 = vst.msk [vmem:[#allocation4 + $0x30] sm:$0xff] %vm50_vm1, %v1398_v43  ;;  %v1809_v43 = vld [vmem:[%s5191_s8 + $0x798] sm:$0xff]  ;;  %1961 = vmatpush2.msra.mxu1 %v1814_v39  ;;  %2032 = vmatpush2.msra.mxu0 %v1816_v40 }
 0x312   :  { %1962 = vmatprep.subr.mxu1 %v1807_v42  ;;  %2033 = vmatprep.subr.mxu0 %v1809_v43  ;;  %v955_v40 = vld [vmem:[#allocation4 + $0x98] sm:$0xff] }
 0x313   :  { %1963 = vmatpush2.msra.mxu1 %v1806_v44  ;;  %2034 = vmatpush2.msra.mxu0 %v1808_v45  ;;  %v1745_v42 = vld [vmem:[%s5191_s8 + $0x598] sm:$0xff]  ;;  %v990_v44 = vmul.f32 %v3892_v31, %v952_v32  ;;  %v1742_v45 = vld [vmem:[%s5191_s8 + $0x580] sm:$0xff] }
 0x314   :  { %v2925_v57 = vpop.f32.mrf.mxu0  ;;  %1964 = vmatprep.subr.mxu1 %v1799_v47  ;;  %2035 = vmatprep.subr.mxu0 %v1801_v48  ;;  %v954_v48 = vld [vmem:[#allocation4 + $0x90] sm:$0xff] }
 0x315   :  { %v1401_v63 = vadd.f32 %v2925_v57, %v983_v53  ;;  %v1793_v53 = vld [vmem:[%s5191_s8 + $0x718] sm:$0xff]  ;;  %v1790_v57 = vld [vmem:[%s5191_s8 + $0x700] sm:$0xff]  ;;  %1965 = vmatpush2.msra.mxu1 %v1798_v3  ;;  %2036 = vmatpush2.msra.mxu0 %v1800_v50 }
 0x316   :  { %v1273_v4 = vpop.f32.mrf.mxu0  ;;  %1966 = vmatprep.subr.mxu1 %v1791_v52  ;;  %2037 = vmatprep.subr.mxu0 %v1793_v53  ;;  %v1737_v3 = vld [vmem:[%s5191_s8 + $0x558] sm:$0xff]  ;;  %v1734_v52 = vld [vmem:[%s5191_s8 + $0x540] sm:$0xff]  ;;  %v1736_v53 = vld [vmem:[%s5191_s8 + $0x550] sm:$0xff] }
 0x317   :  { %1433 = vst.msk [vmem:[#allocation4 + $0x48] sm:$0xff] %vm50_vm1, %v1401_v63  ;;  %v1400_v7 = vadd.f32 %v1273_v4, %v982_v0  ;;  %v1783_v0 = vld [vmem:[%s5191_s8 + $0x6c8] sm:$0xff]  ;;  %v1782_v4 = vld [vmem:[%s5191_s8 + $0x6c0] sm:$0xff]  ;;  %1967 = vmatpush2.msra.mxu1 %v1790_v57  ;;  %2038 = vmatpush2.msra.mxu0 %v1792_v58  ;;  %v1729_v58 = vld [vmem:[%s5191_s8 + $0x518] sm:$0xff] }
 0x318   :  { %1968 = vmatprep.subr.mxu1 %v1783_v0  ;;  %2039 = vmatprep.subr.mxu0 %v1785_v1  ;;  %v1727_v57 = vld [vmem:[%s5191_s8 + $0x508] sm:$0xff]  ;;  %v1726_v0 = vld [vmem:[%s5191_s8 + $0x500] sm:$0xff]  ;;  %v1728_v1 = vld [vmem:[%s5191_s8 + $0x510] sm:$0xff] }
 0x319   :  { %1432 = vst.msk [vmem:[#allocation4 + $0x40] sm:$0xff] %vm50_vm1, %v1400_v7  ;;  %v1775_v7 = vld [vmem:[%s5191_s8 + $0x688] sm:$0xff]  ;;  %1969 = vmatpush2.msra.mxu1 %v1782_v4  ;;  %2040 = vmatpush2.msra.mxu0 %v1784_v5  ;;  %v1705_v32 = vld [vmem:[%s5191_s8 + $0x458] sm:$0xff] }
 0x31a   :  { %1970 = vmatprep.subr.mxu1 %v1775_v7  ;;  %2041 = vmatprep.subr.mxu0 %v1777_v8  ;;  %v956_v5 = vld [vmem:[#allocation4 + $0xa0] sm:$0xff]  ;;  %v1721_v7 = vld [vmem:[%s5191_s8 + $0x4d8] sm:$0xff] }
 0x31b   :  { %1971 = vmatpush2.msra.mxu1 %v1774_v16  ;;  %2042 = vmatpush2.msra.mxu0 %v1776_v17  ;;  %v959_v17 = vld [vmem:[#allocation4 + $0xb8] sm:$0xff] }
 0x31c   :  { %v2928_v27 = vpop.f32.mrf.mxu0  ;;  %1972 = vmatprep.subr.mxu1 %v1767_v19  ;;  %2043 = vmatprep.subr.mxu0 %v1769_v20  ;;  %v1720_v19 = vld [vmem:[%s5191_s8 + $0x4d0] sm:$0xff] }
 0x31d   :  { %v1403_v29 = vadd.f32 %v2928_v27, %v985_v25  ;;  %v953_v25 = vld [vmem:[#allocation4 + $0x88] sm:$0xff]  ;;  %1973 = vmatpush2.msra.mxu1 %v1766_v22  ;;  %2044 = vmatpush2.msra.mxu0 %v1768_v23  ;;  %v1713_v23 = vld [vmem:[%s5191_s8 + $0x498] sm:$0xff] }
 0x31e   :  { %v1283_v34 = vpop.f32.mrf.mxu0  ;;  %v991_v36 = vmul.f32 %v3892_v31, %v953_v25  ;;  %1974 = vmatprep.subr.mxu1 %v1759_v26  ;;  %2045 = vmatprep.subr.mxu0 %v1761_v9  ;;  %v1711_v22 = vld [vmem:[%s5191_s8 + $0x488] sm:$0xff]  ;;  %v994_v26 = vmul.f32 %v3892_v31, %v956_v5  ;;  %v958_v9 = vld [vmem:[#allocation4 + $0xb0] sm:$0xff]  ;;  %v1694_v5 = vld [vmem:[%s5191_s8 + $0x400] sm:$0xff] }
 0x31f   :  { %1435 = vst.msk [vmem:[#allocation4 + $0x58] sm:$0xff] %vm50_vm1, %v1403_v29  ;;  %v1402_v37 = vadd.f32 %v1283_v34, %v984_v30  ;;  %v1760_v29 = vld [vmem:[%s5191_s8 + $0x610] sm:$0xff]  ;;  %v1753_v34 = vld [vmem:[%s5191_s8 + $0x5d8] sm:$0xff]  ;;  %1975 = vmatpush2.msra.mxu1 %v1758_v12 }
 0x320   :  { %2046 = vmatpush2.msra.mxu0 %v1760_v29  ;;  %1976 = vmatprep.subr.mxu1 %v1751_v33 }
 0x321   :  { %1434 = vst.msk [vmem:[#allocation4 + $0x50] sm:$0xff] %vm50_vm1, %v1402_v37  ;;  %v1750_v37 = vld [vmem:[%s5191_s8 + $0x5c0] sm:$0xff]  ;;  %2047 = vmatprep.subr.mxu0 %v1753_v34  ;;  %v997_v34 = vmul.f32 %v3892_v31, %v959_v17  ;;  %v1693_v17 = vld [vmem:[%s5191_s8 + $0x3f8] sm:$0xff] }
 0x322   :  { %1977 = vmatpush2.msra.mxu1 %v1750_v37  ;;  %2048 = vmatpush2.msra.mxu0 %v1752_v38  ;;  %v1702_v37 = vld [vmem:[%s5191_s8 + $0x440] sm:$0xff]  ;;  %v1704_v38 = vld [vmem:[%s5191_s8 + $0x450] sm:$0xff] }
 0x323   :  { %1978 = vmatprep.subr.mxu1 %v1743_v41  ;;  %2049 = vmatprep.subr.mxu0 %v1745_v42  ;;  %v1462_v42 = vld [vmem:[#allocation4 + $0x8] sm:$0xff] }
 0x324   :  { %v2931_v51 = vpop.f32.mrf.mxu0  ;;  %1979 = vmatpush2.msra.mxu1 %v1742_v45  ;;  %2050 = vmatpush2.msra.mxu0 %v1744_v46 }
 0x325   :  { %v1405_v54 = vadd.f32 %v2931_v51, %v987_v49  ;;  %v1735_v49 = vld [vmem:[%s5191_s8 + $0x548] sm:$0xff]  ;;  %v993_v51 = vmul.f32 %v3892_v31, %v955_v40  ;;  %2051 = vmatprep.subr.mxu0 %v1737_v3  ;;  %v996_v40 = vmul.f32 %v3892_v31, %v958_v9 }
 0x326   :  { %v1293_v63 = vpop.f32.mrf.mxu0  ;;  %1980 = vmatprep.subr.mxu1 %v1735_v49  ;;  %2052 = vmatpush2.msra.mxu0 %v1736_v53  ;;  %v1463_v53 = vld [vmem:[#allocation4 + $0x10] sm:$0xff] }
 0x327   :  { %1437 = vst.msk [vmem:[#allocation4 + $0x68] sm:$0xff] %vm50_vm1, %v1405_v54  ;;  %v1404_v2 = vadd.f32 %v1293_v63, %v986_v56  ;;  %v957_v56 = vld [vmem:[#allocation4 + $0xa8] sm:$0xff]  ;;  %v992_v63 = vmul.f32 %v3892_v31, %v954_v48  ;;  %1981 = vmatpush2.msra.mxu1 %v1734_v52  ;;  %2053 = vmatprep.subr.mxu0 %v1729_v58 }
 0x328   :  { %v995_v16 = vmul.f32 %v3892_v31, %v957_v56  ;;  %1982 = vmatprep.subr.mxu1 %v1727_v57  ;;  %2054 = vmatpush2.msra.mxu0 %v1728_v1  ;;  %v1695_v58 = vld [vmem:[%s5191_s8 + $0x408] sm:$0xff]  ;;  %v962_v1 = vld [vmem:[#allocation4 + $0xd0] sm:$0xff] }
 0x329   :  { %1436 = vst.msk [vmem:[#allocation4 + $0x60] sm:$0xff] %vm50_vm1, %v1404_v2  ;;  %v3008_v2 = vpop.eup %3007  ;;  %1983 = vmatpush2.msra.mxu1 %v1726_v0  ;;  %2055 = vmatprep.subr.mxu0 %v1721_v7 }
 0x32a   :  { %1984 = vmatprep.subr.mxu1 %v1719_v6  ;;  %2056 = vmatpush2.msra.mxu0 %v1720_v19  ;;  %v1696_v6 = vld [vmem:[%s5191_s8 + $0x410] sm:$0xff] }
 0x32b   :  { %1985 = vmatpush2.msra.mxu1 %v1718_v18  ;;  %2057 = vmatprep.subr.mxu0 %v1713_v23  ;;  %v1000_v23 = vmul.f32 %v3892_v31, %v962_v1 }
 0x32c   :  { %v2934_v24 = vpop.f32.mrf.mxu0  ;;  %1986 = vmatprep.subr.mxu1 %v1711_v22 }
 0x32d   :  { %v1407_v27 = vadd.f32 %v2934_v24, %v989_v21  ;;  %v1461_v21 = vld [vmem:[#allocation4] sm:$0xff]  ;;  %v4290_v24 = vrot.slane %v3008_v2, %v3729_v11 }
 0x32e   :  { %v1303_v30 = vpop.f32.mrf.mxu0 }
 0x32f   :  { %1439 = vst.msk [vmem:[#allocation4 + $0x78] sm:$0xff] %vm50_vm1, %v1407_v27  ;;  %v1406_v35 = vadd.f32 %v1303_v30, %v988_v28  ;;  %v1710_v27 = vld [vmem:[%s5191_s8 + $0x480] sm:$0xff]  ;;  %v1712_v28 = vld [vmem:[%s5191_s8 + $0x490] sm:$0xff]  ;;  %v1703_v30 = vld [vmem:[%s5191_s8 + $0x448] sm:$0xff]  ;;  %v1503_v52 = vmul.f32 %v4290_v24, %v1462_v42 }
 0x330   :  { %v2937_v39 = vpop.f32.mrf.mxu0  ;;  %1987 = vmatpush2.msra.mxu1 %v1710_v27  ;;  %2058 = vmatpush2.msra.mxu0 %v1712_v28  ;;  %v964_v28 = vld [vmem:[#allocation4 + $0xe0] sm:$0xff] }
 0x331   :  { %1438 = vst.msk [vmem:[#allocation4 + $0x70] sm:$0xff] %vm50_vm1, %v1406_v35  ;;  %v1409_v43 = vadd.f32 %v2937_v39, %v991_v36  ;;  %v961_v35 = vld [vmem:[#allocation4 + $0xc8] sm:$0xff]  ;;  %v1502_v36 = vmul.f32 %v4290_v24, %v1461_v21  ;;  %1988 = vmatprep.subr.mxu1 %v1703_v30  ;;  %2059 = vmatprep.subr.mxu0 %v1705_v32 }
 0x332   :  { %v1313_v47 = vpop.f32.mrf.mxu0  ;;  %v999_v48 = vmul.f32 %v3892_v31, %v961_v35  ;;  %1989 = vmatpush2.msra.mxu1 %v1702_v37  ;;  %2060 = vmatpush2.msra.mxu0 %v1704_v38  ;;  %v1504_v21 = vmul.f32 %v4290_v24, %v1463_v53  ;;  %v1002_v38 = vmul.f32 %v3892_v31, %v964_v28  ;;  %v1466_v53 = vld [vmem:[#allocation4 + $0x28] sm:$0xff] }
 0x333   :  { %1441 = vst.msk [vmem:[#allocation4 + $0x88] sm:$0xff] %vm50_vm1, %v1409_v43  ;;  %v1408_v50 = vadd.f32 %v1313_v47, %v990_v44  ;;  %v960_v44 = vld [vmem:[#allocation4 + $0xc0] sm:$0xff]  ;;  %v1534_v3 = vmax.f32 %v1502_v36, 0.0  ;;  %1990 = vmatprep.subr.mxu1 %v1695_v58 }
 0x334   :  { %v2940_v54 = vpop.f32.mrf.mxu0  ;;  %v998_v56 = vmul.f32 %v3892_v31, %v960_v44  ;;  %1991 = vmatpush2.msra.mxu1 %v1694_v5  ;;  %v1536_v35 = vmax.f32 %v1504_v21, 0.0 }
 0x335   :  { %1440 = vst.msk [vmem:[#allocation4 + $0x80] sm:$0xff] %vm50_vm1, %v1408_v50  ;;  %v1411_v62 = vadd.f32 %v2940_v54, %v993_v51  ;;  %v963_v51 = vld [vmem:[#allocation4 + $0xd8] sm:$0xff] }
 0x336   :  { %v1323_v4 = vpop.f32.mrf.mxu0  ;;  %v1001_v19 = vmul.f32 %v3892_v31, %v963_v51 }
 0x337   :  { %1443 = vst.msk [vmem:[#allocation4 + $0x98] sm:$0xff] %vm50_vm1, %v1411_v62  ;;  %v1410_v8 = vadd.f32 %v1323_v4, %v992_v63  ;;  %v1697_v62 = vld [vmem:[%s5191_s8 + $0x418] sm:$0xff] }
 0x338   :  { %v2943_v20 = vpop.f32.mrf.mxu0  ;;  %2061 = vmatprep.subr.mxu0 %v1697_v62 }
 0x339   :  { %1442 = vst.msk [vmem:[#allocation4 + $0x90] sm:$0xff] %vm50_vm1, %v1410_v8  ;;  %v1413_v25 = vadd.f32 %v2943_v20, %v995_v16  ;;  %2062 = vmatpush2.msra.mxu0 %v1696_v6  ;;  %v1691_v16 = vld [vmem:[%s5191_s8 + $0x3e8] sm:$0xff]  ;;  %v1535_v20 = vmax.f32 %v1503_v52, 0.0 }
 0x33a   :  { %v1333_v12 = vpop.f32.mrf.mxu0  ;;  %v1478_v29 = vld [vmem:[#allocation4 + $0x88] sm:$0xff]  ;;  %2070 = vmatprep.subr.mxu1 %v1691_v16  ;;  %2141 = vmatprep.subr.mxu0 %v1693_v17  ;;  %v1468_v17 = vld [vmem:[#allocation4 + $0x38] sm:$0xff] }
 0x33b   :  { %1445 = vst.msk [vmem:[#allocation4 + $0xa8] sm:$0xff] %vm50_vm1, %v1413_v25  ;;  %v1412_v33 = vadd.f32 %v1333_v12, %v994_v26  ;;  %v1519_v46 = vmul.f32 %v4290_v24, %v1478_v29  ;;  %v965_v25 = vld [vmem:[#allocation4 + $0xe8] sm:$0xff]  ;;  %v1464_v26 = vld [vmem:[#allocation4 + $0x18] sm:$0xff] }
 0x33c   :  { %v2946_v39 = vpop.f32.mrf.mxu0  ;;  %v1477_v41 = vld [vmem:[#allocation4 + $0x80] sm:$0xff]  ;;  %v1505_v36 = vmul.f32 %v4290_v24, %v1464_v26 }
 0x33d   :  { %1444 = vst.msk [vmem:[#allocation4 + $0xa0] sm:$0xff] %vm50_vm1, %v1412_v33  ;;  %v1415_v43 = vadd.f32 %v2946_v39, %v997_v34  ;;  %v1518_v45 = vmul.f32 %v4290_v24, %v1477_v41  ;;  %v1551_v2 = vmax.f32 %v1519_v46, 0.0  ;;  %v1003_v34 = vmul.f32 %v3892_v31, %v965_v25  ;;  %v967_v39 = vld [vmem:[#allocation4 + $0xf8] sm:$0xff]  ;;  %v1469_v25 = vld [vmem:[#allocation4 + $0x40] sm:$0xff] }
 0x33e   :  { %v1343_v47 = vpop.f32.mrf.mxu0  ;;  %v1480_v8 = vld [vmem:[#allocation4 + $0x98] sm:$0xff] }
 0x33f   :  { %1447 = vst.msk [vmem:[#allocation4 + $0xb8] sm:$0xff] %vm50_vm1, %v1415_v43  ;;  %v1414_v49 = vadd.f32 %v1343_v47, %v996_v40  ;;  %v1550_v50 = vmax.f32 %v1518_v45, 0.0  ;;  %v2966_v27 = vpack.i.bf16 %v1535_v20, %v1551_v2  ;;  %v1521_v29 = vmul.f32 %v4290_v24, %v1480_v8  ;;  %v1465_v40 = vld [vmem:[#allocation4 + $0x20] sm:$0xff]  ;;  %v966_v43 = vld [vmem:[#allocation4 + $0xf0] sm:$0xff] }
 0x340   :  { %v2949_v54 = vpop.f32.mrf.mxu0  ;;  %v1479_v57 = vld [vmem:[#allocation4 + $0x90] sm:$0xff]  ;;  %v1004_v52 = vmul.f32 %v3892_v31, %v966_v43  ;;  %v1507_v2 = vmul.f32 %v4290_v24, %v1466_v53 }
 0x341   :  { %1446 = vst.msk [vmem:[#allocation4 + $0xb0] sm:$0xff] %vm50_vm1, %v1414_v49  ;;  %v1417_v63 = vadd.f32 %v2949_v54, %v999_v48  ;;  %v2964_v0 = vpack.i.bf16 %v1534_v3, %v1550_v50  ;;  %v1520_v4 = vmul.f32 %v4290_v24, %v1479_v57  ;;  %v1553_v44 = vmax.f32 %v1521_v29, 0.0 }
 0x342   :  { %v1353_v7 = vpop.f32.mrf.mxu0  ;;  %v1482_v47 = vld [vmem:[#allocation4 + $0xa8] sm:$0xff]  ;;  %v1005_v49 = vmul.f32 %v3892_v31, %v967_v39  ;;  %v1537_v3 = vmax.f32 %v1505_v36, 0.0  ;;  %v1506_v50 = vmul.f32 %v4290_v24, %v1465_v40  ;;  %v1539_v8 = vmax.f32 %v1507_v2, 0.0 }
 0x343   :  { %1449 = vst.msk [vmem:[#allocation4 + $0xc8] sm:$0xff] %vm50_vm1, %v1417_v63  ;;  %v1416_v18 = vadd.f32 %v1353_v7, %v998_v56  ;;  %2965 = vxpose.xlu1.b32.start [1/16] (narrow) %v2964_v0, 8  ;;  %v1552_v12 = vmax.f32 %v1520_v4, 0.0  ;;  %v1523_v58 = vmul.f32 %v4290_v24, %v1482_v47  ;;  %v1467_v4 = vld [vmem:[#allocation4 + $0x30] sm:$0xff]  ;;  %v1510_v29 = vmul.f32 %v4290_v24, %v1469_v25 }
 0x344   :  { %v2952_v22 = vpop.f32.mrf.mxu0  ;;  %v1481_v32 = vld [vmem:[#allocation4 + $0xa0] sm:$0xff]  ;;  %v2970_v56 = vpack.i.bf16 %v1537_v3, %v1553_v44  ;;  %v1538_v1 = vmax.f32 %v1506_v50, 0.0  ;;  %v1508_v16 = vmul.f32 %v4290_v24, %v1467_v4 }
 0x345   :  { %1448 = vst.msk [vmem:[#allocation4 + $0xc0] sm:$0xff] %vm50_vm1, %v1416_v18  ;;  %v1419_v9 = vadd.f32 %v2952_v22, %v1001_v19  ;;  %v2968_v42 = vpack.i.bf16 %v1536_v35, %v1552_v12  ;;  %v1522_v45 = vmul.f32 %v4290_v24, %v1481_v32  ;;  %v1555_v5 = vmax.f32 %v1523_v58, 0.0 }
 0x346   :  { %v1363_v30 = vpop.f32.mrf.mxu0  ;;  %v1484_v7 = vld [vmem:[#allocation4 + $0xb8] sm:$0xff]  ;;  %v1540_v22 = vmax.f32 %v1508_v16, 0.0  ;;  %v1542_v36 = vmax.f32 %v1510_v29, 0.0 }
 0x347   :  { %1451 = vst.msk [vmem:[#allocation4 + $0xd8] sm:$0xff] %vm50_vm1, %v1419_v9  ;;  %v1418_v33 = vadd.f32 %v1363_v30, %v1000_v23  ;;  %2967 = vxpose.xlu1.b32.cont [2/16] (narrow) %v2966_v27, 8  ;;  %v1554_v57 = vmax.f32 %v1522_v45, 0.0  ;;  %v2974_v18 = vpack.i.bf16 %v1539_v8, %v1555_v5  ;;  %v1525_v20 = vmul.f32 %v4290_v24, %v1484_v7  ;;  %v1470_v30 = vld [vmem:[#allocation4 + $0x48] sm:$0xff]  ;;  %v1472_v45 = vld [vmem:[#allocation4 + $0x58] sm:$0xff]  ;;  %v1475_v5 = vld [vmem:[#allocation4 + $0x70] sm:$0xff] }
 0x348   :  { %v2955_v37 = vpop.f32.mrf.mxu0  ;;  %v1483_v63 = vld [vmem:[#allocation4 + $0xb0] sm:$0xff]  ;;  %v1509_v23 = vmul.f32 %v4290_v24, %v1468_v17  ;;  %v1513_v50 = vmul.f32 %v4290_v24, %v1472_v45  ;;  %v1659_v45 = vld [vmem:[%s5191_s8 + $0x2e8] sm:$0xff] }
 0x349   :  { %1450 = vst.msk [vmem:[#allocation4 + $0xd0] sm:$0xff] %vm50_vm1, %v1418_v33  ;;  %v1421_v41 = vadd.f32 %v2955_v37, %v1003_v34  ;;  %v2972_v31 = vpack.i.bf16 %v1538_v1, %v1554_v57  ;;  %v1524_v6 = vmul.f32 %v4290_v24, %v1483_v63  ;;  %v1557_v9 = vmax.f32 %v1525_v20, 0.0 }
 0x34a   :  { %v1373_v46 = vpop.f32.mrf.mxu0  ;;  %v1486_v28 = vld [vmem:[#allocation4 + $0xc8] sm:$0xff]  ;;  %v1541_v12 = vmax.f32 %v1509_v23, 0.0  ;;  %v1511_v37 = vmul.f32 %v4290_v24, %v1470_v30  ;;  %v1545_v57 = vmax.f32 %v1513_v50, 0.0  ;;  %v1650_v50 = vld [vmem:[%s5191_s8 + $0x2a0] sm:$0xff] }
 0x34b   :  { %1453 = vst.msk [vmem:[#allocation4 + $0xe8] sm:$0xff] %vm50_vm1, %v1421_v41  ;;  %v1420_v48 = vadd.f32 %v1373_v46, %v1002_v38  ;;  %2969 = vxpose.xlu1.b32.cont [3/16] (narrow) %v2968_v42, 8  ;;  %v1556_v19 = vmax.f32 %v1524_v6, 0.0  ;;  %v1527_v34 = vmul.f32 %v4290_v24, %v1486_v28  ;;  %v1471_v38 = vld [vmem:[#allocation4 + $0x50] sm:$0xff] }
 0x34c   :  { %v2958_v51 = vpop.f32.mrf.mxu0  ;;  %v1485_v21 = vld [vmem:[#allocation4 + $0xc0] sm:$0xff]  ;;  %v2978_v32 = vpack.i.bf16 %v1541_v12, %v1557_v9  ;;  %v1543_v43 = vmax.f32 %v1511_v37, 0.0  ;;  %v1512_v44 = vmul.f32 %v4290_v24, %v1471_v38  ;;  %v1677_v38 = vld [vmem:[%s5191_s8 + $0x378] sm:$0xff] }
 0x34d   :  { %1452 = vst.msk [vmem:[#allocation4 + $0xe0] sm:$0xff] %vm50_vm1, %v1420_v48  ;;  %v1423_v54 = vadd.f32 %v2958_v51, %v1005_v49  ;;  %v2976_v26 = vpack.i.bf16 %v1540_v22, %v1556_v19  ;;  %v1526_v27 = vmul.f32 %v4290_v24, %v1485_v21  ;;  %v1559_v40 = vmax.f32 %v1527_v34, 0.0  ;;  %v1473_v51 = vld [vmem:[#allocation4 + $0x60] sm:$0xff]  ;;  %v1476_v19 = vld [vmem:[#allocation4 + $0x78] sm:$0xff] }
 0x34e   :  { %v1383_v62 = vpop.f32.mrf.mxu0  ;;  %v1488_v42 = vld [vmem:[#allocation4 + $0xd8] sm:$0xff]  ;;  %v1544_v3 = vmax.f32 %v1512_v44, 0.0  ;;  %v1514_v58 = vmul.f32 %v4290_v24, %v1473_v51  ;;  %v1517_v25 = vmul.f32 %v4290_v24, %v1476_v19  ;;  %v1675_v37 = vld [vmem:[%s5191_s8 + $0x368] sm:$0xff]  ;;  %v1668_v44 = vld [vmem:[%s5191_s8 + $0x330] sm:$0xff] }
 0x34f   :  { %1455 = vst.msk [vmem:[#allocation4 + $0xf8] sm:$0xff] %vm50_vm1, %v1423_v54  ;;  %v1422_v0 = vadd.f32 %v1383_v62, %v1004_v52  ;;  %2971 = vxpose.xlu1.b32.cont [4/16] (narrow) %v2970_v56, 8  ;;  %v1558_v33 = vmax.f32 %v1526_v27, 0.0  ;;  %v2982_v46 = vpack.i.bf16 %v1543_v43, %v1559_v40  ;;  %v1529_v48 = vmul.f32 %v4290_v24, %v1488_v42  ;;  %v1474_v62 = vld [vmem:[#allocation4 + $0x68] sm:$0xff]  ;;  %v1685_v34 = vld [vmem:[%s5191_s8 + $0x3b8] sm:$0xff]  ;;  %v1666_v43 = vld [vmem:[%s5191_s8 + $0x320] sm:$0xff] }
 0x350   :  { %v1487_v35 = vld [vmem:[#allocation4 + $0xd0] sm:$0xff]  ;;  %v1546_v4 = vmax.f32 %v1514_v58, 0.0  ;;  %v1549_v27 = vmax.f32 %v1517_v25, 0.0  ;;  %v1603_v19 = vld [vmem:[%s5191_s8 + $0x128] sm:$0xff] }
 0x351   :  { %1454 = vst.msk [vmem:[#allocation4 + $0xf0] sm:$0xff] %vm50_vm1, %v1422_v0  ;;  %v2980_v39 = vpack.i.bf16 %v1542_v36, %v1558_v33  ;;  %v1528_v41 = vmul.f32 %v4290_v24, %v1487_v35  ;;  %v1561_v53 = vmax.f32 %v1529_v48, 0.0  ;;  %v1692_v33 = vld [vmem:[%s5191_s8 + $0x3f0] sm:$0xff]  ;;  %v1682_v35 = vld [vmem:[%s5191_s8 + $0x3a0] sm:$0xff]  ;;  %v1669_v42 = vld [vmem:[%s5191_s8 + $0x338] sm:$0xff] }
 0x352   :  { %v1490_v56 = vld [vmem:[#allocation4 + $0xe8] sm:$0xff]  ;;  %v1637_v58 = vld [vmem:[%s5191_s8 + $0x238] sm:$0xff] }
 0x353   :  { %2973 = vxpose.xlu1.b32.cont [5/16] (narrow) %v2972_v31, 8  ;;  %v1560_v47 = vmax.f32 %v1528_v41, 0.0  ;;  %v2986_v63 = vpack.i.bf16 %v1545_v57, %v1561_v53  ;;  %v1531_v1 = vmul.f32 %v4290_v24, %v1490_v56  ;;  %v1515_v31 = vmul.f32 %v4290_v24, %v1474_v62  ;;  %v1684_v36 = vld [vmem:[%s5191_s8 + $0x3b0] sm:$0xff]  ;;  %v1667_v41 = vld [vmem:[%s5191_s8 + $0x328] sm:$0xff]  ;;  %v1645_v53 = vld [vmem:[%s5191_s8 + $0x278] sm:$0xff] }
 0x354   :  { %v1489_v49 = vld [vmem:[#allocation4 + $0xe0] sm:$0xff]  ;;  %v1676_v40 = vld [vmem:[%s5191_s8 + $0x370] sm:$0xff]  ;;  %v1597_v25 = vld [vmem:[%s5191_s8 + $0xf8] sm:$0xff] }
 0x355   :  { %v2984_v52 = vpack.i.bf16 %v1544_v3, %v1560_v47  ;;  %v1530_v54 = vmul.f32 %v4290_v24, %v1489_v49  ;;  %v1563_v7 = vmax.f32 %v1531_v1, 0.0  ;;  %v1547_v17 = vmax.f32 %v1515_v31, 0.0  ;;  %v1658_v47 = vld [vmem:[%s5191_s8 + $0x2e0] sm:$0xff]  ;;  %v1660_v48 = vld [vmem:[%s5191_s8 + $0x2f0] sm:$0xff]  ;;  %v1651_v49 = vld [vmem:[%s5191_s8 + $0x2a8] sm:$0xff] }
 0x356   :  { %v1492_v16 = vld [vmem:[#allocation4 + $0xf8] sm:$0xff]  ;;  %v1652_v51 = vld [vmem:[%s5191_s8 + $0x2b0] sm:$0xff]  ;;  %v1635_v57 = vld [vmem:[%s5191_s8 + $0x228] sm:$0xff] }
 0x357   :  { %2975 = vxpose.xlu1.b32.cont [6/16] (narrow) %v2974_v18, 8  ;;  %v1562_v0 = vmax.f32 %v1530_v54, 0.0  ;;  %v1516_v18 = vmul.f32 %v4290_v24, %v1475_v5  ;;  %v2990_v20 = vpack.i.bf16 %v1547_v17, %v1563_v7  ;;  %v1533_v22 = vmul.f32 %v4290_v24, %v1492_v16  ;;  %v1653_v3 = vld [vmem:[%s5191_s8 + $0x2b8] sm:$0xff]  ;;  %v1642_v54 = vld [vmem:[%s5191_s8 + $0x260] sm:$0xff]  ;;  %v1644_v56 = vld [vmem:[%s5191_s8 + $0x270] sm:$0xff] }
 0x358   :  { %v1491_v2 = vld [vmem:[#allocation4 + $0xf0] sm:$0xff]  ;;  %v1634_v62 = vld [vmem:[%s5191_s8 + $0x220] sm:$0xff]  ;;  %v1619_v31 = vld [vmem:[%s5191_s8 + $0x1a8] sm:$0xff] }
 0x359   :  { %v2988_v6 = vpack.i.bf16 %v1546_v4, %v1562_v0  ;;  %v1532_v8 = vmul.f32 %v4290_v24, %v1491_v2  ;;  %v1548_v23 = vmax.f32 %v1516_v18, 0.0  ;;  %v1565_v9 = vmax.f32 %v1533_v22, 0.0  ;;  %v1683_v24 = vld [vmem:[%s5191_s8 + $0x3a8] sm:$0xff]  ;;  %v1629_v1 = vld [vmem:[%s5191_s8 + $0x1f8] sm:$0xff]  ;;  %v1626_v2 = vld [vmem:[%s5191_s8 + $0x1e0] sm:$0xff] }
 0x35a   :  { %v1627_v0 = vld [vmem:[%s5191_s8 + $0x1e8] sm:$0xff]  ;;  %v1628_v4 = vld [vmem:[%s5191_s8 + $0x1f0] sm:$0xff]  ;;  %v1621_v5 = vld [vmem:[%s5191_s8 + $0x1b8] sm:$0xff] }
 0x35b   :  { %2977 = vxpose.xlu1.b32.cont [7/16] (narrow) %v2976_v26, 8  ;;  %v1564_v21 = vmax.f32 %v1532_v8, 0.0  ;;  %v2994_v28 = vpack.i.bf16 %v1549_v27, %v1565_v9  ;;  %v1620_v7 = vld [vmem:[%s5191_s8 + $0x1b0] sm:$0xff]  ;;  %v1611_v8 = vld [vmem:[%s5191_s8 + $0x168] sm:$0xff]  ;;  %v1613_v16 = vld [vmem:[%s5191_s8 + $0x178] sm:$0xff] }
 0x35c   :  { %v1610_v17 = vld [vmem:[%s5191_s8 + $0x160] sm:$0xff]  ;;  %v1612_v18 = vld [vmem:[%s5191_s8 + $0x170] sm:$0xff]  ;;  %v1587_v27 = vld [vmem:[%s5191_s8 + $0xa8] sm:$0xff] }
 0x35d   :  { %v2992_v26 = vpack.i.bf16 %v1548_v23, %v1564_v21  ;;  %v1602_v21 = vld [vmem:[%s5191_s8 + $0x120] sm:$0xff]  ;;  %v1604_v22 = vld [vmem:[%s5191_s8 + $0x130] sm:$0xff]  ;;  %v1595_v23 = vld [vmem:[%s5191_s8 + $0xe8] sm:$0xff] }
 0x35e   :  { %v1596_v9 = vld [vmem:[%s5191_s8 + $0xf0] sm:$0xff] }
 0x35f   :  { %2979 = vxpose.xlu1.b32.cont [8/16] (narrow) %v2978_v32, 8  ;;  %v1690_v32 = vld [vmem:[%s5191_s8 + $0x3e0] sm:$0xff] }
 0x363   :  { %2981 = vxpose.xlu1.b32.cont [9/16] (narrow) %v2980_v39, 8  ;;  %v1674_v39 = vld [vmem:[%s5191_s8 + $0x360] sm:$0xff] }
 0x367   :  { %2983 = vxpose.xlu1.b32.cont [10/16] (narrow) %v2982_v46, 8  ;;  %v1661_v46 = vld [vmem:[%s5191_s8 + $0x2f8] sm:$0xff] }
 0x36b   :  { %2985 = vxpose.xlu1.b32.cont [11/16] (narrow) %v2984_v52, 8  ;;  %v1643_v52 = vld [vmem:[%s5191_s8 + $0x268] sm:$0xff] }
 0x36f   :  { %2987 = vxpose.xlu1.b32.cont [12/16] (narrow) %v2986_v63, 8  ;;  %v1636_v63 = vld [vmem:[%s5191_s8 + $0x230] sm:$0xff] }
 0x373   :  { %2989 = vxpose.xlu1.b32.cont [13/16] (narrow) %v2988_v6, 8  ;;  %v1618_v6 = vld [vmem:[%s5191_s8 + $0x1a0] sm:$0xff] }
 0x377   :  { %2991 = vxpose.xlu1.b32.cont [14/16] (narrow) %v2990_v20, 8  ;;  %v1605_v20 = vld [vmem:[%s5191_s8 + $0x138] sm:$0xff] }
 0x37b   :  { %2993 = vxpose.xlu1.b32.cont [15/16] (narrow) %v2992_v26, 8  ;;  %v1594_v26 = vld [vmem:[%s5191_s8 + $0xe0] sm:$0xff] }
 0x37f   :  { %2995 = vxpose.xlu1.b32.end [16/16] (narrow) %v2994_v28, 8  ;;  %v1589_v28 = vld [vmem:[%s5191_s8 + $0xb8] sm:$0xff] }
 0x3bf   :  { %v2996_v12 = vpop.trf.xlu1 }
 0x3c0   :  { %v4384_v29 = vunpack.i.h.bf16 %v2996_v12  ;;  %v2997_v30 = vunpack.i.l.bf16 %v2996_v12  ;;  %v1586_v12 = vld [vmem:[%s5191_s8 + $0xa0] sm:$0xff] }
 0x3c2   :  { %1992 = vmatprep.mubr.f32.mxu1 %v2997_v30  ;;  %2063 = vmatprep.mubr.f32.mxu0 %v2997_v30 }
 0x3c3   :  { %1993 = vmatmul.mubr.f32.vlgmr.msra.gmra.mxu1 %v4384_v29  ;;  %2064 = vmatmul.mubr.f32.vlgmr.msra.gmra.mxu0 %v4384_v29 }
 0x3c4   :  { %2071 = vmatpush1.msra.mxu1 %v1690_v32  ;;  %2142 = vmatpush1.msra.mxu0 %v1692_v33  ;;  %v1579_v32 = vld [vmem:[%s5191_s8 + $0x68] sm:$0xff]  ;;  %v1581_v33 = vld [vmem:[%s5191_s8 + $0x78] sm:$0xff] }
 0x3c5   :  { %2072 = vmatprep.subr.mxu1 %v1683_v24  ;;  %2134 = vmatprep.mubr.f32.mxu1 %v2997_v30  ;;  %v1578_v24 = vld [vmem:[%s5191_s8 + $0x60] sm:$0xff] }
 0x3c6   :  { %2143 = vmatprep.subr.mxu0 %v1685_v34  ;;  %2205 = vmatprep.mubr.f32.mxu0 %v2997_v30  ;;  %v1588_v30 = vld [vmem:[%s5191_s8 + $0xb0] sm:$0xff] }
 0x3c7   :  { %2073 = vmatpush1.msra.mxu1 %v1682_v35  ;;  %2144 = vmatpush1.msra.mxu0 %v1684_v36  ;;  %v1580_v34 = vld [vmem:[%s5191_s8 + $0x70] sm:$0xff]  ;;  %v1571_v35 = vld [vmem:[%s5191_s8 + $0x28] sm:$0xff]  ;;  %v1573_v36 = vld [vmem:[%s5191_s8 + $0x38] sm:$0xff] }
 0x3c8   :  { %2074 = vmatprep.subr.mxu1 %v1675_v37  ;;  %2145 = vmatprep.subr.mxu0 %v1677_v38  ;;  %v1570_v37 = vld [vmem:[%s5191_s8 + $0x20] sm:$0xff]  ;;  %v1572_v38 = vld [vmem:[%s5191_s8 + $0x30] sm:$0xff] }
 0x3c9   :  { %2075 = vmatpush1.msra.mxu1 %v1674_v39  ;;  %2146 = vmatpush1.msra.mxu0 %v1676_v40  ;;  %v1819_v39 = vld [vmem:[%s5191_s8 + $0x7e8] sm:$0xff]  ;;  %v1821_v40 = vld [vmem:[%s5191_s8 + $0x7f8] sm:$0xff] }
 0x3ca   :  { %2076 = vmatprep.subr.mxu1 %v1667_v41  ;;  %2147 = vmatprep.subr.mxu0 %v1669_v42  ;;  %v1818_v41 = vld [vmem:[%s5191_s8 + $0x7e0] sm:$0xff]  ;;  %v1820_v42 = vld [vmem:[%s5191_s8 + $0x7f0] sm:$0xff] }
 0x3cb   :  { %2077 = vmatpush1.msra.mxu1 %v1666_v43  ;;  %2148 = vmatpush1.msra.mxu0 %v1668_v44  ;;  %v1811_v43 = vld [vmem:[%s5191_s8 + $0x7a8] sm:$0xff]  ;;  %v1813_v44 = vld [vmem:[%s5191_s8 + $0x7b8] sm:$0xff] }
 0x3cc   :  { %2078 = vmatprep.subr.mxu1 %v1659_v45  ;;  %2149 = vmatprep.subr.mxu0 %v1661_v46  ;;  %v1810_v45 = vld [vmem:[%s5191_s8 + $0x7a0] sm:$0xff]  ;;  %v1812_v46 = vld [vmem:[%s5191_s8 + $0x7b0] sm:$0xff] }
 0x3cd   :  { %2079 = vmatpush1.msra.mxu1 %v1658_v47  ;;  %2150 = vmatpush1.msra.mxu0 %v1660_v48  ;;  %v1803_v47 = vld [vmem:[%s5191_s8 + $0x768] sm:$0xff]  ;;  %v1805_v48 = vld [vmem:[%s5191_s8 + $0x778] sm:$0xff] }
 0x3ce   :  { %2080 = vmatprep.subr.mxu1 %v1651_v49  ;;  %2151 = vmatprep.subr.mxu0 %v1653_v3  ;;  %v1802_v49 = vld [vmem:[%s5191_s8 + $0x760] sm:$0xff]  ;;  %v1804_v3 = vld [vmem:[%s5191_s8 + $0x770] sm:$0xff] }
 0x3cf   :  { %2081 = vmatpush1.msra.mxu1 %v1650_v50  ;;  %2152 = vmatpush1.msra.mxu0 %v1652_v51  ;;  %v1795_v50 = vld [vmem:[%s5191_s8 + $0x728] sm:$0xff]  ;;  %v1797_v51 = vld [vmem:[%s5191_s8 + $0x738] sm:$0xff] }
 0x3d0   :  { %2082 = vmatprep.subr.mxu1 %v1643_v52  ;;  %2153 = vmatprep.subr.mxu0 %v1645_v53  ;;  %v1794_v52 = vld [vmem:[%s5191_s8 + $0x720] sm:$0xff]  ;;  %v1796_v53 = vld [vmem:[%s5191_s8 + $0x730] sm:$0xff] }
 0x3d1   :  { %2083 = vmatpush1.msra.mxu1 %v1642_v54  ;;  %2154 = vmatpush1.msra.mxu0 %v1644_v56  ;;  %v1787_v54 = vld [vmem:[%s5191_s8 + $0x6e8] sm:$0xff]  ;;  %v1789_v56 = vld [vmem:[%s5191_s8 + $0x6f8] sm:$0xff] }
 0x3d2   :  { %2084 = vmatprep.subr.mxu1 %v1635_v57  ;;  %2155 = vmatprep.subr.mxu0 %v1637_v58  ;;  %v1786_v57 = vld [vmem:[%s5191_s8 + $0x6e0] sm:$0xff]  ;;  %v1788_v58 = vld [vmem:[%s5191_s8 + $0x6f0] sm:$0xff] }
 0x3d3   :  { %2085 = vmatpush1.msra.mxu1 %v1634_v62  ;;  %2156 = vmatpush1.msra.mxu0 %v1636_v63  ;;  %v1779_v62 = vld [vmem:[%s5191_s8 + $0x6a8] sm:$0xff]  ;;  %v1781_v63 = vld [vmem:[%s5191_s8 + $0x6b8] sm:$0xff] }
 0x3d4   :  { %2086 = vmatprep.subr.mxu1 %v1627_v0  ;;  %2157 = vmatprep.subr.mxu0 %v1629_v1  ;;  %v1778_v0 = vld [vmem:[%s5191_s8 + $0x6a0] sm:$0xff]  ;;  %v1780_v1 = vld [vmem:[%s5191_s8 + $0x6b0] sm:$0xff] }
 0x3d5   :  { %2087 = vmatpush1.msra.mxu1 %v1626_v2  ;;  %2158 = vmatpush1.msra.mxu0 %v1628_v4  ;;  %v1771_v2 = vld [vmem:[%s5191_s8 + $0x668] sm:$0xff]  ;;  %v1773_v4 = vld [vmem:[%s5191_s8 + $0x678] sm:$0xff] }
 0x3d6   :  { %2088 = vmatprep.subr.mxu1 %v1619_v31  ;;  %2159 = vmatprep.subr.mxu0 %v1621_v5  ;;  %v1770_v31 = vld [vmem:[%s5191_s8 + $0x660] sm:$0xff]  ;;  %v1772_v5 = vld [vmem:[%s5191_s8 + $0x670] sm:$0xff] }
 0x3d7   :  { %2089 = vmatpush1.msra.mxu1 %v1618_v6  ;;  %2160 = vmatpush1.msra.mxu0 %v1620_v7  ;;  %v1763_v6 = vld [vmem:[%s5191_s8 + $0x628] sm:$0xff]  ;;  %v1765_v7 = vld [vmem:[%s5191_s8 + $0x638] sm:$0xff] }
 0x3d8   :  { %2090 = vmatprep.subr.mxu1 %v1611_v8  ;;  %2161 = vmatprep.subr.mxu0 %v1613_v16  ;;  %v1762_v8 = vld [vmem:[%s5191_s8 + $0x620] sm:$0xff]  ;;  %v1764_v16 = vld [vmem:[%s5191_s8 + $0x630] sm:$0xff] }
 0x3d9   :  { %2091 = vmatpush1.msra.mxu1 %v1610_v17  ;;  %2162 = vmatpush1.msra.mxu0 %v1612_v18  ;;  %v1755_v17 = vld [vmem:[%s5191_s8 + $0x5e8] sm:$0xff]  ;;  %v1757_v18 = vld [vmem:[%s5191_s8 + $0x5f8] sm:$0xff] }
 0x3da   :  { %2092 = vmatprep.subr.mxu1 %v1603_v19  ;;  %2163 = vmatprep.subr.mxu0 %v1605_v20  ;;  %v1754_v19 = vld [vmem:[%s5191_s8 + $0x5e0] sm:$0xff]  ;;  %v1756_v20 = vld [vmem:[%s5191_s8 + $0x5f0] sm:$0xff] }
 0x3db   :  { %2093 = vmatpush1.msra.mxu1 %v1602_v21  ;;  %2164 = vmatpush1.msra.mxu0 %v1604_v22  ;;  %v1747_v21 = vld [vmem:[%s5191_s8 + $0x5a8] sm:$0xff]  ;;  %v1749_v22 = vld [vmem:[%s5191_s8 + $0x5b8] sm:$0xff] }
 0x3dc   :  { %2094 = vmatprep.subr.mxu1 %v1595_v23  ;;  %2165 = vmatprep.subr.mxu0 %v1597_v25  ;;  %v1746_v23 = vld [vmem:[%s5191_s8 + $0x5a0] sm:$0xff]  ;;  %v1748_v25 = vld [vmem:[%s5191_s8 + $0x5b0] sm:$0xff] }
 0x3dd   :  { %2095 = vmatpush1.msra.mxu1 %v1594_v26  ;;  %2166 = vmatpush1.msra.mxu0 %v1596_v9  ;;  %v1739_v26 = vld [vmem:[%s5191_s8 + $0x568] sm:$0xff]  ;;  %v1741_v9 = vld [vmem:[%s5191_s8 + $0x578] sm:$0xff] }
 0x3de   :  { %2096 = vmatprep.subr.mxu1 %v1587_v27  ;;  %2167 = vmatprep.subr.mxu0 %v1589_v28  ;;  %v1738_v27 = vld [vmem:[%s5191_s8 + $0x560] sm:$0xff]  ;;  %v1740_v28 = vld [vmem:[%s5191_s8 + $0x570] sm:$0xff] }
 0x3df   :  { %2097 = vmatpush1.msra.mxu1 %v1586_v12  ;;  %2168 = vmatpush1.msra.mxu0 %v1588_v30  ;;  %v1731_v12 = vld [vmem:[%s5191_s8 + $0x528] sm:$0xff]  ;;  %v1733_v30 = vld [vmem:[%s5191_s8 + $0x538] sm:$0xff] }
 0x3e0   :  { %2098 = vmatprep.subr.mxu1 %v1579_v32  ;;  %2169 = vmatprep.subr.mxu0 %v1581_v33  ;;  %v1730_v32 = vld [vmem:[%s5191_s8 + $0x520] sm:$0xff]  ;;  %v1732_v33 = vld [vmem:[%s5191_s8 + $0x530] sm:$0xff] }
 0x3e1   :  { %2099 = vmatpush1.msra.mxu1 %v1578_v24  ;;  %2170 = vmatpush1.msra.mxu0 %v1580_v34  ;;  %v1723_v24 = vld [vmem:[%s5191_s8 + $0x4e8] sm:$0xff]  ;;  %v1725_v34 = vld [vmem:[%s5191_s8 + $0x4f8] sm:$0xff] }
 0x3e2   :  { %2100 = vmatprep.subr.mxu1 %v1571_v35  ;;  %2171 = vmatprep.subr.mxu0 %v1573_v36  ;;  %v1722_v35 = vld [vmem:[%s5191_s8 + $0x4e0] sm:$0xff]  ;;  %v1724_v36 = vld [vmem:[%s5191_s8 + $0x4f0] sm:$0xff] }
 0x3e3   :  { %2101 = vmatpush1.msra.mxu1 %v1570_v37  ;;  %2172 = vmatpush1.msra.mxu0 %v1572_v38  ;;  %v1715_v37 = vld [vmem:[%s5191_s8 + $0x4a8] sm:$0xff]  ;;  %v1717_v38 = vld [vmem:[%s5191_s8 + $0x4b8] sm:$0xff] }
 0x3e4   :  { %2102 = vmatprep.subr.mxu1 %v1819_v39  ;;  %2173 = vmatprep.subr.mxu0 %v1821_v40  ;;  %v1714_v39 = vld [vmem:[%s5191_s8 + $0x4a0] sm:$0xff]  ;;  %v1716_v40 = vld [vmem:[%s5191_s8 + $0x4b0] sm:$0xff] }
 0x3e5   :  { %2103 = vmatpush2.msra.mxu1 %v1818_v41  ;;  %2174 = vmatpush2.msra.mxu0 %v1820_v42  ;;  %v1707_v41 = vld [vmem:[%s5191_s8 + $0x468] sm:$0xff]  ;;  %v1709_v42 = vld [vmem:[%s5191_s8 + $0x478] sm:$0xff] }
 0x3e6   :  { %2104 = vmatprep.subr.mxu1 %v1811_v43  ;;  %2175 = vmatprep.subr.mxu0 %v1813_v44  ;;  %v1706_v43 = vld [vmem:[%s5191_s8 + $0x460] sm:$0xff]  ;;  %v1708_v44 = vld [vmem:[%s5191_s8 + $0x470] sm:$0xff] }
 0x3e7   :  { %2105 = vmatpush2.msra.mxu1 %v1810_v45  ;;  %2176 = vmatpush2.msra.mxu0 %v1812_v46  ;;  %v1699_v45 = vld [vmem:[%s5191_s8 + $0x428] sm:$0xff]  ;;  %v1701_v46 = vld [vmem:[%s5191_s8 + $0x438] sm:$0xff] }
 0x3e8   :  { %2106 = vmatprep.subr.mxu1 %v1803_v47  ;;  %2177 = vmatprep.subr.mxu0 %v1805_v48  ;;  %v1698_v47 = vld [vmem:[%s5191_s8 + $0x420] sm:$0xff]  ;;  %v1700_v48 = vld [vmem:[%s5191_s8 + $0x430] sm:$0xff] }
 0x3e9   :  { %2107 = vmatpush2.msra.mxu1 %v1802_v49  ;;  %2178 = vmatpush2.msra.mxu0 %v1804_v3  ;;  %v2291_v49 = vld [vmem:[%s5192_s10 + $0xf8] sm:$0xff] }
 0x3ea   :  { %2108 = vmatprep.subr.mxu1 %v1795_v50  ;;  %2179 = vmatprep.subr.mxu0 %v1797_v51  ;;  %v2323_v3 = vld [vmem:[%s5192_s10 + $0x1f8] sm:$0xff] }
 0x3eb   :  { %2109 = vmatpush2.msra.mxu1 %v1794_v52  ;;  %2180 = vmatpush2.msra.mxu0 %v1796_v53  ;;  %v2275_v50 = vld [vmem:[%s5192_s10 + $0x78] sm:$0xff]  ;;  %v2322_v52 = vld [vmem:[%s5192_s10 + $0x1f0] sm:$0xff] }
 0x3ec   :  { %2110 = vmatprep.subr.mxu1 %v1787_v54  ;;  %2181 = vmatprep.subr.mxu0 %v1789_v56  ;;  %v2307_v51 = vld [vmem:[%s5192_s10 + $0x178] sm:$0xff]  ;;  %v2274_v53 = vld [vmem:[%s5192_s10 + $0x70] sm:$0xff]  ;;  %v2289_v56 = vld [vmem:[%s5192_s10 + $0xe8] sm:$0xff] }
 0x3ed   :  { %2111 = vmatpush2.msra.mxu1 %v1786_v57  ;;  %2182 = vmatpush2.msra.mxu0 %v1788_v58  ;;  %v2306_v54 = vld [vmem:[%s5192_s10 + $0x170] sm:$0xff]  ;;  %v2321_v57 = vld [vmem:[%s5192_s10 + $0x1e8] sm:$0xff] }
 0x3ee   :  { %2112 = vmatprep.subr.mxu1 %v1779_v62  ;;  %2183 = vmatprep.subr.mxu0 %v1781_v63  ;;  %v2273_v58 = vld [vmem:[%s5192_s10 + $0x68] sm:$0xff]  ;;  %v2288_v63 = vld [vmem:[%s5192_s10 + $0xe0] sm:$0xff] }
 0x3ef   :  { %2113 = vmatpush2.msra.mxu1 %v1778_v0  ;;  %2184 = vmatpush2.msra.mxu0 %v1780_v1  ;;  %v2305_v62 = vld [vmem:[%s5192_s10 + $0x168] sm:$0xff]  ;;  %v2320_v0 = vld [vmem:[%s5192_s10 + $0x1e0] sm:$0xff] }
 0x3f0   :  { %2114 = vmatprep.subr.mxu1 %v1771_v2  ;;  %2185 = vmatprep.subr.mxu0 %v1773_v4  ;;  %v2272_v1 = vld [vmem:[%s5192_s10 + $0x60] sm:$0xff]  ;;  %v2287_v4 = vld [vmem:[%s5192_s10 + $0xd8] sm:$0xff] }
 0x3f1   :  { %2115 = vmatpush2.msra.mxu1 %v1770_v31  ;;  %2186 = vmatpush2.msra.mxu0 %v1772_v5  ;;  %v2304_v2 = vld [vmem:[%s5192_s10 + $0x160] sm:$0xff]  ;;  %v2319_v31 = vld [vmem:[%s5192_s10 + $0x1d8] sm:$0xff] }
 0x3f2   :  { %2116 = vmatprep.subr.mxu1 %v1763_v6  ;;  %2187 = vmatprep.subr.mxu0 %v1765_v7  ;;  %v2271_v5 = vld [vmem:[%s5192_s10 + $0x58] sm:$0xff]  ;;  %v2286_v7 = vld [vmem:[%s5192_s10 + $0xd0] sm:$0xff] }
 0x3f3   :  { %2117 = vmatpush2.msra.mxu1 %v1762_v8  ;;  %2188 = vmatpush2.msra.mxu0 %v1764_v16  ;;  %v2303_v6 = vld [vmem:[%s5192_s10 + $0x158] sm:$0xff]  ;;  %v2318_v8 = vld [vmem:[%s5192_s10 + $0x1d0] sm:$0xff] }
 0x3f4   :  { %2118 = vmatprep.subr.mxu1 %v1755_v17  ;;  %2189 = vmatprep.subr.mxu0 %v1757_v18  ;;  %v2270_v16 = vld [vmem:[%s5192_s10 + $0x50] sm:$0xff]  ;;  %v2285_v18 = vld [vmem:[%s5192_s10 + $0xc8] sm:$0xff] }
 0x3f5   :  { %2119 = vmatpush2.msra.mxu1 %v1754_v19  ;;  %2190 = vmatpush2.msra.mxu0 %v1756_v20  ;;  %v2302_v17 = vld [vmem:[%s5192_s10 + $0x150] sm:$0xff]  ;;  %v2317_v19 = vld [vmem:[%s5192_s10 + $0x1c8] sm:$0xff] }
 0x3f6   :  { %2120 = vmatprep.subr.mxu1 %v1747_v21  ;;  %2191 = vmatprep.subr.mxu0 %v1749_v22  ;;  %v2269_v20 = vld [vmem:[%s5192_s10 + $0x48] sm:$0xff]  ;;  %v2284_v22 = vld [vmem:[%s5192_s10 + $0xc0] sm:$0xff] }
 0x3f7   :  { %2121 = vmatpush2.msra.mxu1 %v1746_v23  ;;  %2192 = vmatpush2.msra.mxu0 %v1748_v25  ;;  %v2301_v21 = vld [vmem:[%s5192_s10 + $0x148] sm:$0xff]  ;;  %v2316_v23 = vld [vmem:[%s5192_s10 + $0x1c0] sm:$0xff] }
 0x3f8   :  { %2122 = vmatprep.subr.mxu1 %v1739_v26  ;;  %2193 = vmatprep.subr.mxu0 %v1741_v9  ;;  %v2268_v25 = vld [vmem:[%s5192_s10 + $0x40] sm:$0xff]  ;;  %v2283_v9 = vld [vmem:[%s5192_s10 + $0xb8] sm:$0xff] }
 0x3f9   :  { %2123 = vmatpush2.msra.mxu1 %v1738_v27  ;;  %2194 = vmatpush2.msra.mxu0 %v1740_v28  ;;  %v2300_v26 = vld [vmem:[%s5192_s10 + $0x140] sm:$0xff]  ;;  %v2315_v27 = vld [vmem:[%s5192_s10 + $0x1b8] sm:$0xff] }
 0x3fa   :  { %2124 = vmatprep.subr.mxu1 %v1731_v12  ;;  %2195 = vmatprep.subr.mxu0 %v1733_v30  ;;  %v2267_v28 = vld [vmem:[%s5192_s10 + $0x38] sm:$0xff]  ;;  %v2282_v30 = vld [vmem:[%s5192_s10 + $0xb0] sm:$0xff] }
 0x3fb   :  { %2125 = vmatpush2.msra.mxu1 %v1730_v32  ;;  %2196 = vmatpush2.msra.mxu0 %v1732_v33  ;;  %v2299_v12 = vld [vmem:[%s5192_s10 + $0x138] sm:$0xff]  ;;  %v2314_v32 = vld [vmem:[%s5192_s10 + $0x1b0] sm:$0xff] }
 0x3fc   :  { %2126 = vmatprep.subr.mxu1 %v1723_v24  ;;  %2197 = vmatprep.subr.mxu0 %v1725_v34  ;;  %v2266_v33 = vld [vmem:[%s5192_s10 + $0x30] sm:$0xff]  ;;  %v2281_v34 = vld [vmem:[%s5192_s10 + $0xa8] sm:$0xff] }
 0x3fd   :  { %2127 = vmatpush2.msra.mxu1 %v1722_v35  ;;  %2198 = vmatpush2.msra.mxu0 %v1724_v36  ;;  %v2298_v24 = vld [vmem:[%s5192_s10 + $0x130] sm:$0xff]  ;;  %v2313_v35 = vld [vmem:[%s5192_s10 + $0x1a8] sm:$0xff] }
 0x3fe   :  { %2128 = vmatprep.subr.mxu1 %v1715_v37  ;;  %2199 = vmatprep.subr.mxu0 %v1717_v38  ;;  %v2265_v36 = vld [vmem:[%s5192_s10 + $0x28] sm:$0xff]  ;;  %v2280_v38 = vld [vmem:[%s5192_s10 + $0xa0] sm:$0xff] }
 0x3ff   :  { %2129 = vmatpush2.msra.mxu1 %v1714_v39  ;;  %2200 = vmatpush2.msra.mxu0 %v1716_v40  ;;  %v2297_v37 = vld [vmem:[%s5192_s10 + $0x128] sm:$0xff]  ;;  %v2312_v39 = vld [vmem:[%s5192_s10 + $0x1a0] sm:$0xff] }
 0x400   :  { %2130 = vmatprep.subr.mxu1 %v1707_v41  ;;  %2201 = vmatprep.subr.mxu0 %v1709_v42  ;;  %v2264_v40 = vld [vmem:[%s5192_s10 + $0x20] sm:$0xff]  ;;  %v2279_v42 = vld [vmem:[%s5192_s10 + $0x98] sm:$0xff] }
 0x401   :  { %2131 = vmatpush2.msra.mxu1 %v1706_v43  ;;  %2202 = vmatpush2.msra.mxu0 %v1708_v44  ;;  %v2296_v41 = vld [vmem:[%s5192_s10 + $0x120] sm:$0xff]  ;;  %v2311_v43 = vld [vmem:[%s5192_s10 + $0x198] sm:$0xff] }
 0x402   :  { %2132 = vmatprep.subr.mxu1 %v1699_v45  ;;  %2203 = vmatprep.subr.mxu0 %v1701_v46  ;;  %v2263_v44 = vld [vmem:[%s5192_s10 + $0x18] sm:$0xff]  ;;  %v2278_v46 = vld [vmem:[%s5192_s10 + $0x90] sm:$0xff] }
 0x403   :  { %2133 = vmatpush2.msra.mxu1 %v1698_v47  ;;  %2204 = vmatpush2.msra.mxu0 %v1700_v48  ;;  %v2295_v45 = vld [vmem:[%s5192_s10 + $0x118] sm:$0xff]  ;;  %v2310_v47 = vld [vmem:[%s5192_s10 + $0x190] sm:$0xff] }
 0x404   :  { %2135 = vmatmul.mubr.f32.vlgmr.msra.gmra.mxu1 %v4384_v29  ;;  %2206 = vmatmul.mubr.f32.vlgmr.msra.gmra.mxu0 %v4384_v29  ;;  %v2290_v29 = vld [vmem:[%s5192_s10 + $0xf0] sm:$0xff] }
 0x405   :  { %2767 = vmatprep.subr.mxu1 %v2291_v49  ;;  %2802 = vmatprep.subr.mxu0 %v2323_v3  ;;  %v2262_v48 = vld [vmem:[%s5192_s10 + $0x10] sm:$0xff]  ;;  %v2277_v3 = vld [vmem:[%s5192_s10 + $0x88] sm:$0xff] }
 0x406   :  { %2768 = vmatpush3.msra.mxu1 %v2275_v50  ;;  %2803 = vmatpush3.msra.mxu0 %v2307_v51  ;;  %v2294_v49 = vld [vmem:[%s5192_s10 + $0x110] sm:$0xff]  ;;  %v2309_v50 = vld [vmem:[%s5192_s10 + $0x188] sm:$0xff] }
 0x407   :  { %2769 = vmatprep.subr.mxu1 %v2290_v29  ;;  %2804 = vmatprep.subr.mxu0 %v2322_v52  ;;  %v2261_v51 = vld [vmem:[%s5192_s10 + $0x8] sm:$0xff]  ;;  %v2276_v52 = vld [vmem:[%s5192_s10 + $0x80] sm:$0xff] }
 0x408   :  { %2770 = vmatpush3.msra.mxu1 %v2274_v53  ;;  %2805 = vmatpush3.msra.mxu0 %v2306_v54  ;;  %v2293_v29 = vld [vmem:[%s5192_s10 + $0x108] sm:$0xff]  ;;  %v2308_v53 = vld [vmem:[%s5192_s10 + $0x180] sm:$0xff] }
 0x409   :  { %2771 = vmatprep.subr.mxu1 %v2289_v56  ;;  %2806 = vmatprep.subr.mxu0 %v2321_v57  ;;  %v2260_v54 = vld [vmem:[%s5192_s10] sm:$0xff]  ;;  %v2355_v57 = vld [vmem:[%s5192_s10 + $0x2f8] sm:$0xff] }
 0x40a   :  { %2772 = vmatpush3.msra.mxu1 %v2273_v58  ;;  %2807 = vmatpush3.msra.mxu0 %v2305_v62  ;;  %v2292_v56 = vld [vmem:[%s5192_s10 + $0x100] sm:$0xff]  ;;  %v2387_v58 = vld [vmem:[%s5192_s10 + $0x3f8] sm:$0xff] }
 0x40b   :  { %2773 = vmatprep.subr.mxu1 %v2288_v63  ;;  %2808 = vmatprep.subr.mxu0 %v2320_v0  ;;  %v4969_v62 = vld [vmem:[%s5193_s9] sm:$0xff] }
 0x40c   :  { %2774 = vmatpush3.msra.mxu1 %v2272_v1  ;;  %2809 = vmatpush3.msra.mxu0 %v2304_v2  ;;  %v1827_v63 = vrot.slane %v4969_v62, %v3729_v11  ;;  %v1835_v0 = vrot.slane %v4969_v62, %v3735_v13  ;;  %v1831_v1 = vrot.slane %v4969_v62, %v3738_v14 }
 0x40d   :  { %2775 = vmatprep.subr.mxu1 %v2287_v4  ;;  %2810 = vmatprep.subr.mxu0 %v2319_v31  ;;  %v1839_v2 = vrot.slane %v4969_v62, %v3741_v15 }
 0x40e   :  { %2776 = vmatpush3.msra.mxu1 %v2271_v5  ;;  %2811 = vmatpush3.msra.mxu0 %v2303_v6 }
 0x40f   :  { %2777 = vmatprep.subr.mxu1 %v2286_v7  ;;  %2812 = vmatprep.subr.mxu0 %v2318_v8 }
 0x410   :  { %2778 = vmatpush3.msra.mxu1 %v2270_v16  ;;  %2813 = vmatpush3.msra.mxu0 %v2302_v17 }
 0x411   :  { %2779 = vmatprep.subr.mxu1 %v2285_v18  ;;  %2814 = vmatprep.subr.mxu0 %v2317_v19 }
 0x412   :  { %2780 = vmatpush3.msra.mxu1 %v2269_v20  ;;  %2815 = vmatpush3.msra.mxu0 %v2301_v21 }
 0x413   :  { %2781 = vmatprep.subr.mxu1 %v2284_v22  ;;  %2816 = vmatprep.subr.mxu0 %v2316_v23 }
 0x414   :  { %2782 = vmatpush3.msra.mxu1 %v2268_v25  ;;  %2817 = vmatpush3.msra.mxu0 %v2300_v26 }
 0x415   :  { %2783 = vmatprep.subr.mxu1 %v2283_v9  ;;  %2818 = vmatprep.subr.mxu0 %v2315_v27 }
 0x416   :  { %2784 = vmatpush3.msra.mxu1 %v2267_v28  ;;  %2819 = vmatpush3.msra.mxu0 %v2299_v12  ;;  %v2339_v28 = vld [vmem:[%s5192_s10 + $0x278] sm:$0xff] }
 0x417   :  { %2785 = vmatprep.subr.mxu1 %v2282_v30  ;;  %2820 = vmatprep.subr.mxu0 %v2314_v32  ;;  %v2371_v30 = vld [vmem:[%s5192_s10 + $0x378] sm:$0xff]  ;;  %v2354_v32 = vld [vmem:[%s5192_s10 + $0x2f0] sm:$0xff] }
 0x418   :  { %2786 = vmatpush3.msra.mxu1 %v2266_v33  ;;  %2821 = vmatpush3.msra.mxu0 %v2298_v24  ;;  %v2386_v24 = vld [vmem:[%s5192_s10 + $0x3f0] sm:$0xff] }
 0x419   :  { %2787 = vmatprep.subr.mxu1 %v2281_v34  ;;  %2822 = vmatprep.subr.mxu0 %v2313_v35  ;;  %v2338_v34 = vld [vmem:[%s5192_s10 + $0x270] sm:$0xff] }
 0x41a   :  { %2788 = vmatpush3.msra.mxu1 %v2265_v36  ;;  %2823 = vmatpush3.msra.mxu0 %v2297_v37  ;;  %v2370_v35 = vld [vmem:[%s5192_s10 + $0x370] sm:$0xff]  ;;  %v2353_v36 = vld [vmem:[%s5192_s10 + $0x2e8] sm:$0xff] }
 0x41b   :  { %2789 = vmatprep.subr.mxu1 %v2280_v38  ;;  %2824 = vmatprep.subr.mxu0 %v2312_v39  ;;  %v2385_v37 = vld [vmem:[%s5192_s10 + $0x3e8] sm:$0xff] }
 0x41c   :  { %2790 = vmatpush3.msra.mxu1 %v2264_v40  ;;  %2825 = vmatpush3.msra.mxu0 %v2296_v41  ;;  %v2337_v38 = vld [vmem:[%s5192_s10 + $0x268] sm:$0xff]  ;;  %v2352_v40 = vld [vmem:[%s5192_s10 + $0x2e0] sm:$0xff] }
 0x41d   :  { %2791 = vmatprep.subr.mxu1 %v2279_v42  ;;  %2826 = vmatprep.subr.mxu0 %v2311_v43  ;;  %v2369_v39 = vld [vmem:[%s5192_s10 + $0x368] sm:$0xff]  ;;  %v2384_v41 = vld [vmem:[%s5192_s10 + $0x3e0] sm:$0xff] }
 0x41e   :  { %2792 = vmatpush3.msra.mxu1 %v2263_v44  ;;  %2827 = vmatpush3.msra.mxu0 %v2295_v45  ;;  %v2336_v42 = vld [vmem:[%s5192_s10 + $0x260] sm:$0xff]  ;;  %v2351_v44 = vld [vmem:[%s5192_s10 + $0x2d8] sm:$0xff] }
 0x41f   :  { %2793 = vmatprep.subr.mxu1 %v2278_v46  ;;  %2828 = vmatprep.subr.mxu0 %v2310_v47  ;;  %v2368_v43 = vld [vmem:[%s5192_s10 + $0x360] sm:$0xff]  ;;  %v2383_v45 = vld [vmem:[%s5192_s10 + $0x3d8] sm:$0xff] }
 0x420   :  { %2794 = vmatpush3.msra.mxu1 %v2262_v48  ;;  %2829 = vmatpush3.msra.mxu0 %v2294_v49  ;;  %v2335_v46 = vld [vmem:[%s5192_s10 + $0x258] sm:$0xff]  ;;  %v2350_v48 = vld [vmem:[%s5192_s10 + $0x2d0] sm:$0xff] }
 0x421   :  { %2795 = vmatprep.subr.mxu1 %v2277_v3  ;;  %2830 = vmatprep.subr.mxu0 %v2309_v50  ;;  %v2367_v47 = vld [vmem:[%s5192_s10 + $0x358] sm:$0xff]  ;;  %v2382_v49 = vld [vmem:[%s5192_s10 + $0x3d0] sm:$0xff] }
 0x422   :  { %2796 = vmatpush3.msra.mxu1 %v2261_v51  ;;  %2831 = vmatpush3.msra.mxu0 %v2293_v29  ;;  %v2334_v3 = vld [vmem:[%s5192_s10 + $0x250] sm:$0xff]  ;;  %v2349_v51 = vld [vmem:[%s5192_s10 + $0x2c8] sm:$0xff] }
 0x423   :  { %2797 = vmatprep.subr.mxu1 %v2276_v52  ;;  %2832 = vmatprep.subr.mxu0 %v2308_v53  ;;  %v2366_v50 = vld [vmem:[%s5192_s10 + $0x350] sm:$0xff]  ;;  %v2381_v29 = vld [vmem:[%s5192_s10 + $0x3c8] sm:$0xff] }
 0x424   :  { %2798 = vmatpush3.msra.mxu1 %v2260_v54  ;;  %2833 = vmatpush3.msra.mxu0 %v2292_v56  ;;  %v2333_v52 = vld [vmem:[%s5192_s10 + $0x248] sm:$0xff]  ;;  %v2348_v54 = vld [vmem:[%s5192_s10 + $0x2c0] sm:$0xff] }
 0x425   :  { %2837 = vmatprep.subr.mxu1 %v2355_v57  ;;  %2872 = vmatprep.subr.mxu0 %v2387_v58  ;;  %v2365_v53 = vld [vmem:[%s5192_s10 + $0x348] sm:$0xff]  ;;  %v2380_v56 = vld [vmem:[%s5192_s10 + $0x3c0] sm:$0xff] }
 0x426   :  { %v2332_v57 = vld [vmem:[%s5192_s10 + $0x240] sm:$0xff] }
 0x427   :  { %v2364_v58 = vld [vmem:[%s5192_s10 + $0x340] sm:$0xff] }
 0x483   :  { %v1994_v4 = vpop.f32.mrf.mxu1  ;;  %v2065_v31 = vpop.f32.mrf.mxu0 }
 0x484   :  { %v1995_v5 = vadd.f32 %v1994_v4, %v1827_v63  ;;  %v2066_v6 = vadd.f32 %v2065_v31, %v1835_v0  ;;  %v2347_v63 = vld [vmem:[%s5192_s10 + $0x2b8] sm:$0xff]  ;;  %v2346_v4 = vld [vmem:[%s5192_s10 + $0x2b0] sm:$0xff] }
 0x485   :  { %v1996_v7 = vpop.f32.mrf.mxu1  ;;  %v2067_v8 = vpop.f32.mrf.mxu0  ;;  %v2379_v0 = vld [vmem:[%s5192_s10 + $0x3b8] sm:$0xff]  ;;  %v2378_v31 = vld [vmem:[%s5192_s10 + $0x3b0] sm:$0xff] }
 0x486   :  { %v2724_v16 = vmul.f32 -1.442695, %v1995_v5  ;;  %v2726_v17 = vmul.f32 -1.442695, %v2066_v6  ;;  %v1997_v18 = vadd.f32 %v1996_v7, %v1831_v1  ;;  %v2068_v19 = vadd.f32 %v2067_v8, %v1839_v2  ;;  %v2331_v1 = vld [vmem:[%s5192_s10 + $0x238] sm:$0xff]  ;;  %v2330_v5 = vld [vmem:[%s5192_s10 + $0x230] sm:$0xff] }
 0x487   :  { %v2363_v2 = vld [vmem:[%s5192_s10 + $0x338] sm:$0xff]  ;;  %v2362_v6 = vld [vmem:[%s5192_s10 + $0x330] sm:$0xff]  ;;  %v2345_v7 = vld [vmem:[%s5192_s10 + $0x2a8] sm:$0xff] }
 0x488   :  { %3009 = vpow2.f32 %v2724_v16  ;;  %v2725_v11 = vmul.f32 -1.442695, %v1997_v18  ;;  %v2727_v20 = vmul.f32 -1.442695, %v2068_v19  ;;  %v2377_v8 = vld [vmem:[%s5192_s10 + $0x3a8] sm:$0xff]  ;;  %v2344_v18 = vld [vmem:[%s5192_s10 + $0x2a0] sm:$0xff] }
 0x489   :  { %3011 = vpow2.f32 %v2726_v17  ;;  %v2329_v16 = vld [vmem:[%s5192_s10 + $0x228] sm:$0xff]  ;;  %v2376_v19 = vld [vmem:[%s5192_s10 + $0x3a0] sm:$0xff] }
 0x48a   :  { %3013 = vpow2.f32 %v2725_v11  ;;  %v2361_v17 = vld [vmem:[%s5192_s10 + $0x328] sm:$0xff]  ;;  %v2328_v11 = vld [vmem:[%s5192_s10 + $0x220] sm:$0xff] }
 0x48b   :  { %3015 = vpow2.f32 %v2727_v20  ;;  %v2360_v20 = vld [vmem:[%s5192_s10 + $0x320] sm:$0xff] }
 0x495   :  { %v3010_v13 = vpop.eup %3009 }
 0x496   :  { %v3012_v14 = vpop.eup %3011  ;;  %v2236_v21 = vadd.f32 1.0, %v3010_v13  ;;  %v2343_v13 = vld [vmem:[%s5192_s10 + $0x298] sm:$0xff] }
 0x497   :  { %v3014_v15 = vpop.eup %3013  ;;  %v2238_v23 = vadd.f32 1.0, %v3012_v14  ;;  %v2375_v14 = vld [vmem:[%s5192_s10 + $0x398] sm:$0xff] }
 0x498   :  { %v3016_v22 = vpop.eup %3015  ;;  %v2237_v25 = vadd.f32 1.0, %v3014_v15  ;;  %3017 = vrcp.f32 %v2236_v21  ;;  %v2327_v21 = vld [vmem:[%s5192_s10 + $0x218] sm:$0xff] }
 0x499   :  { %v2239_v26 = vadd.f32 1.0, %v3016_v22  ;;  %v2359_v15 = vld [vmem:[%s5192_s10 + $0x318] sm:$0xff]  ;;  %v2342_v22 = vld [vmem:[%s5192_s10 + $0x290] sm:$0xff] }
 0x49a   :  { %3019 = vrcp.f32 %v2237_v25  ;;  %v1851_v25 = vrot.slane %v4969_v62, %v177_v55  ;;  %v2341_v55 = vld [vmem:[%s5192_s10 + $0x288] sm:$0xff] }
 0x49b   :  { %3021 = vrcp.f32 %v2239_v26  ;;  %v2374_v26 = vld [vmem:[%s5192_s10 + $0x390] sm:$0xff] }
 0x49c   :  { %3023 = vrcp.f32 %v2238_v23  ;;  %v1843_v23 = vrot.slane %v4969_v62, %v169_v59  ;;  %v2358_v59 = vld [vmem:[%s5192_s10 + $0x310] sm:$0xff] }
 0x4a5   :  { %v3018_v9 = vpop.eup %3017 }
 0x4a7   :  { %v3020_v27 = vpop.eup %3019 }
 0x4a8   :  { %v3022_v12 = vpop.eup %3021  ;;  %2459 = vmatprep.mubr.f32.mxu1 %v3020_v27  ;;  %v1847_v27 = vrot.slane %v4969_v62, %v173_v60  ;;  %v2340_v60 = vld [vmem:[%s5192_s10 + $0x280] sm:$0xff] }
 0x4a9   :  { %v3024_v33 = vpop.eup %3023  ;;  %2529 = vmatprep.mubr.f32.mxu0 %v3022_v12  ;;  %2460 = vmatmul.mubr.f32.vlgmr.msra.gmra.mxu1 %v3018_v9  ;;  %v2326_v9 = vld [vmem:[%s5192_s10 + $0x210] sm:$0xff]  ;;  %v2373_v12 = vld [vmem:[%s5192_s10 + $0x388] sm:$0xff] }
 0x4aa   :  { %2530 = vmatmul.mubr.f32.vlgmr.msra.gmra.mxu0 %v3024_v33  ;;  %2838 = vmatpush3.msra.mxu1 %v2339_v28  ;;  %v1855_v28 = vrot.slane %v4969_v62, %v181_v61 }
 0x4ab   :  { %2873 = vmatpush3.msra.mxu0 %v2371_v30  ;;  %2839 = vmatprep.subr.mxu1 %v2354_v32  ;;  %v2325_v30 = vld [vmem:[%s5192_s10 + $0x208] sm:$0xff] }
 0x4ac   :  { %2874 = vmatprep.subr.mxu0 %v2386_v24  ;;  %2840 = vmatpush3.msra.mxu1 %v2338_v34  ;;  %v2372_v24 = vld [vmem:[%s5192_s10 + $0x380] sm:$0xff] }
 0x4ad   :  { %2875 = vmatpush3.msra.mxu0 %v2370_v35  ;;  %2841 = vmatprep.subr.mxu1 %v2353_v36  ;;  %v2324_v34 = vld [vmem:[%s5192_s10 + $0x200] sm:$0xff] }
 0x4ae   :  { %2876 = vmatprep.subr.mxu0 %v2385_v37  ;;  %2842 = vmatpush3.msra.mxu1 %v2337_v38  ;;  %v2356_v37 = vld [vmem:[%s5192_s10 + $0x300] sm:$0xff] }
 0x4af   :  { %2877 = vmatpush3.msra.mxu0 %v2369_v39  ;;  %2843 = vmatprep.subr.mxu1 %v2352_v40 }
 0x4b0   :  { %2878 = vmatprep.subr.mxu0 %v2384_v41  ;;  %2844 = vmatpush3.msra.mxu1 %v2336_v42 }
 0x4b1   :  { %2879 = vmatpush3.msra.mxu0 %v2368_v43  ;;  %2845 = vmatprep.subr.mxu1 %v2351_v44 }
 0x4b2   :  { %2880 = vmatprep.subr.mxu0 %v2383_v45  ;;  %2846 = vmatpush3.msra.mxu1 %v2335_v46 }
 0x4b3   :  { %2881 = vmatpush3.msra.mxu0 %v2367_v47  ;;  %2847 = vmatprep.subr.mxu1 %v2350_v48 }
 0x4b4   :  { %2882 = vmatprep.subr.mxu0 %v2382_v49  ;;  %2848 = vmatpush3.msra.mxu1 %v2334_v3 }
 0x4b5   :  { %2883 = vmatpush3.msra.mxu0 %v2366_v50  ;;  %2849 = vmatprep.subr.mxu1 %v2349_v51 }
 0x4b6   :  { %2884 = vmatprep.subr.mxu0 %v2381_v29  ;;  %2850 = vmatpush3.msra.mxu1 %v2333_v52 }
 0x4b7   :  { %2885 = vmatpush3.msra.mxu0 %v2365_v53  ;;  %2851 = vmatprep.subr.mxu1 %v2348_v54 }
 0x4b8   :  { %2886 = vmatprep.subr.mxu0 %v2380_v56  ;;  %2852 = vmatpush3.msra.mxu1 %v2332_v57 }
 0x4b9   :  { %2887 = vmatpush3.msra.mxu0 %v2364_v58  ;;  %2853 = vmatprep.subr.mxu1 %v2347_v63  ;;  %v2732_v63 = vld [vmem:[%s5194_s11] ss:$0 sm:$0xff] }
 0x4ba   :  { %2888 = vmatprep.subr.mxu0 %v2379_v0  ;;  %2854 = vmatpush3.msra.mxu1 %v2331_v1 }
 0x4bb   :  { %2889 = vmatpush3.msra.mxu0 %v2363_v2  ;;  %2855 = vmatprep.subr.mxu1 %v2346_v4 }
 0x4bc   :  { %2890 = vmatprep.subr.mxu0 %v2378_v31  ;;  %2856 = vmatpush3.msra.mxu1 %v2330_v5 }
 0x4bd   :  { %2891 = vmatpush3.msra.mxu0 %v2362_v6  ;;  %2857 = vmatprep.subr.mxu1 %v2345_v7 }
 0x4be   :  { %2892 = vmatprep.subr.mxu0 %v2377_v8  ;;  %2858 = vmatpush3.msra.mxu1 %v2329_v16 }
 0x4bf   :  { %2893 = vmatpush3.msra.mxu0 %v2361_v17  ;;  %2859 = vmatprep.subr.mxu1 %v2344_v18 }
 0x4c0   :  { %2894 = vmatprep.subr.mxu0 %v2376_v19  ;;  %2860 = vmatpush3.msra.mxu1 %v2328_v11 }
 0x4c1   :  { %2895 = vmatpush3.msra.mxu0 %v2360_v20  ;;  %2861 = vmatprep.subr.mxu1 %v2343_v13 }
 0x4c2   :  { %2896 = vmatprep.subr.mxu0 %v2375_v14  ;;  %2862 = vmatpush3.msra.mxu1 %v2327_v21 }
 0x4c3   :  { %2897 = vmatpush3.msra.mxu0 %v2359_v15  ;;  %2863 = vmatprep.subr.mxu1 %v2342_v22 }
 0x4c4   :  { %v2136_v32 = vpop.f32.mrf.mxu1  ;;  %v2207_v33 = vpop.f32.mrf.mxu0  ;;  %2898 = vmatprep.subr.mxu0 %v2374_v26  ;;  %2864 = vmatpush3.msra.mxu1 %v2326_v9 }
 0x4c5   :  { %v2137_v61 = vadd.f32 %v2136_v32, %v1843_v23  ;;  %v2208_v62 = vadd.f32 %v2207_v33, %v1851_v25  ;;  %2899 = vmatpush3.msra.mxu0 %v2358_v59  ;;  %2865 = vmatprep.subr.mxu1 %v2341_v55 }
 0x4c6   :  { %v2138_v35 = vpop.f32.mrf.mxu1  ;;  %v2209_v36 = vpop.f32.mrf.mxu0  ;;  %2900 = vmatprep.subr.mxu0 %v2373_v12  ;;  %2866 = vmatpush3.msra.mxu1 %v2325_v30 }
 0x4c7   :  { %v2728_v38 = vmul.f32 -1.442695, %v2137_v61  ;;  %v2730_v39 = vmul.f32 -1.442695, %v2208_v62  ;;  %v2139_v40 = vadd.f32 %v2138_v35, %v1847_v27  ;;  %v2210_v41 = vadd.f32 %v2209_v36, %v1855_v28  ;;  %2901 = vmatpush3.msra.mxu0 %v2357_v10  ;;  %2867 = vmatprep.subr.mxu1 %v2340_v60 }
 0x4c8   :  { %2902 = vmatprep.subr.mxu0 %v2372_v24  ;;  %2868 = vmatpush3.msra.mxu1 %v2324_v34 }
 0x4c9   :  { %3025 = vpow2.f32 %v2728_v38  ;;  %v2729_v42 = vmul.f32 -1.442695, %v2139_v40  ;;  %v2731_v43 = vmul.f32 -1.442695, %v2210_v41  ;;  %2903 = vmatpush3.msra.mxu0 %v2356_v37 }
 0x4ca   :  { %3027 = vpow2.f32 %v2730_v39 }
 0x4cb   :  { %3029 = vpow2.f32 %v2729_v42 }
 0x4cc   :  { %3031 = vpow2.f32 %v2731_v43 }
 0x4d6   :  { %v3026_v44 = vpop.eup %3025 }
 0x4d7   :  { %v3028_v45 = vpop.eup %3027  ;;  %v2240_v46 = vadd.f32 1.0, %v3026_v44 }
 0x4d8   :  { %v3030_v47 = vpop.eup %3029  ;;  %v2242_v49 = vadd.f32 1.0, %v3028_v45 }
 0x4d9   :  { %v3032_v48 = vpop.eup %3031  ;;  %v2241_v3 = vadd.f32 1.0, %v3030_v47  ;;  %3033 = vrcp.f32 %v2240_v46 }
 0x4da   :  { %v2243_v50 = vadd.f32 1.0, %v3032_v48 }
 0x4db   :  { %3035 = vrcp.f32 %v2241_v3 }
 0x4dc   :  { %3037 = vrcp.f32 %v2243_v50 }
 0x4dd   :  { %3039 = vrcp.f32 %v2242_v49 }
 0x4e6   :  { %v3034_v51 = vpop.eup %3033 }
 0x4e8   :  { %v3036_v29 = vpop.eup %3035 }
 0x4e9   :  { %v3038_v52 = vpop.eup %3037  ;;  %2599 = vmatprep.mubr.f32.mxu1 %v3036_v29 }
 0x4ea   :  { %v3040_v53 = vpop.eup %3039  ;;  %2669 = vmatprep.mubr.f32.mxu0 %v3038_v52  ;;  %2600 = vmatmul.mubr.f32.vlgmr.msra.gmra.mxu1 %v3034_v51 }
 0x4eb   :  { %2670 = vmatmul.mubr.f32.vlgmr.msra.gmra.mxu0 %v3040_v53 }
 0x569   :  { %v2799_v54 = vpop.f32.mrf.mxu1 }
 0x56a   :  { %v2834_v57 = vpop.f32.mrf.mxu0 }
 0x56b   :  { %v2800_v56 = vpop.f32.mrf.mxu1 }
 0x56c   :  { %v2801_v58 = vadd.f32 %v2800_v56, %v2799_v54  ;;  %v2835_v0 = vpop.f32.mrf.mxu0 }
 0x56d   :  { %v2836_v4 = vadd.f32 %v2835_v0, %v2834_v57 }
 0x56e   :  { %v2462_v1 = vadd.f32 %v2801_v58, %v2732_v63 }
 0x570   :  { %v2532_v6 = vadd.f32 %v2836_v4, %v2462_v1 }
 0x5aa   :  { %v2869_v2 = vpop.f32.mrf.mxu1 }
 0x5ab   :  { %v2904_v31 = vpop.f32.mrf.mxu0 }
 0x5ac   :  { %v2870_v5 = vpop.f32.mrf.mxu1 }
 0x5ad   :  { %v2871_v7 = vadd.f32 %v2870_v5, %v2869_v2  ;;  %v2905_v8 = vpop.f32.mrf.mxu0 }
 0x5ae   :  { %v2906_v17 = vadd.f32 %v2905_v8, %v2904_v31 }
 0x5af   :  { %v2602_v16 = vadd.f32 %v2871_v7, %v2532_v6 }
 0x5b1   :  { %v2672_v18 = vadd.f32 %v2906_v17, %v2602_v16 }
 0x5b3   :  { %2676 = vst.msk [vmem:[%s5195_s12] sm:$0xff] %vm2675_vm7, %v2672_v18 }

</bundles_post_ra>
